<compile_context>
chip_gen: v5e
topology: v5e:2x2
jax: 0.10.0
libtpu: 0.0.40
codegen_flags: <defaults>
</compile_context>

<pallas_src>
import functools

import numpy as np
import jax
import jax.numpy as jnp
from jax.experimental import pallas as pl
from jax.experimental.pallas import tpu as pltpu

_SQRT1_2 = 0.7071067811865476


def _gelu_exact(x):
    # matches torch.nn.GELU() default (erf formulation)
    return 0.5 * x * (1.0 + jax.lax.erf(x * _SQRT1_2))


def _conv_cfg(input_channels, base_channels):
    ch = base_channels
    return [
        (input_channels, ch, 2), (ch, ch, 1),
        (ch, 2 * ch, 2), (2 * ch, 2 * ch, 1),
        (2 * ch, 4 * ch, 2), (4 * ch, 4 * ch, 1),
        (4 * ch, 8 * ch, 2), (8 * ch, 8 * ch, 1),
    ]


# ---------------------------------------------------------------------------
# Parameter init (conv weights OIHW like torch; Linear weights as (fin, fout))
# ---------------------------------------------------------------------------
def init_encoder_params(key, input_channels, base_channels, latent_dim):
    convs = []
    for cin, cout, _s in _conv_cfg(input_channels, base_channels):
        key, k1, k2 = jax.random.split(key, 3)
        w = jax.random.normal(k1, (cout, cin, 3, 3), jnp.float32) * 0.1
        b = jax.random.normal(k2, (cout,), jnp.float32) * 0.01
        convs.append((w, b))
    ch = base_channels
    linears = []
    for fin, fout in [(16 * 8 * ch, 2 * latent_dim), (2 * latent_dim, latent_dim)]:
        key, k1, k2 = jax.random.split(key, 3)
        w = jax.random.normal(k1, (fin, fout), jnp.float32) * 0.05
        b = jax.random.normal(k2, (fout,), jnp.float32) * 0.01
        linears.append((w, b))
    return convs, linears


# ---------------------------------------------------------------------------
# Offline repack:  conv -> (L, A, bias_row),  MLP -> permuted W1
# ---------------------------------------------------------------------------
def pack_encoder(convs, linears, input_channels, base_channels, H, W):
    cfg = _conv_cfg(input_channels, base_channels)
    conv_packed, layer_meta = [], []
    h, w_sp = H, W
    for (wt, bt), (cin, cout, s) in zip(convs, cfg):
        w_np = np.asarray(wt)                              # (cout, cin, 3, 3) OIHW
        b_np = np.asarray(bt)
        h_out = (h + 2 - 3) // s + 1
        w_out = (w_sp + 2 - 3) // s + 1
        # A[dy]: banded x/channel conv matrix (also encodes x-padding and stride)
        A = np.zeros((3, w_sp * cin, w_out * cout), np.float32)
        for dy in range(3):
            for xo in range(w_out):
                for dx in range(3):
                    xi = s * xo + dx - 1
                    if 0 <= xi < w_sp:
                        A[dy, xi * cin:(xi + 1) * cin, xo * cout:(xo + 1) * cout] = \
                            w_np[:, :, dy, dx].T
        a_cat = np.concatenate([A[0], A[1], A[2]], axis=1)  # (Win*Cin, 3*Wout*Cout)
        # L[dy]: 0/1 row selection (y shift / stride / padding)
        L = np.zeros((3, h_out, h), np.float32)
        for dy in range(3):
            for yo in range(h_out):
                yi = s * yo + dy - 1
                if 0 <= yi < h:
                    L[dy, yo, yi] = 1.0
        b_row = np.tile(b_np, w_out)[None, :].astype(np.float32)
        conv_packed.append((jnp.asarray(L), jnp.asarray(a_cat), jnp.asarray(b_row)))
        layer_meta.append((h, h_out, w_out * cout, s))
        h, w_sp = h_out, w_out

    # Fold torch Flatten order (c, y, x) into W1's rows; our flat lane order is
    # g = y*(W_f*C_f) + x*C_f + c.
    (w1, b1), (w2, b2) = linears
    c_f = cfg[-1][1]
    h_f, w_f = h, w_sp
    row_w = w_f * c_f
    assert h_f * row_w == w1.shape[0], "input spatial size inconsistent with Flatten"
    g = np.arange(h_f * row_w)
    y, rem = g // row_w, g % row_w
    x, c = rem // c_f, rem % c_f
    perm = c * (h_f * w_f) + y * w_f + x
    w1p = jnp.asarray(np.asarray(w1)[perm, :])
    mlp_packed = (w1p, jnp.asarray(b1).reshape(1, -1),
                  jnp.asarray(w2), jnp.asarray(b2).reshape(1, -1))
    return conv_packed, mlp_packed, layer_meta, (h_f, row_w)


# ---------------------------------------------------------------------------
# Fused kernel: 8 convs + flatten + MLP, one image per grid step
# ---------------------------------------------------------------------------
def _make_kernel(layer_meta, final_rows, final_row_w):
    n_layers = len(layer_meta)

    def kernel(*refs):
        x_ref = refs[0]
        idx = 1
        conv_refs = []
        for _ in range(n_layers):
            conv_refs.append(refs[idx:idx + 3])
            idx += 3
        w1_ref, b1_ref, w2_ref, b2_ref = refs[idx:idx + 4]
        out_ref = refs[idx + 4]
        flat_ref = refs[idx + 5]

        act = x_ref[0]                                       # (H0, W0*C0) f32
        for (l_ref, a_ref, b_ref), (_h_in, _h_out, wcout, stride) in zip(
                conv_refs, layer_meta):
            z = jnp.dot(act, a_ref[...],
                        preferred_element_type=jnp.float32)  # (H_in, 3*wcout)
            acc = None
            for dy in range(3):
                zd = z[:, dy * wcout:(dy + 1) * wcout]       # (H_in, wcout)
                if stride == 1 and dy == 1:
                    t = zd                                    # L[1] is identity
                else:
                    t = jnp.dot(l_ref[dy], zd,
                                preferred_element_type=jnp.float32)  # (H_out, wcout)
                acc = t if acc is None else acc + t
            act = _gelu_exact(acc + b_ref[...])

        # Flatten (H_f, row_w) -> (1, H_f*row_w) via aligned row stores, fused MLP.
        for y in range(final_rows):
            flat_ref[0:1, y * final_row_w:(y + 1) * final_row_w] = act[y:y + 1, :]
        feat = flat_ref[...]
        hid = _gelu_exact(jnp.dot(feat, w1_ref[...],
                                  preferred_element_type=jnp.float32) + b1_ref[...])
        out = jnp.dot(hid, w2_ref[...],
                      preferred_element_type=jnp.float32) + b2_ref[...]
        out_ref[...] = out.reshape(out_ref.shape).astype(out_ref.dtype)

    return kernel


def encoder_forward(conv_packed, mlp_packed, layer_meta, final_shape, x_nchw):
    N, C, H, W = x_nchw.shape
    # One-time layout transform (XLA side): NCHW -> (N, H, W*C) rows.
    x_rows = jnp.transpose(x_nchw, (0, 2, 3, 1)).reshape(N, H, W * C)

    final_rows, final_row_w = final_shape
    latent = mlp_packed[2].shape[1]

    inputs = [x_rows]
    for lab in conv_packed:
        inputs.extend(lab)
    inputs.extend(mlp_packed)

    def _const_spec(a):
        nd = a.ndim
        return pl.BlockSpec(a.shape, lambda n, _nd=nd: (0,) * _nd)

    in_specs = [pl.BlockSpec((1, H, W * C), lambda n: (n, 0, 0))]
    in_specs += [_const_spec(a) for a in inputs[1:]]

    out = pl.pallas_call(
        _make_kernel(layer_meta, final_rows, final_row_w),
        out_shape=jax.ShapeDtypeStruct((N, 1, latent), jnp.float32),
        grid=(N,),
        in_specs=in_specs,
        out_specs=pl.BlockSpec((1, 1, latent), lambda n: (n, 0, 0)),
        scratch_shapes=[pltpu.VMEM((1, final_rows * final_row_w), jnp.float32)],
        compiler_params=pltpu.CompilerParams(dimension_semantics=("parallel",)),
    )(*inputs)
    return out.reshape(N, latent)


# ---------------------------------------------------------------------------
# Pure-JAX reference (for correctness check)
# ---------------------------------------------------------------------------
def reference_forward(convs, linears, x_nchw, input_channels, base_channels):
    cfg = _conv_cfg(input_channels, base_channels)
    x = x_nchw
    for (w, b), (_cin, _cout, s) in zip(convs, cfg):
        x = jax.lax.conv_general_dilated(
            x, w, window_strides=(s, s), padding=((1, 1), (1, 1)),
            dimension_numbers=("NCHW", "OIHW", "NCHW"),
            precision=jax.lax.Precision.HIGHEST)
        x = _gelu_exact(x + b.reshape(1, -1, 1, 1))
    x = x.reshape(x.shape[0], -1)
    (w1, b1), (w2, b2) = linears
    x = _gelu_exact(jnp.dot(x, w1, precision=jax.lax.Precision.HIGHEST) + b1)
    x = jnp.dot(x, w2, precision=jax.lax.Precision.HIGHEST) + b2
    return x


if __name__ == "__main__":
    # The architecture requires 64x64 input so Flatten yields 16 * 8 * ch features.
    batch, input_channels, base_channels, latent_dim = 2, 3, 4, 8

    key = jax.random.PRNGKey(0)
    kx, kp = jax.random.split(key)
    x = jax.random.normal(kx, (batch, input_channels, 64, 64), jnp.float32)  # NCHW

    convs, linears = init_encoder_params(kp, input_channels, base_channels, latent_dim)

    conv_packed, mlp_packed, layer_meta, final_shape = pack_encoder(
        convs, linears, input_channels, base_channels, 64, 64)

    fwd = jax.jit(functools.partial(encoder_forward, conv_packed, mlp_packed,
                                    layer_meta, final_shape))
    out = jax.block_until_ready(fwd(x))
    assert out.shape == (batch, latent_dim), out.shape

    ref = jax.block_until_ready(
        reference_forward(convs, linears, x, input_channels, base_channels))
    err = jnp.max(jnp.abs(out - ref))
    assert jnp.allclose(out, ref, atol=2e-2, rtol=2e-2), f"max abs err {err}"

    print("KERNEL_OK")
</pallas_src>

<mosaic_0001>
module attributes {stable_mosaic.version = 11 : i64} {
  func.func @kernel(%arg0: i32, %arg1: memref<1x64x192xf32, #tpu.memory_space<vmem>>, %arg2: memref<3x32x64xf32, #tpu.memory_space<vmem>>, %arg3: memref<192x384xf32, #tpu.memory_space<vmem>>, %arg4: memref<1x128xf32, #tpu.memory_space<vmem>>, %arg5: memref<3x32x32xf32, #tpu.memory_space<vmem>>, %arg6: memref<128x384xf32, #tpu.memory_space<vmem>>, %arg7: memref<1x128xf32, #tpu.memory_space<vmem>>, %arg8: memref<3x16x32xf32, #tpu.memory_space<vmem>>, %arg9: memref<128x384xf32, #tpu.memory_space<vmem>>, %arg10: memref<1x128xf32, #tpu.memory_space<vmem>>, %arg11: memref<3x16x16xf32, #tpu.memory_space<vmem>>, %arg12: memref<128x384xf32, #tpu.memory_space<vmem>>, %arg13: memref<1x128xf32, #tpu.memory_space<vmem>>, %arg14: memref<3x8x16xf32, #tpu.memory_space<vmem>>, %arg15: memref<128x384xf32, #tpu.memory_space<vmem>>, %arg16: memref<1x128xf32, #tpu.memory_space<vmem>>, %arg17: memref<3x8x8xf32, #tpu.memory_space<vmem>>, %arg18: memref<128x384xf32, #tpu.memory_space<vmem>>, %arg19: memref<1x128xf32, #tpu.memory_space<vmem>>, %arg20: memref<3x4x8xf32, #tpu.memory_space<vmem>>, %arg21: memref<128x384xf32, #tpu.memory_space<vmem>>, %arg22: memref<1x128xf32, #tpu.memory_space<vmem>>, %arg23: memref<3x4x4xf32, #tpu.memory_space<vmem>>, %arg24: memref<128x384xf32, #tpu.memory_space<vmem>>, %arg25: memref<1x128xf32, #tpu.memory_space<vmem>>, %arg26: memref<512x16xf32, #tpu.memory_space<vmem>>, %arg27: memref<1x16xf32, #tpu.memory_space<vmem>>, %arg28: memref<16x8xf32, #tpu.memory_space<vmem>>, %arg29: memref<1x8xf32, #tpu.memory_space<vmem>>, %arg30: memref<1x1x8xf32, #tpu.memory_space<vmem>>, %arg31: memref<1x512xf32, #tpu.memory_space<vmem>>) attributes {dimension_semantics = [#tpu.dimension_semantics<parallel>], iteration_bounds = array<i64: 2>, scalar_prefetch = 0 : i64, scratch_operands = 1 : i64, tpu.core_type = #tpu.core_type<tc>, window_params = [{transform_indices = @transform_0, window_bounds = array<i64: 1, 64, 192>}, {pipeline_mode = #tpu.pipeline_mode<synchronous>, transform_indices = @transform_1, window_bounds = array<i64: 3, 32, 64>}, {pipeline_mode = #tpu.pipeline_mode<synchronous>, transform_indices = @transform_2, window_bounds = array<i64: 192, 384>}, {pipeline_mode = #tpu.pipeline_mode<synchronous>, transform_indices = @transform_3, window_bounds = array<i64: 1, 128>}, {pipeline_mode = #tpu.pipeline_mode<synchronous>, transform_indices = @transform_4, window_bounds = array<i64: 3, 32, 32>}, {pipeline_mode = #tpu.pipeline_mode<synchronous>, transform_indices = @transform_5, window_bounds = array<i64: 128, 384>}, {pipeline_mode = #tpu.pipeline_mode<synchronous>, transform_indices = @transform_6, window_bounds = array<i64: 1, 128>}, {pipeline_mode = #tpu.pipeline_mode<synchronous>, transform_indices = @transform_7, window_bounds = array<i64: 3, 16, 32>}, {pipeline_mode = #tpu.pipeline_mode<synchronous>, transform_indices = @transform_8, window_bounds = array<i64: 128, 384>}, {pipeline_mode = #tpu.pipeline_mode<synchronous>, transform_indices = @transform_9, window_bounds = array<i64: 1, 128>}, {pipeline_mode = #tpu.pipeline_mode<synchronous>, transform_indices = @transform_10, window_bounds = array<i64: 3, 16, 16>}, {pipeline_mode = #tpu.pipeline_mode<synchronous>, transform_indices = @transform_11, window_bounds = array<i64: 128, 384>}, {pipeline_mode = #tpu.pipeline_mode<synchronous>, transform_indices = @transform_12, window_bounds = array<i64: 1, 128>}, {pipeline_mode = #tpu.pipeline_mode<synchronous>, transform_indices = @transform_13, window_bounds = array<i64: 3, 8, 16>}, {pipeline_mode = #tpu.pipeline_mode<synchronous>, transform_indices = @transform_14, window_bounds = array<i64: 128, 384>}, {pipeline_mode = #tpu.pipeline_mode<synchronous>, transform_indices = @transform_15, window_bounds = array<i64: 1, 128>}, {pipeline_mode = #tpu.pipeline_mode<synchronous>, transform_indices = @transform_16, window_bounds = array<i64: 3, 8, 8>}, {pipeline_mode = #tpu.pipeline_mode<synchronous>, transform_indices = @transform_17, window_bounds = array<i64: 128, 384>}, {pipeline_mode = #tpu.pipeline_mode<synchronous>, transform_indices = @transform_18, window_bounds = array<i64: 1, 128>}, {pipeline_mode = #tpu.pipeline_mode<synchronous>, transform_indices = @transform_19, window_bounds = array<i64: 3, 4, 8>}, {pipeline_mode = #tpu.pipeline_mode<synchronous>, transform_indices = @transform_20, window_bounds = array<i64: 128, 384>}, {pipeline_mode = #tpu.pipeline_mode<synchronous>, transform_indices = @transform_21, window_bounds = array<i64: 1, 128>}, {pipeline_mode = #tpu.pipeline_mode<synchronous>, transform_indices = @transform_22, window_bounds = array<i64: 3, 4, 4>}, {pipeline_mode = #tpu.pipeline_mode<synchronous>, transform_indices = @transform_23, window_bounds = array<i64: 128, 384>}, {pipeline_mode = #tpu.pipeline_mode<synchronous>, transform_indices = @transform_24, window_bounds = array<i64: 1, 128>}, {pipeline_mode = #tpu.pipeline_mode<synchronous>, transform_indices = @transform_25, window_bounds = array<i64: 512, 16>}, {pipeline_mode = #tpu.pipeline_mode<synchronous>, transform_indices = @transform_26, window_bounds = array<i64: 1, 16>}, {pipeline_mode = #tpu.pipeline_mode<synchronous>, transform_indices = @transform_27, window_bounds = array<i64: 16, 8>}, {pipeline_mode = #tpu.pipeline_mode<synchronous>, transform_indices = @transform_28, window_bounds = array<i64: 1, 8>}, {transform_indices = @transform_29, window_bounds = array<i64: 1, 1, 8>}]} {
    %c0 = arith.constant 0 : index
    %c0_0 = arith.constant 0 : index
    %c0_1 = arith.constant 0 : index
    %0 = vector.load %arg1[%c0, %c0_0, %c0_1] : memref<1x64x192xf32, #tpu.memory_space<vmem>>, vector<1x64x192xf32>
    %1 = vector.shape_cast %0 : vector<1x64x192xf32> to vector<64x192xf32>
    %c0_2 = arith.constant 0 : index
    %c0_3 = arith.constant 0 : index
    %2 = vector.load %arg3[%c0_2, %c0_3] : memref<192x384xf32, #tpu.memory_space<vmem>>, vector<192x384xf32>
    %cst = arith.constant dense<0.000000e+00> : vector<64x384xf32>
    %3 = tpu.matmul %1, %2, %cst {dimension_numbers = #tpu.dot_dimension_numbers<[1], [0], [0], [1], [0, 0, 1, 1], [], []>} : vector<64x192xf32>, vector<192x384xf32>, vector<64x384xf32> -> vector<64x384xf32>
    %4 = vector.extract_strided_slice %3 {offsets = [0, 0], sizes = [64, 128], strides = [1, 1]} : vector<64x384xf32> to vector<64x128xf32>
    %c0_4 = arith.constant 0 : index
    %c0_5 = arith.constant 0 : index
    %c0_6 = arith.constant 0 : index
    %5 = vector.load %arg2[%c0_4, %c0_5, %c0_6] : memref<3x32x64xf32, #tpu.memory_space<vmem>>, vector<1x32x64xf32>
    %6 = vector.shape_cast %5 : vector<1x32x64xf32> to vector<32x64xf32>
    %cst_7 = arith.constant dense<0.000000e+00> : vector<32x128xf32>
    %7 = tpu.matmul %6, %4, %cst_7 {dimension_numbers = #tpu.dot_dimension_numbers<[1], [0], [0], [1], [0, 0, 1, 1], [], []>} : vector<32x64xf32>, vector<64x128xf32>, vector<32x128xf32> -> vector<32x128xf32>
    %8 = vector.extract_strided_slice %3 {offsets = [0, 128], sizes = [64, 128], strides = [1, 1]} : vector<64x384xf32> to vector<64x128xf32>
    %c1 = arith.constant 1 : index
    %c0_8 = arith.constant 0 : index
    %c0_9 = arith.constant 0 : index
    %9 = vector.load %arg2[%c1, %c0_8, %c0_9] : memref<3x32x64xf32, #tpu.memory_space<vmem>>, vector<1x32x64xf32>
    %10 = vector.shape_cast %9 : vector<1x32x64xf32> to vector<32x64xf32>
    %cst_10 = arith.constant dense<0.000000e+00> : vector<32x128xf32>
    %11 = tpu.matmul %10, %8, %cst_10 {dimension_numbers = #tpu.dot_dimension_numbers<[1], [0], [0], [1], [0, 0, 1, 1], [], []>} : vector<32x64xf32>, vector<64x128xf32>, vector<32x128xf32> -> vector<32x128xf32>
    %12 = arith.addf %7, %11 : vector<32x128xf32>
    %13 = vector.extract_strided_slice %3 {offsets = [0, 256], sizes = [64, 128], strides = [1, 1]} : vector<64x384xf32> to vector<64x128xf32>
    %c2 = arith.constant 2 : index
    %c0_11 = arith.constant 0 : index
    %c0_12 = arith.constant 0 : index
    %14 = vector.load %arg2[%c2, %c0_11, %c0_12] : memref<3x32x64xf32, #tpu.memory_space<vmem>>, vector<1x32x64xf32>
    %15 = vector.shape_cast %14 : vector<1x32x64xf32> to vector<32x64xf32>
    %cst_13 = arith.constant dense<0.000000e+00> : vector<32x128xf32>
    %16 = tpu.matmul %15, %13, %cst_13 {dimension_numbers = #tpu.dot_dimension_numbers<[1], [0], [0], [1], [0, 0, 1, 1], [], []>} : vector<32x64xf32>, vector<64x128xf32>, vector<32x128xf32> -> vector<32x128xf32>
    %17 = arith.addf %12, %16 : vector<32x128xf32>
    %c0_14 = arith.constant 0 : index
    %c0_15 = arith.constant 0 : index
    %18 = vector.load %arg4[%c0_14, %c0_15] : memref<1x128xf32, #tpu.memory_space<vmem>>, vector<1x128xf32>
    %19 = vector.broadcast %18 : vector<1x128xf32> to vector<32x128xf32>
    %20 = arith.addf %17, %19 : vector<32x128xf32>
    %cst_16 = arith.constant 5.000000e-01 : f32
    %21 = vector.broadcast %cst_16 : f32 to vector<32x128xf32>
    %22 = arith.mulf %21, %20 : vector<32x128xf32>
    %cst_17 = arith.constant 0.707106769 : f32
    %23 = vector.broadcast %cst_17 : f32 to vector<32x128xf32>
    %24 = arith.mulf %20, %23 : vector<32x128xf32>
    %25 = math.erf %24 : vector<32x128xf32>
    %cst_18 = arith.constant 1.000000e+00 : f32
    %26 = vector.broadcast %cst_18 : f32 to vector<32x128xf32>
    %27 = arith.addf %26, %25 : vector<32x128xf32>
    %28 = arith.mulf %22, %27 : vector<32x128xf32>
    %c0_19 = arith.constant 0 : index
    %c0_20 = arith.constant 0 : index
    %29 = vector.load %arg6[%c0_19, %c0_20] : memref<128x384xf32, #tpu.memory_space<vmem>>, vector<128x384xf32>
    %cst_21 = arith.constant dense<0.000000e+00> : vector<32x384xf32>
    %30 = tpu.matmul %28, %29, %cst_21 {dimension_numbers = #tpu.dot_dimension_numbers<[1], [0], [0], [1], [0, 0, 1, 1], [], []>} : vector<32x128xf32>, vector<128x384xf32>, vector<32x384xf32> -> vector<32x384xf32>
    %31 = vector.extract_strided_slice %30 {offsets = [0, 0], sizes = [32, 128], strides = [1, 1]} : vector<32x384xf32> to vector<32x128xf32>
    %c0_22 = arith.constant 0 : index
    %c0_23 = arith.constant 0 : index
    %c0_24 = arith.constant 0 : index
    %32 = vector.load %arg5[%c0_22, %c0_23, %c0_24] : memref<3x32x32xf32, #tpu.memory_space<vmem>>, vector<1x32x32xf32>
    %33 = vector.shape_cast %32 : vector<1x32x32xf32> to vector<32x32xf32>
    %cst_25 = arith.constant dense<0.000000e+00> : vector<32x128xf32>
    %34 = tpu.matmul %33, %31, %cst_25 {dimension_numbers = #tpu.dot_dimension_numbers<[1], [0], [0], [1], [0, 0, 1, 1], [], []>} : vector<32x32xf32>, vector<32x128xf32>, vector<32x128xf32> -> vector<32x128xf32>
    %35 = vector.extract_strided_slice %30 {offsets = [0, 128], sizes = [32, 128], strides = [1, 1]} : vector<32x384xf32> to vector<32x128xf32>
    %36 = arith.addf %34, %35 : vector<32x128xf32>
    %37 = vector.extract_strided_slice %30 {offsets = [0, 256], sizes = [32, 128], strides = [1, 1]} : vector<32x384xf32> to vector<32x128xf32>
    %c2_26 = arith.constant 2 : index
    %c0_27 = arith.constant 0 : index
    %c0_28 = arith.constant 0 : index
    %38 = vector.load %arg5[%c2_26, %c0_27, %c0_28] : memref<3x32x32xf32, #tpu.memory_space<vmem>>, vector<1x32x32xf32>
    %39 = vector.shape_cast %38 : vector<1x32x32xf32> to vector<32x32xf32>
    %cst_29 = arith.constant dense<0.000000e+00> : vector<32x128xf32>
    %40 = tpu.matmul %39, %37, %cst_29 {dimension_numbers = #tpu.dot_dimension_numbers<[1], [0], [0], [1], [0, 0, 1, 1], [], []>} : vector<32x32xf32>, vector<32x128xf32>, vector<32x128xf32> -> vector<32x128xf32>
    %41 = arith.addf %36, %40 : vector<32x128xf32>
    %c0_30 = arith.constant 0 : index
    %c0_31 = arith.constant 0 : index
    %42 = vector.load %arg7[%c0_30, %c0_31] : memref<1x128xf32, #tpu.memory_space<vmem>>, vector<1x128xf32>
    %43 = vector.broadcast %42 : vector<1x128xf32> to vector<32x128xf32>
    %44 = arith.addf %41, %43 : vector<32x128xf32>
    %cst_32 = arith.constant 5.000000e-01 : f32
    %45 = vector.broadcast %cst_32 : f32 to vector<32x128xf32>
    %46 = arith.mulf %45, %44 : vector<32x128xf32>
    %cst_33 = arith.constant 0.707106769 : f32
    %47 = vector.broadcast %cst_33 : f32 to vector<32x128xf32>
    %48 = arith.mulf %44, %47 : vector<32x128xf32>
    %49 = math.erf %48 : vector<32x128xf32>
    %cst_34 = arith.constant 1.000000e+00 : f32
    %50 = vector.broadcast %cst_34 : f32 to vector<32x128xf32>
    %51 = arith.addf %50, %49 : vector<32x128xf32>
    %52 = arith.mulf %46, %51 : vector<32x128xf32>
    %c0_35 = arith.constant 0 : index
    %c0_36 = arith.constant 0 : index
    %53 = vector.load %arg9[%c0_35, %c0_36] : memref<128x384xf32, #tpu.memory_space<vmem>>, vector<128x384xf32>
    %cst_37 = arith.constant dense<0.000000e+00> : vector<32x384xf32>
    %54 = tpu.matmul %52, %53, %cst_37 {dimension_numbers = #tpu.dot_dimension_numbers<[1], [0], [0], [1], [0, 0, 1, 1], [], []>} : vector<32x128xf32>, vector<128x384xf32>, vector<32x384xf32> -> vector<32x384xf32>
    %55 = vector.extract_strided_slice %54 {offsets = [0, 0], sizes = [32, 128], strides = [1, 1]} : vector<32x384xf32> to vector<32x128xf32>
    %c0_38 = arith.constant 0 : index
    %c0_39 = arith.constant 0 : index
    %c0_40 = arith.constant 0 : index
    %56 = vector.load %arg8[%c0_38, %c0_39, %c0_40] : memref<3x16x32xf32, #tpu.memory_space<vmem>>, vector<1x16x32xf32>
    %57 = vector.shape_cast %56 : vector<1x16x32xf32> to vector<16x32xf32>
    %cst_41 = arith.constant dense<0.000000e+00> : vector<16x128xf32>
    %58 = tpu.matmul %57, %55, %cst_41 {dimension_numbers = #tpu.dot_dimension_numbers<[1], [0], [0], [1], [0, 0, 1, 1], [], []>} : vector<16x32xf32>, vector<32x128xf32>, vector<16x128xf32> -> vector<16x128xf32>
    %59 = vector.extract_strided_slice %54 {offsets = [0, 128], sizes = [32, 128], strides = [1, 1]} : vector<32x384xf32> to vector<32x128xf32>
    %c1_42 = arith.constant 1 : index
    %c0_43 = arith.constant 0 : index
    %c0_44 = arith.constant 0 : index
    %60 = vector.load %arg8[%c1_42, %c0_43, %c0_44] : memref<3x16x32xf32, #tpu.memory_space<vmem>>, vector<1x16x32xf32>
    %61 = vector.shape_cast %60 : vector<1x16x32xf32> to vector<16x32xf32>
    %cst_45 = arith.constant dense<0.000000e+00> : vector<16x128xf32>
    %62 = tpu.matmul %61, %59, %cst_45 {dimension_numbers = #tpu.dot_dimension_numbers<[1], [0], [0], [1], [0, 0, 1, 1], [], []>} : vector<16x32xf32>, vector<32x128xf32>, vector<16x128xf32> -> vector<16x128xf32>
    %63 = arith.addf %58, %62 : vector<16x128xf32>
    %64 = vector.extract_strided_slice %54 {offsets = [0, 256], sizes = [32, 128], strides = [1, 1]} : vector<32x384xf32> to vector<32x128xf32>
    %c2_46 = arith.constant 2 : index
    %c0_47 = arith.constant 0 : index
    %c0_48 = arith.constant 0 : index
    %65 = vector.load %arg8[%c2_46, %c0_47, %c0_48] : memref<3x16x32xf32, #tpu.memory_space<vmem>>, vector<1x16x32xf32>
    %66 = vector.shape_cast %65 : vector<1x16x32xf32> to vector<16x32xf32>
    %cst_49 = arith.constant dense<0.000000e+00> : vector<16x128xf32>
    %67 = tpu.matmul %66, %64, %cst_49 {dimension_numbers = #tpu.dot_dimension_numbers<[1], [0], [0], [1], [0, 0, 1, 1], [], []>} : vector<16x32xf32>, vector<32x128xf32>, vector<16x128xf32> -> vector<16x128xf32>
    %68 = arith.addf %63, %67 : vector<16x128xf32>
    %c0_50 = arith.constant 0 : index
    %c0_51 = arith.constant 0 : index
    %69 = vector.load %arg10[%c0_50, %c0_51] : memref<1x128xf32, #tpu.memory_space<vmem>>, vector<1x128xf32>
    %70 = vector.broadcast %69 : vector<1x128xf32> to vector<16x128xf32>
    %71 = arith.addf %68, %70 : vector<16x128xf32>
    %cst_52 = arith.constant 5.000000e-01 : f32
    %72 = vector.broadcast %cst_52 : f32 to vector<16x128xf32>
    %73 = arith.mulf %72, %71 : vector<16x128xf32>
    %cst_53 = arith.constant 0.707106769 : f32
    %74 = vector.broadcast %cst_53 : f32 to vector<16x128xf32>
    %75 = arith.mulf %71, %74 : vector<16x128xf32>
    %76 = math.erf %75 : vector<16x128xf32>
    %cst_54 = arith.constant 1.000000e+00 : f32
    %77 = vector.broadcast %cst_54 : f32 to vector<16x128xf32>
    %78 = arith.addf %77, %76 : vector<16x128xf32>
    %79 = arith.mulf %73, %78 : vector<16x128xf32>
    %c0_55 = arith.constant 0 : index
    %c0_56 = arith.constant 0 : index
    %80 = vector.load %arg12[%c0_55, %c0_56] : memref<128x384xf32, #tpu.memory_space<vmem>>, vector<128x384xf32>
    %cst_57 = arith.constant dense<0.000000e+00> : vector<16x384xf32>
    %81 = tpu.matmul %79, %80, %cst_57 {dimension_numbers = #tpu.dot_dimension_numbers<[1], [0], [0], [1], [0, 0, 1, 1], [], []>} : vector<16x128xf32>, vector<128x384xf32>, vector<16x384xf32> -> vector<16x384xf32>
    %82 = vector.extract_strided_slice %81 {offsets = [0, 0], sizes = [16, 128], strides = [1, 1]} : vector<16x384xf32> to vector<16x128xf32>
    %c0_58 = arith.constant 0 : index
    %c0_59 = arith.constant 0 : index
    %c0_60 = arith.constant 0 : index
    %83 = vector.load %arg11[%c0_58, %c0_59, %c0_60] : memref<3x16x16xf32, #tpu.memory_space<vmem>>, vector<1x16x16xf32>
    %84 = vector.shape_cast %83 : vector<1x16x16xf32> to vector<16x16xf32>
    %cst_61 = arith.constant dense<0.000000e+00> : vector<16x128xf32>
    %85 = tpu.matmul %84, %82, %cst_61 {dimension_numbers = #tpu.dot_dimension_numbers<[1], [0], [0], [1], [0, 0, 1, 1], [], []>} : vector<16x16xf32>, vector<16x128xf32>, vector<16x128xf32> -> vector<16x128xf32>
    %86 = vector.extract_strided_slice %81 {offsets = [0, 128], sizes = [16, 128], strides = [1, 1]} : vector<16x384xf32> to vector<16x128xf32>
    %87 = arith.addf %85, %86 : vector<16x128xf32>
    %88 = vector.extract_strided_slice %81 {offsets = [0, 256], sizes = [16, 128], strides = [1, 1]} : vector<16x384xf32> to vector<16x128xf32>
    %c2_62 = arith.constant 2 : index
    %c0_63 = arith.constant 0 : index
    %c0_64 = arith.constant 0 : index
    %89 = vector.load %arg11[%c2_62, %c0_63, %c0_64] : memref<3x16x16xf32, #tpu.memory_space<vmem>>, vector<1x16x16xf32>
    %90 = vector.shape_cast %89 : vector<1x16x16xf32> to vector<16x16xf32>
    %cst_65 = arith.constant dense<0.000000e+00> : vector<16x128xf32>
    %91 = tpu.matmul %90, %88, %cst_65 {dimension_numbers = #tpu.dot_dimension_numbers<[1], [0], [0], [1], [0, 0, 1, 1], [], []>} : vector<16x16xf32>, vector<16x128xf32>, vector<16x128xf32> -> vector<16x128xf32>
    %92 = arith.addf %87, %91 : vector<16x128xf32>
    %c0_66 = arith.constant 0 : index
    %c0_67 = arith.constant 0 : index
    %93 = vector.load %arg13[%c0_66, %c0_67] : memref<1x128xf32, #tpu.memory_space<vmem>>, vector<1x128xf32>
    %94 = vector.broadcast %93 : vector<1x128xf32> to vector<16x128xf32>
    %95 = arith.addf %92, %94 : vector<16x128xf32>
    %cst_68 = arith.constant 5.000000e-01 : f32
    %96 = vector.broadcast %cst_68 : f32 to vector<16x128xf32>
    %97 = arith.mulf %96, %95 : vector<16x128xf32>
    %cst_69 = arith.constant 0.707106769 : f32
    %98 = vector.broadcast %cst_69 : f32 to vector<16x128xf32>
    %99 = arith.mulf %95, %98 : vector<16x128xf32>
    %100 = math.erf %99 : vector<16x128xf32>
    %cst_70 = arith.constant 1.000000e+00 : f32
    %101 = vector.broadcast %cst_70 : f32 to vector<16x128xf32>
    %102 = arith.addf %101, %100 : vector<16x128xf32>
    %103 = arith.mulf %97, %102 : vector<16x128xf32>
    %c0_71 = arith.constant 0 : index
    %c0_72 = arith.constant 0 : index
    %104 = vector.load %arg15[%c0_71, %c0_72] : memref<128x384xf32, #tpu.memory_space<vmem>>, vector<128x384xf32>
    %cst_73 = arith.constant dense<0.000000e+00> : vector<16x384xf32>
    %105 = tpu.matmul %103, %104, %cst_73 {dimension_numbers = #tpu.dot_dimension_numbers<[1], [0], [0], [1], [0, 0, 1, 1], [], []>} : vector<16x128xf32>, vector<128x384xf32>, vector<16x384xf32> -> vector<16x384xf32>
    %106 = vector.extract_strided_slice %105 {offsets = [0, 0], sizes = [16, 128], strides = [1, 1]} : vector<16x384xf32> to vector<16x128xf32>
    %c0_74 = arith.constant 0 : index
    %c0_75 = arith.constant 0 : index
    %c0_76 = arith.constant 0 : index
    %107 = vector.load %arg14[%c0_74, %c0_75, %c0_76] : memref<3x8x16xf32, #tpu.memory_space<vmem>>, vector<1x8x16xf32>
    %108 = vector.shape_cast %107 : vector<1x8x16xf32> to vector<8x16xf32>
    %cst_77 = arith.constant dense<0.000000e+00> : vector<8x128xf32>
    %109 = tpu.matmul %108, %106, %cst_77 {dimension_numbers = #tpu.dot_dimension_numbers<[1], [0], [0], [1], [0, 0, 1, 1], [], []>} : vector<8x16xf32>, vector<16x128xf32>, vector<8x128xf32> -> vector<8x128xf32>
    %110 = vector.extract_strided_slice %105 {offsets = [0, 128], sizes = [16, 128], strides = [1, 1]} : vector<16x384xf32> to vector<16x128xf32>
    %c1_78 = arith.constant 1 : index
    %c0_79 = arith.constant 0 : index
    %c0_80 = arith.constant 0 : index
    %111 = vector.load %arg14[%c1_78, %c0_79, %c0_80] : memref<3x8x16xf32, #tpu.memory_space<vmem>>, vector<1x8x16xf32>
    %112 = vector.shape_cast %111 : vector<1x8x16xf32> to vector<8x16xf32>
    %cst_81 = arith.constant dense<0.000000e+00> : vector<8x128xf32>
    %113 = tpu.matmul %112, %110, %cst_81 {dimension_numbers = #tpu.dot_dimension_numbers<[1], [0], [0], [1], [0, 0, 1, 1], [], []>} : vector<8x16xf32>, vector<16x128xf32>, vector<8x128xf32> -> vector<8x128xf32>
    %114 = arith.addf %109, %113 : vector<8x128xf32>
    %115 = vector.extract_strided_slice %105 {offsets = [0, 256], sizes = [16, 128], strides = [1, 1]} : vector<16x384xf32> to vector<16x128xf32>
    %c2_82 = arith.constant 2 : index
    %c0_83 = arith.constant 0 : index
    %c0_84 = arith.constant 0 : index
    %116 = vector.load %arg14[%c2_82, %c0_83, %c0_84] : memref<3x8x16xf32, #tpu.memory_space<vmem>>, vector<1x8x16xf32>
    %117 = vector.shape_cast %116 : vector<1x8x16xf32> to vector<8x16xf32>
    %cst_85 = arith.constant dense<0.000000e+00> : vector<8x128xf32>
    %118 = tpu.matmul %117, %115, %cst_85 {dimension_numbers = #tpu.dot_dimension_numbers<[1], [0], [0], [1], [0, 0, 1, 1], [], []>} : vector<8x16xf32>, vector<16x128xf32>, vector<8x128xf32> -> vector<8x128xf32>
    %119 = arith.addf %114, %118 : vector<8x128xf32>
    %c0_86 = arith.constant 0 : index
    %c0_87 = arith.constant 0 : index
    %120 = vector.load %arg16[%c0_86, %c0_87] : memref<1x128xf32, #tpu.memory_space<vmem>>, vector<1x128xf32>
    %121 = vector.broadcast %120 : vector<1x128xf32> to vector<8x128xf32>
    %122 = arith.addf %119, %121 : vector<8x128xf32>
    %cst_88 = arith.constant 5.000000e-01 : f32
    %123 = vector.broadcast %cst_88 : f32 to vector<8x128xf32>
    %124 = arith.mulf %123, %122 : vector<8x128xf32>
    %cst_89 = arith.constant 0.707106769 : f32
    %125 = vector.broadcast %cst_89 : f32 to vector<8x128xf32>
    %126 = arith.mulf %122, %125 : vector<8x128xf32>
    %127 = math.erf %126 : vector<8x128xf32>
    %cst_90 = arith.constant 1.000000e+00 : f32
    %128 = vector.broadcast %cst_90 : f32 to vector<8x128xf32>
    %129 = arith.addf %128, %127 : vector<8x128xf32>
    %130 = arith.mulf %124, %129 : vector<8x128xf32>
    %c0_91 = arith.constant 0 : index
    %c0_92 = arith.constant 0 : index
    %131 = vector.load %arg18[%c0_91, %c0_92] : memref<128x384xf32, #tpu.memory_space<vmem>>, vector<128x384xf32>
    %cst_93 = arith.constant dense<0.000000e+00> : vector<8x384xf32>
    %132 = tpu.matmul %130, %131, %cst_93 {dimension_numbers = #tpu.dot_dimension_numbers<[1], [0], [0], [1], [0, 0, 1, 1], [], []>} : vector<8x128xf32>, vector<128x384xf32>, vector<8x384xf32> -> vector<8x384xf32>
    %133 = vector.extract_strided_slice %132 {offsets = [0, 0], sizes = [8, 128], strides = [1, 1]} : vector<8x384xf32> to vector<8x128xf32>
    %c0_94 = arith.constant 0 : index
    %c0_95 = arith.constant 0 : index
    %c0_96 = arith.constant 0 : index
    %134 = vector.load %arg17[%c0_94, %c0_95, %c0_96] : memref<3x8x8xf32, #tpu.memory_space<vmem>>, vector<1x8x8xf32>
    %135 = vector.shape_cast %134 : vector<1x8x8xf32> to vector<8x8xf32>
    %cst_97 = arith.constant dense<0.000000e+00> : vector<8x128xf32>
    %136 = tpu.matmul %135, %133, %cst_97 {dimension_numbers = #tpu.dot_dimension_numbers<[1], [0], [0], [1], [0, 0, 1, 1], [], []>} : vector<8x8xf32>, vector<8x128xf32>, vector<8x128xf32> -> vector<8x128xf32>
    %137 = vector.extract_strided_slice %132 {offsets = [0, 128], sizes = [8, 128], strides = [1, 1]} : vector<8x384xf32> to vector<8x128xf32>
    %138 = arith.addf %136, %137 : vector<8x128xf32>
    %139 = vector.extract_strided_slice %132 {offsets = [0, 256], sizes = [8, 128], strides = [1, 1]} : vector<8x384xf32> to vector<8x128xf32>
    %c2_98 = arith.constant 2 : index
    %c0_99 = arith.constant 0 : index
    %c0_100 = arith.constant 0 : index
    %140 = vector.load %arg17[%c2_98, %c0_99, %c0_100] : memref<3x8x8xf32, #tpu.memory_space<vmem>>, vector<1x8x8xf32>
    %141 = vector.shape_cast %140 : vector<1x8x8xf32> to vector<8x8xf32>
    %cst_101 = arith.constant dense<0.000000e+00> : vector<8x128xf32>
    %142 = tpu.matmul %141, %139, %cst_101 {dimension_numbers = #tpu.dot_dimension_numbers<[1], [0], [0], [1], [0, 0, 1, 1], [], []>} : vector<8x8xf32>, vector<8x128xf32>, vector<8x128xf32> -> vector<8x128xf32>
    %143 = arith.addf %138, %142 : vector<8x128xf32>
    %c0_102 = arith.constant 0 : index
    %c0_103 = arith.constant 0 : index
    %144 = vector.load %arg19[%c0_102, %c0_103] : memref<1x128xf32, #tpu.memory_space<vmem>>, vector<1x128xf32>
    %145 = vector.broadcast %144 : vector<1x128xf32> to vector<8x128xf32>
    %146 = arith.addf %143, %145 : vector<8x128xf32>
    %cst_104 = arith.constant 5.000000e-01 : f32
    %147 = vector.broadcast %cst_104 : f32 to vector<8x128xf32>
    %148 = arith.mulf %147, %146 : vector<8x128xf32>
    %cst_105 = arith.constant 0.707106769 : f32
    %149 = vector.broadcast %cst_105 : f32 to vector<8x128xf32>
    %150 = arith.mulf %146, %149 : vector<8x128xf32>
    %151 = math.erf %150 : vector<8x128xf32>
    %cst_106 = arith.constant 1.000000e+00 : f32
    %152 = vector.broadcast %cst_106 : f32 to vector<8x128xf32>
    %153 = arith.addf %152, %151 : vector<8x128xf32>
    %154 = arith.mulf %148, %153 : vector<8x128xf32>
    %c0_107 = arith.constant 0 : index
    %c0_108 = arith.constant 0 : index
    %155 = vector.load %arg21[%c0_107, %c0_108] : memref<128x384xf32, #tpu.memory_space<vmem>>, vector<128x384xf32>
    %cst_109 = arith.constant dense<0.000000e+00> : vector<8x384xf32>
    %156 = tpu.matmul %154, %155, %cst_109 {dimension_numbers = #tpu.dot_dimension_numbers<[1], [0], [0], [1], [0, 0, 1, 1], [], []>} : vector<8x128xf32>, vector<128x384xf32>, vector<8x384xf32> -> vector<8x384xf32>
    %157 = vector.extract_strided_slice %156 {offsets = [0, 0], sizes = [8, 128], strides = [1, 1]} : vector<8x384xf32> to vector<8x128xf32>
    %c0_110 = arith.constant 0 : index
    %c0_111 = arith.constant 0 : index
    %c0_112 = arith.constant 0 : index
    %158 = vector.load %arg20[%c0_110, %c0_111, %c0_112] : memref<3x4x8xf32, #tpu.memory_space<vmem>>, vector<1x4x8xf32>
    %159 = vector.shape_cast %158 : vector<1x4x8xf32> to vector<4x8xf32>
    %cst_113 = arith.constant dense<0.000000e+00> : vector<4x128xf32>
    %160 = tpu.matmul %159, %157, %cst_113 {dimension_numbers = #tpu.dot_dimension_numbers<[1], [0], [0], [1], [0, 0, 1, 1], [], []>} : vector<4x8xf32>, vector<8x128xf32>, vector<4x128xf32> -> vector<4x128xf32>
    %161 = vector.extract_strided_slice %156 {offsets = [0, 128], sizes = [8, 128], strides = [1, 1]} : vector<8x384xf32> to vector<8x128xf32>
    %c1_114 = arith.constant 1 : index
    %c0_115 = arith.constant 0 : index
    %c0_116 = arith.constant 0 : index
    %162 = vector.load %arg20[%c1_114, %c0_115, %c0_116] : memref<3x4x8xf32, #tpu.memory_space<vmem>>, vector<1x4x8xf32>
    %163 = vector.shape_cast %162 : vector<1x4x8xf32> to vector<4x8xf32>
    %cst_117 = arith.constant dense<0.000000e+00> : vector<4x128xf32>
    %164 = tpu.matmul %163, %161, %cst_117 {dimension_numbers = #tpu.dot_dimension_numbers<[1], [0], [0], [1], [0, 0, 1, 1], [], []>} : vector<4x8xf32>, vector<8x128xf32>, vector<4x128xf32> -> vector<4x128xf32>
    %165 = arith.addf %160, %164 : vector<4x128xf32>
    %166 = vector.extract_strided_slice %156 {offsets = [0, 256], sizes = [8, 128], strides = [1, 1]} : vector<8x384xf32> to vector<8x128xf32>
    %c2_118 = arith.constant 2 : index
    %c0_119 = arith.constant 0 : index
    %c0_120 = arith.constant 0 : index
    %167 = vector.load %arg20[%c2_118, %c0_119, %c0_120] : memref<3x4x8xf32, #tpu.memory_space<vmem>>, vector<1x4x8xf32>
    %168 = vector.shape_cast %167 : vector<1x4x8xf32> to vector<4x8xf32>
    %cst_121 = arith.constant dense<0.000000e+00> : vector<4x128xf32>
    %169 = tpu.matmul %168, %166, %cst_121 {dimension_numbers = #tpu.dot_dimension_numbers<[1], [0], [0], [1], [0, 0, 1, 1], [], []>} : vector<4x8xf32>, vector<8x128xf32>, vector<4x128xf32> -> vector<4x128xf32>
    %170 = arith.addf %165, %169 : vector<4x128xf32>
    %c0_122 = arith.constant 0 : index
    %c0_123 = arith.constant 0 : index
    %171 = vector.load %arg22[%c0_122, %c0_123] : memref<1x128xf32, #tpu.memory_space<vmem>>, vector<1x128xf32>
    %172 = vector.broadcast %171 : vector<1x128xf32> to vector<4x128xf32>
    %173 = arith.addf %170, %172 : vector<4x128xf32>
    %cst_124 = arith.constant 5.000000e-01 : f32
    %174 = vector.broadcast %cst_124 : f32 to vector<4x128xf32>
    %175 = arith.mulf %174, %173 : vector<4x128xf32>
    %cst_125 = arith.constant 0.707106769 : f32
    %176 = vector.broadcast %cst_125 : f32 to vector<4x128xf32>
    %177 = arith.mulf %173, %176 : vector<4x128xf32>
    %178 = math.erf %177 : vector<4x128xf32>
    %cst_126 = arith.constant 1.000000e+00 : f32
    %179 = vector.broadcast %cst_126 : f32 to vector<4x128xf32>
    %180 = arith.addf %179, %178 : vector<4x128xf32>
    %181 = arith.mulf %175, %180 : vector<4x128xf32>
    %c0_127 = arith.constant 0 : index
    %c0_128 = arith.constant 0 : index
    %182 = vector.load %arg24[%c0_127, %c0_128] : memref<128x384xf32, #tpu.memory_space<vmem>>, vector<128x384xf32>
    %cst_129 = arith.constant dense<0.000000e+00> : vector<4x384xf32>
    %183 = tpu.matmul %181, %182, %cst_129 {dimension_numbers = #tpu.dot_dimension_numbers<[1], [0], [0], [1], [0, 0, 1, 1], [], []>} : vector<4x128xf32>, vector<128x384xf32>, vector<4x384xf32> -> vector<4x384xf32>
    %184 = vector.extract_strided_slice %183 {offsets = [0, 0], sizes = [4, 128], strides = [1, 1]} : vector<4x384xf32> to vector<4x128xf32>
    %c0_130 = arith.constant 0 : index
    %c0_131 = arith.constant 0 : index
    %c0_132 = arith.constant 0 : index
    %185 = vector.load %arg23[%c0_130, %c0_131, %c0_132] : memref<3x4x4xf32, #tpu.memory_space<vmem>>, vector<1x4x4xf32>
    %186 = vector.shape_cast %185 : vector<1x4x4xf32> to vector<4x4xf32>
    %cst_133 = arith.constant dense<0.000000e+00> : vector<4x128xf32>
    %187 = tpu.matmul %186, %184, %cst_133 {dimension_numbers = #tpu.dot_dimension_numbers<[1], [0], [0], [1], [0, 0, 1, 1], [], []>} : vector<4x4xf32>, vector<4x128xf32>, vector<4x128xf32> -> vector<4x128xf32>
    %188 = vector.extract_strided_slice %183 {offsets = [0, 128], sizes = [4, 128], strides = [1, 1]} : vector<4x384xf32> to vector<4x128xf32>
    %189 = arith.addf %187, %188 : vector<4x128xf32>
    %190 = vector.extract_strided_slice %183 {offsets = [0, 256], sizes = [4, 128], strides = [1, 1]} : vector<4x384xf32> to vector<4x128xf32>
    %c2_134 = arith.constant 2 : index
    %c0_135 = arith.constant 0 : index
    %c0_136 = arith.constant 0 : index
    %191 = vector.load %arg23[%c2_134, %c0_135, %c0_136] : memref<3x4x4xf32, #tpu.memory_space<vmem>>, vector<1x4x4xf32>
    %192 = vector.shape_cast %191 : vector<1x4x4xf32> to vector<4x4xf32>
    %cst_137 = arith.constant dense<0.000000e+00> : vector<4x128xf32>
    %193 = tpu.matmul %192, %190, %cst_137 {dimension_numbers = #tpu.dot_dimension_numbers<[1], [0], [0], [1], [0, 0, 1, 1], [], []>} : vector<4x4xf32>, vector<4x128xf32>, vector<4x128xf32> -> vector<4x128xf32>
    %194 = arith.addf %189, %193 : vector<4x128xf32>
    %c0_138 = arith.constant 0 : index
    %c0_139 = arith.constant 0 : index
    %195 = vector.load %arg25[%c0_138, %c0_139] : memref<1x128xf32, #tpu.memory_space<vmem>>, vector<1x128xf32>
    %196 = vector.broadcast %195 : vector<1x128xf32> to vector<4x128xf32>
    %197 = arith.addf %194, %196 : vector<4x128xf32>
    %cst_140 = arith.constant 5.000000e-01 : f32
    %198 = vector.broadcast %cst_140 : f32 to vector<4x128xf32>
    %199 = arith.mulf %198, %197 : vector<4x128xf32>
    %cst_141 = arith.constant 0.707106769 : f32
    %200 = vector.broadcast %cst_141 : f32 to vector<4x128xf32>
    %201 = arith.mulf %197, %200 : vector<4x128xf32>
    %202 = math.erf %201 : vector<4x128xf32>
    %cst_142 = arith.constant 1.000000e+00 : f32
    %203 = vector.broadcast %cst_142 : f32 to vector<4x128xf32>
    %204 = arith.addf %203, %202 : vector<4x128xf32>
    %205 = arith.mulf %199, %204 : vector<4x128xf32>
    %206 = vector.extract_strided_slice %205 {offsets = [0, 0], sizes = [1, 128], strides = [1, 1]} : vector<4x128xf32> to vector<1x128xf32>
    %c0_143 = arith.constant 0 : index
    %c0_144 = arith.constant 0 : index
    %207 = vector.load %arg31[%c0_143, %c0_144] : memref<1x512xf32, #tpu.memory_space<vmem>>, vector<1x128xf32>
    tpu.vector_store %arg31[%c0_143, %c0_144], %206 {strides = array<i32>} : memref<1x512xf32, #tpu.memory_space<vmem>>, vector<1x128xf32>,
    %208 = vector.extract_strided_slice %205 {offsets = [1, 0], sizes = [1, 128], strides = [1, 1]} : vector<4x128xf32> to vector<1x128xf32>
    %c0_145 = arith.constant 0 : index
    %c128 = arith.constant 128 : index
    %209 = vector.load %arg31[%c0_145, %c128] : memref<1x512xf32, #tpu.memory_space<vmem>>, vector<1x128xf32>
    tpu.vector_store %arg31[%c0_145, %c128], %208 {strides = array<i32>} : memref<1x512xf32, #tpu.memory_space<vmem>>, vector<1x128xf32>,
    %210 = vector.extract_strided_slice %205 {offsets = [2, 0], sizes = [1, 128], strides = [1, 1]} : vector<4x128xf32> to vector<1x128xf32>
    %c0_146 = arith.constant 0 : index
    %c256 = arith.constant 256 : index
    %211 = vector.load %arg31[%c0_146, %c256] : memref<1x512xf32, #tpu.memory_space<vmem>>, vector<1x128xf32>
    tpu.vector_store %arg31[%c0_146, %c256], %210 {strides = array<i32>} : memref<1x512xf32, #tpu.memory_space<vmem>>, vector<1x128xf32>,
    %212 = vector.extract_strided_slice %205 {offsets = [3, 0], sizes = [1, 128], strides = [1, 1]} : vector<4x128xf32> to vector<1x128xf32>
    %c0_147 = arith.constant 0 : index
    %c384 = arith.constant 384 : index
    %213 = vector.load %arg31[%c0_147, %c384] : memref<1x512xf32, #tpu.memory_space<vmem>>, vector<1x128xf32>
    tpu.vector_store %arg31[%c0_147, %c384], %212 {strides = array<i32>} : memref<1x512xf32, #tpu.memory_space<vmem>>, vector<1x128xf32>,
    %c0_148 = arith.constant 0 : index
    %c0_149 = arith.constant 0 : index
    %214 = vector.load %arg31[%c0_148, %c0_149] : memref<1x512xf32, #tpu.memory_space<vmem>>, vector<1x512xf32>
    %c0_150 = arith.constant 0 : index
    %c0_151 = arith.constant 0 : index
    %215 = vector.load %arg26[%c0_150, %c0_151] : memref<512x16xf32, #tpu.memory_space<vmem>>, vector<512x16xf32>
    %cst_152 = arith.constant dense<0.000000e+00> : vector<1x16xf32>
    %216 = tpu.matmul %214, %215, %cst_152 {dimension_numbers = #tpu.dot_dimension_numbers<[1], [0], [0], [1], [0, 0, 1, 1], [], []>} : vector<1x512xf32>, vector<512x16xf32>, vector<1x16xf32> -> vector<1x16xf32>
    %c0_153 = arith.constant 0 : index
    %c0_154 = arith.constant 0 : index
    %217 = vector.load %arg27[%c0_153, %c0_154] : memref<1x16xf32, #tpu.memory_space<vmem>>, vector<1x16xf32>
    %218 = arith.addf %216, %217 : vector<1x16xf32>
    %cst_155 = arith.constant 5.000000e-01 : f32
    %219 = vector.broadcast %cst_155 : f32 to vector<1x16xf32>
    %220 = arith.mulf %219, %218 : vector<1x16xf32>
    %cst_156 = arith.constant 0.707106769 : f32
    %221 = vector.broadcast %cst_156 : f32 to vector<1x16xf32>
    %222 = arith.mulf %218, %221 : vector<1x16xf32>
    %223 = math.erf %222 : vector<1x16xf32>
    %cst_157 = arith.constant 1.000000e+00 : f32
    %224 = vector.broadcast %cst_157 : f32 to vector<1x16xf32>
    %225 = arith.addf %224, %223 : vector<1x16xf32>
    %226 = arith.mulf %220, %225 : vector<1x16xf32>
    %c0_158 = arith.constant 0 : index
    %c0_159 = arith.constant 0 : index
    %227 = vector.load %arg28[%c0_158, %c0_159] : memref<16x8xf32, #tpu.memory_space<vmem>>, vector<16x8xf32>
    %cst_160 = arith.constant dense<0.000000e+00> : vector<1x8xf32>
    %228 = tpu.matmul %226, %227, %cst_160 {dimension_numbers = #tpu.dot_dimension_numbers<[1], [0], [0], [1], [0, 0, 1, 1], [], []>} : vector<1x16xf32>, vector<16x8xf32>, vector<1x8xf32> -> vector<1x8xf32>
    %c0_161 = arith.constant 0 : index
    %c0_162 = arith.constant 0 : index
    %229 = vector.load %arg29[%c0_161, %c0_162] : memref<1x8xf32, #tpu.memory_space<vmem>>, vector<1x8xf32>
    %230 = arith.addf %228, %229 : vector<1x8xf32>
    %231 = vector.shape_cast %230 : vector<1x8xf32> to vector<1x1x8xf32>
    %c0_163 = arith.constant 0 : index
    %c0_164 = arith.constant 0 : index
    %c0_165 = arith.constant 0 : index
    %232 = vector.load %arg30[%c0_163, %c0_164, %c0_165] : memref<1x1x8xf32, #tpu.memory_space<vmem>>, vector<1x1x8xf32>
    tpu.vector_store %arg30[%c0_163, %c0_164, %c0_165], %231 {strides = array<i32>} : memref<1x1x8xf32, #tpu.memory_space<vmem>>, vector<1x1x8xf32>,
    return
  }
  func.func @transform_0(%arg0: i32) -> (i32, i32, i32) {
    %c0_i32 = arith.constant 0 : i32
    %c0_i32_0 = arith.constant 0 : i32
    %c0_i32_1 = arith.constant 0 : i32
    return %arg0, %c0_i32, %c0_i32_0 : i32, i32, i32
  }
  func.func @transform_1(%arg0: i32) -> (i32, i32, i32) {
    %c0_i32 = arith.constant 0 : i32
    %c0_i32_0 = arith.constant 0 : i32
    %c0_i32_1 = arith.constant 0 : i32
    %c0_i32_2 = arith.constant 0 : i32
    return %c0_i32, %c0_i32_0, %c0_i32_1 : i32, i32, i32
  }
  func.func @transform_2(%arg0: i32) -> (i32, i32) {
    %c0_i32 = arith.constant 0 : i32
    %c0_i32_0 = arith.constant 0 : i32
    %c0_i32_1 = arith.constant 0 : i32
    return %c0_i32, %c0_i32_0 : i32, i32
  }
  func.func @transform_3(%arg0: i32) -> (i32, i32) {
    %c0_i32 = arith.constant 0 : i32
    %c0_i32_0 = arith.constant 0 : i32
    %c0_i32_1 = arith.constant 0 : i32
    return %c0_i32, %c0_i32_0 : i32, i32
  }
  func.func @transform_4(%arg0: i32) -> (i32, i32, i32) {
    %c0_i32 = arith.constant 0 : i32
    %c0_i32_0 = arith.constant 0 : i32
    %c0_i32_1 = arith.constant 0 : i32
    %c0_i32_2 = arith.constant 0 : i32
    return %c0_i32, %c0_i32_0, %c0_i32_1 : i32, i32, i32
  }
  func.func @transform_5(%arg0: i32) -> (i32, i32) {
    %c0_i32 = arith.constant 0 : i32
    %c0_i32_0 = arith.constant 0 : i32
    %c0_i32_1 = arith.constant 0 : i32
    return %c0_i32, %c0_i32_0 : i32, i32
  }
  func.func @transform_6(%arg0: i32) -> (i32, i32) {
    %c0_i32 = arith.constant 0 : i32
    %c0_i32_0 = arith.constant 0 : i32
    %c0_i32_1 = arith.constant 0 : i32
    return %c0_i32, %c0_i32_0 : i32, i32
  }
  func.func @transform_7(%arg0: i32) -> (i32, i32, i32) {
    %c0_i32 = arith.constant 0 : i32
    %c0_i32_0 = arith.constant 0 : i32
    %c0_i32_1 = arith.constant 0 : i32
    %c0_i32_2 = arith.constant 0 : i32
    return %c0_i32, %c0_i32_0, %c0_i32_1 : i32, i32, i32
  }
  func.func @transform_8(%arg0: i32) -> (i32, i32) {
    %c0_i32 = arith.constant 0 : i32
    %c0_i32_0 = arith.constant 0 : i32
    %c0_i32_1 = arith.constant 0 : i32
    return %c0_i32, %c0_i32_0 : i32, i32
  }
  func.func @transform_9(%arg0: i32) -> (i32, i32) {
    %c0_i32 = arith.constant 0 : i32
    %c0_i32_0 = arith.constant 0 : i32
    %c0_i32_1 = arith.constant 0 : i32
    return %c0_i32, %c0_i32_0 : i32, i32
  }
  func.func @transform_10(%arg0: i32) -> (i32, i32, i32) {
    %c0_i32 = arith.constant 0 : i32
    %c0_i32_0 = arith.constant 0 : i32
    %c0_i32_1 = arith.constant 0 : i32
    %c0_i32_2 = arith.constant 0 : i32
    return %c0_i32, %c0_i32_0, %c0_i32_1 : i32, i32, i32
  }
  func.func @transform_11(%arg0: i32) -> (i32, i32) {
    %c0_i32 = arith.constant 0 : i32
    %c0_i32_0 = arith.constant 0 : i32
    %c0_i32_1 = arith.constant 0 : i32
    return %c0_i32, %c0_i32_0 : i32, i32
  }
  func.func @transform_12(%arg0: i32) -> (i32, i32) {
    %c0_i32 = arith.constant 0 : i32
    %c0_i32_0 = arith.constant 0 : i32
    %c0_i32_1 = arith.constant 0 : i32
    return %c0_i32, %c0_i32_0 : i32, i32
  }
  func.func @transform_13(%arg0: i32) -> (i32, i32, i32) {
    %c0_i32 = arith.constant 0 : i32
    %c0_i32_0 = arith.constant 0 : i32
    %c0_i32_1 = arith.constant 0 : i32
    %c0_i32_2 = arith.constant 0 : i32
    return %c0_i32, %c0_i32_0, %c0_i32_1 : i32, i32, i32
  }
  func.func @transform_14(%arg0: i32) -> (i32, i32) {
    %c0_i32 = arith.constant 0 : i32
    %c0_i32_0 = arith.constant 0 : i32
    %c0_i32_1 = arith.constant 0 : i32
    return %c0_i32, %c0_i32_0 : i32, i32
  }
  func.func @transform_15(%arg0: i32) -> (i32, i32) {
    %c0_i32 = arith.constant 0 : i32
    %c0_i32_0 = arith.constant 0 : i32
    %c0_i32_1 = arith.constant 0 : i32
    return %c0_i32, %c0_i32_0 : i32, i32
  }
  func.func @transform_16(%arg0: i32) -> (i32, i32, i32) {
    %c0_i32 = arith.constant 0 : i32
    %c0_i32_0 = arith.constant 0 : i32
    %c0_i32_1 = arith.constant 0 : i32
    %c0_i32_2 = arith.constant 0 : i32
    return %c0_i32, %c0_i32_0, %c0_i32_1 : i32, i32, i32
  }
  func.func @transform_17(%arg0: i32) -> (i32, i32) {
    %c0_i32 = arith.constant 0 : i32
    %c0_i32_0 = arith.constant 0 : i32
    %c0_i32_1 = arith.constant 0 : i32
    return %c0_i32, %c0_i32_0 : i32, i32
  }
  func.func @transform_18(%arg0: i32) -> (i32, i32) {
    %c0_i32 = arith.constant 0 : i32
    %c0_i32_0 = arith.constant 0 : i32
    %c0_i32_1 = arith.constant 0 : i32
    return %c0_i32, %c0_i32_0 : i32, i32
  }
  func.func @transform_19(%arg0: i32) -> (i32, i32, i32) {
    %c0_i32 = arith.constant 0 : i32
    %c0_i32_0 = arith.constant 0 : i32
    %c0_i32_1 = arith.constant 0 : i32
    %c0_i32_2 = arith.constant 0 : i32
    return %c0_i32, %c0_i32_0, %c0_i32_1 : i32, i32, i32
  }
  func.func @transform_20(%arg0: i32) -> (i32, i32) {
    %c0_i32 = arith.constant 0 : i32
    %c0_i32_0 = arith.constant 0 : i32
    %c0_i32_1 = arith.constant 0 : i32
    return %c0_i32, %c0_i32_0 : i32, i32
  }
  func.func @transform_21(%arg0: i32) -> (i32, i32) {
    %c0_i32 = arith.constant 0 : i32
    %c0_i32_0 = arith.constant 0 : i32
    %c0_i32_1 = arith.constant 0 : i32
    return %c0_i32, %c0_i32_0 : i32, i32
  }
  func.func @transform_22(%arg0: i32) -> (i32, i32, i32) {
    %c0_i32 = arith.constant 0 : i32
    %c0_i32_0 = arith.constant 0 : i32
    %c0_i32_1 = arith.constant 0 : i32
    %c0_i32_2 = arith.constant 0 : i32
    return %c0_i32, %c0_i32_0, %c0_i32_1 : i32, i32, i32
  }
  func.func @transform_23(%arg0: i32) -> (i32, i32) {
    %c0_i32 = arith.constant 0 : i32
    %c0_i32_0 = arith.constant 0 : i32
    %c0_i32_1 = arith.constant 0 : i32
    return %c0_i32, %c0_i32_0 : i32, i32
  }
  func.func @transform_24(%arg0: i32) -> (i32, i32) {
    %c0_i32 = arith.constant 0 : i32
    %c0_i32_0 = arith.constant 0 : i32
    %c0_i32_1 = arith.constant 0 : i32
    return %c0_i32, %c0_i32_0 : i32, i32
  }
  func.func @transform_25(%arg0: i32) -> (i32, i32) {
    %c0_i32 = arith.constant 0 : i32
    %c0_i32_0 = arith.constant 0 : i32
    %c0_i32_1 = arith.constant 0 : i32
    return %c0_i32, %c0_i32_0 : i32, i32
  }
  func.func @transform_26(%arg0: i32) -> (i32, i32) {
    %c0_i32 = arith.constant 0 : i32
    %c0_i32_0 = arith.constant 0 : i32
    %c0_i32_1 = arith.constant 0 : i32
    return %c0_i32, %c0_i32_0 : i32, i32
  }
  func.func @transform_27(%arg0: i32) -> (i32, i32) {
    %c0_i32 = arith.constant 0 : i32
    %c0_i32_0 = arith.constant 0 : i32
    %c0_i32_1 = arith.constant 0 : i32
    return %c0_i32, %c0_i32_0 : i32, i32
  }
  func.func @transform_28(%arg0: i32) -> (i32, i32) {
    %c0_i32 = arith.constant 0 : i32
    %c0_i32_0 = arith.constant 0 : i32
    %c0_i32_1 = arith.constant 0 : i32
    return %c0_i32, %c0_i32_0 : i32, i32
  }
  func.func @transform_29(%arg0: i32) -> (i32, i32, i32) {
    %c0_i32 = arith.constant 0 : i32
    %c0_i32_0 = arith.constant 0 : i32
    %c0_i32_1 = arith.constant 0 : i32
    return %arg0, %c0_i32, %c0_i32_0 : i32, i32, i32
  }
}

</mosaic_0001>

<bundles_post_ra>
// kernel: encoder_forward.1
= control target key start
LH: loop header
LB: loop body
LE: loop exit
PB: predicated region body
PF: predicated region fallthrough
CT: control target
= control target key end

     0   :  { %s5045_s6 = smov 1   ;;  %s5046_s10 = smov 2   ;;  %s6200_s0 = inlined_call_operand.smem [shape: u32[30], index: -1, kind: input, shape index: {}] }
   0x1   :  { %s5101_s5 = sld [smem:[%s6200_s0]]   ;;  %s5047_s14 = smov 3  }
   0x2   :  { %s5106_s9 = sld [smem:[%s6200_s0 + %s5045_s6]]   ;;  %s5048_s18 = smov 4  }
   0x3   :  { %s5111_s13 = sld [smem:[%s6200_s0 + %s5046_s10]]   ;;  %s5049_s22 = smov 5  }
   0x4   :  { %s5116_s17 = sld [smem:[%s6200_s0 + %s5047_s14]]   ;;  %s5050_s26 = smov 6  }
   0x5   :  { %s5121_s21 = sld [smem:[%s6200_s0 + %s5048_s18]]   ;;  %s5051_s30 = smov 7  }
   0x6   :  { %s5126_s25 = sld [smem:[%s6200_s0 + %s5049_s22]]   ;;  %s5052_s4 = smov 8  }
   0x7   :  { %6225 = sst [smem:[#allocation33_spill]] %s5101_s5  ;;  %s5053_s10 = smov 9  }
   0x8   :  { %6226 = sst [smem:[#allocation34_spill]] %s5106_s9  ;;  %s5054_s15 = smov 10  }
   0x9   :  { %s5131_s29 = sld [smem:[%s6200_s0 + %s5050_s26]]   ;;  %s5055_s20 = smov 11  }
   0xa   :  { %s5136_s3 = sld [smem:[%s6200_s0 + %s5051_s30]]   ;;  %s5056_s26 = smov 12  }
   0xb   :  { %6227 = sst [smem:[#allocation35_spill]] %s5121_s21  ;;  %s5057_s1 = smov 13  }
   0xc   :  { %6228 = sst [smem:[#allocation36_spill]] %s5126_s25  ;;  %s5058_s7 = smov 14  }
   0xd   :  { %s5141_s8 = sld [smem:[%s6200_s0 + %s5052_s4]]   ;;  %s5060_s22 = smov 16  }
   0xe   :  { %s5146_s14 = sld [smem:[%s6200_s0 + %s5053_s10]]   ;;  %s5061_s28 = smov 17  }
   0xf   :  { %s5151_s19 = sld [smem:[%s6200_s0 + %s5054_s15]]   ;;  %s5059_s15 = smov 15  }
  0x10   :  { %6229 = sst [smem:[#allocation37_spill]] %s5136_s3 }
  0x11   :  { %s5156_s24 = sld [smem:[%s6200_s0 + %s5055_s20]]  }
  0x12   :  { %s5161_s30 = sld [smem:[%s6200_s0 + %s5056_s26]]  }
  0x13   :  { %6230 = sst [smem:[#allocation38_spill]] %s5141_s8 }
  0x14   :  { %s5166_s6 = sld [smem:[%s6200_s0 + %s5057_s1]]  }
  0x15   :  { %6231 = sst [smem:[#allocation39_spill]] %s5151_s19 }
  0x16   :  { %s5171_s12 = sld [smem:[%s6200_s0 + %s5058_s7]]   ;;  %s5062_s7 = smov 18  }
  0x17   :  { %s5176_s20 = sld [smem:[%s6200_s0 + %s5059_s15]]   ;;  %s5063_s15 = smov 19  }
  0x18   :  { %6232 = sst [smem:[#allocation40_spill]] %s5161_s30 }
  0x19   :  { %s5181_s27 = sld [smem:[%s6200_s0 + %s5060_s22]]   ;;  %s5064_s22 = smov 20  }
  0x1a   :  { %s5186_s4 = sld [smem:[%s6200_s0 + %s5061_s28]]   ;;  %s5065_s28 = smov 21  }
  0x1b   :  { %s5191_s30 = sld [smem:[%s6200_s0 + %s5062_s7]]   ;;  %s5066_s7 = smov 22  }
  0x1c   :  { %s5206_s19 = sld [smem:[%s6200_s0 + %s5065_s28]]   ;;  %s5069_s28 = smov 25  }
  0x1d   :  { %6233 = sst [smem:[#allocation41_spill]] %s5176_s20 }
  0x1e   :  { %s5196_s20 = sld [smem:[%s6200_s0 + %s5063_s15]]   ;;  %s5067_s15 = smov 23  }
  0x1f   :  { %6234 = sst [smem:[#allocation42_spill]] %s5181_s27 }
  0x20   :  { %6235 = sst [smem:[#allocation43_spill]] %s5186_s4 }
  0x21   :  { %6236 = sst [smem:[#allocation44_spill]] %s5191_s30 }
  0x22   :  { %s5201_s27 = sld [smem:[%s6200_s0 + %s5064_s22]]   ;;  %s5068_s22 = smov 24  }
  0x23   :  { %6237 = sst [smem:[#allocation45_spill]] %s5206_s19 }
  0x24   :  { %s5211_s30 = sld [smem:[%s6200_s0 + %s5066_s7]]   ;;  %s5070_s7 = smov 26  }
  0x25   :  { %s5216_s3 = sld [smem:[%s6200_s0 + %s5067_s15]]   ;;  %s5071_s15 = smov 27  }
  0x26   :  { %s5221_s21 = sld [smem:[%s6200_s0 + %s5068_s22]]   ;;  %s5072_s22 = smov 28  }
  0x27   :  { %s5226_s19 = sld [smem:[%s6200_s0 + %s5069_s28]]   ;;  %s5073_s28 = smov 29  }
  0x28   :  { %s5231_s9 = sld [smem:[%s6200_s0 + %s5070_s7]]  }
  0x29   :  { %s5236_s5 = sld [smem:[%s6200_s0 + %s5071_s15]]  }
  0x2b   :  { %6238 = sst [smem:[#allocation46_spill]] %s5216_s3 }
  0x2c   :  { %6239 = sst [smem:[#allocation47_spill]] %s5221_s21 }
  0x2d   :  { %6240 = sst [smem:[#allocation48_spill]] %s5226_s19 }
  0x2e   :  { %s5241_s21 = sld [smem:[%s6200_s0 + %s5072_s22]]  }
  0x2f   :  { %s5246_s19 = sld [smem:[%s6200_s0 + %s5073_s28]]  }
  0x34   :  { %6241 = sst [smem:[#allocation49_spill]] %s5241_s21 }
  0x35   :  { %6242 = sst [smem:[#allocation50_spill]] %s5246_s19 }
  0x36   :  { %64 = vsyncpa [#allocation4], 0 }
  0x37   :  { %65 = vsyncpa [#allocation7], 0 }
  0x38   :  { %66 = vsyncpa [#allocation10], 0 }
  0x39   :  { %67 = vsyncpa [#allocation13], 0 }
  0x3a   :  { %68 = vsyncpa [#allocation16], 0 }
  0x3b   :  { %69 = vsyncpa [#allocation19], 0 }
  0x3c   :  { %70 = vsyncpa [#allocation22], 0 }
  0x3d   :  { %71 = vsyncpa [#allocation5], 0 }
  0x3e   :  { %73 = vsyncpa [#allocation5 + $0x1], 0  ;;  %s5248_s7 = smov 0   ;;  %s5250_s10 = smov 0  }
  0x3f   :  { %s5252_s11 = smov 0   ;;  %s5254_s15 = smov 0  }
  0x40 LB: > { %s6243_s4 = sld [smem:[#allocation43_spill]]  ;;  %s5269_s0 = sadd.s32 4294967295, %s5043_s15   ;;  %s5043_s15 = sphi %s5254_s15, %s6285_s15   ;;  %s5039_s11 = sphi %s5252_s11, %s6287_s11   ;;  %s5035_s10 = sphi %s5250_s10, %s6289_s10   ;;  %s5031_s7 = sphi %s5248_s7, %s6288_s7  }
  0x41   : > { %s6244_s3 = sld [smem:[#allocation46_spill]]  ;;  %s4178_s16 = sadd.s32 4294967294, %s5043_s15  }
  0x42   : > { %s6245_s8 = sld [smem:[#allocation38_spill]]  ;;  %s5273_s18 = sadd.s32 1, %s5043_s15  }
  0x43   : > { %s6246_s25 = sld [smem:[#allocation36_spill]]  ;;  %s700_s22 = sadd.s32 1, %s5039_s11 }
  0x44   : > { %6247 = sst [smem:[#allocation51_spill]] %s5031_s7  ;;  %s697_s23 = ssub.s32 %s5043_s15, %s5273_s18 }
  0x45   : > { %6248 = sst [smem:[#allocation52_spill]] %s5039_s11  ;;  %p710_p0 = scmp.ne.s32.totalorder %s5039_s11, %s5035_s10 }
  0x46   : > { %6249 = sst [smem:[#allocation53_spill]] %s5043_s15  ;;  %p698_p1 = scmp.eq.s32.totalorder %s697_s23, 0 }
  0x47   : > { %6250 = sst [smem:[#allocation54_spill]] %s5273_s18  ;;  %p711_p2 = scmp.eq.s32.totalorder %s5269_s0, 1 }
  0x48   : > { %p716_p3 = scmp.ne.s32.totalorder %s5035_s10, %s5031_s7  ;;  %p717_p4 = scmp.eq.s32.totalorder %s4178_s16, 1 }
  0x49   : > { %s5284_s26 = scalar_select %p698_p1, %s5039_s11, %s700_s22  }
  0x4a   : > { %p5286_p5 = por %p711_p2, %p710_p0  ;;  %p5290_p6 = por %p717_p4, %p716_p3 }
  0x4b   : > { %6251 = sst [smem:[#allocation55_spill]] %s5284_s26  ;;  %p4179_p7 = scmp.ge.s32.totalorder %s5043_s15, 1 }
  0x4c   : > { %s6252_s28 = scalar_select %p5286_p5, 1, 0 }
  0x4d   : > { %s6254_s1 = scalar_select %p5290_p6, 1, 0 }
  0x4e   : > { %6253 = sst [smem:[#allocation56_spill]] %s6252_s28  ;;  %p724_p8 = scmp.lt.s32.totalorder %s5043_s15, 3 }
  0x4f   : > { %6255 = sst [smem:[#allocation57_spill]] %s6254_s1  ;;  %p4414_p9 = scmp.eq.s32.totalorder %s5269_s0, 0 }
  0x50   : > { %p5297_p10 = pnand %p4179_p7, %p724_p8  ;;  %s756_s23 = sshll.u32 %s6246_s25, 4  ;;  %s757_s23 = int_to_ptr.hbm [resolvable:$true] %s756_s23 }
  0x51   : > { %s5074_s16 = smov [#allocation6]   ;;  %s785_s11 = sshll.u32 %s6245_s8, 4  ;;  %s5311_s11 = int_to_ptr.hbm [resolvable:$true] %s785_s11 }
  0x52   : > { %p4370_p11 = pneg %p5297_p10  ;;  %s758_s22 = sshll.u32 %s5074_s16, 4  ;;  %s759_s22 = int_to_ptr.vmem [resolvable:$true] %s758_s22 }
  0x53   : > { %s4563_s18 = sshra.s32 %s757_s23, 4  ;;  %s4570_s16 = scalar_lea.hbm %s6246_s25, 384  ;;  %s4564_s18 = int_to_ptr.hbm [resolvable:$true] %s4563_s18 }
  0x54   : > { %p5306_p12 = pnand %p4414_p9, %p4370_p11  ;;  %s4565_s1 = scalar_lea.hbm %s4564_s18, 384 }
  0x55   : > { %p4566_p13 = scmp.ne.s32.totalorder %s4564_s18, %s4565_s1  ;;  %p4571_p3 = scmp.lt.s32.totalorder %s4564_s18, %s6246_s25 }
  0x56   : > { %p5315_p0 = pneg %p5306_p12  ;;  %p4572_p4 = scmp.lt.s32.totalorder %s4570_s16, %s4565_s1 }
  0x58   : > { %p4568_p1 = pnand %p5315_p0, %p4566_p13  ;;  %p4573_p7 = por %p4572_p4, %p4571_p3 }
  0x5a   : > { %p4569_p2 = pneg %p4568_p1 }
  0x5c   : > { %p4574_p8 = pnand %p4573_p7, %p4569_p2 }
  0x5e   : > { %4577 = shalt.err (!%p4574_p8)
}
  0x5f   : > { %s6218_s15 = smov 384   ;;  %s6220_s28 = smov 24  }
  0x60   : > { %4376 = dma.hbm_to_vmem [thread:$0]  (!%p5306_p12), %s757_s23, 6144, %s759_s22, [#allocation7], %s6218_s15, %s6218_s15, %s6220_s28  }
  0x61   : > { %s5077_s21 = smov [#allocation9]   ;;  %s814_s18 = sshll.u32 %s5156_s24, 4  ;;  %s5329_s18 = int_to_ptr.hbm [resolvable:$true] %s814_s18 }
  0x62   : > { %s787_s19 = sshll.u32 %s5077_s21, 4  ;;  %s4593_s1 = sshra.s32 %s5311_s11, 4  ;;  %s788_s19 = int_to_ptr.vmem [resolvable:$true] %s787_s19  ;;  %s4594_s1 = int_to_ptr.hbm [resolvable:$true] %s4593_s1 }
  0x63   : > { %s4595_s16 = scalar_lea.hbm %s4594_s1, 384  ;;  %s4600_s25 = scalar_lea.hbm %s6245_s8, 384 }
  0x64   : > { %p4596_p11 = scmp.ne.s32.totalorder %s4594_s1, %s4595_s16  ;;  %p4601_p2 = scmp.lt.s32.totalorder %s4594_s1, %s6245_s8 }
  0x65   : > { %p4602_p3 = scmp.lt.s32.totalorder %s4600_s25, %s4595_s16 }
  0x66   : > { %p4598_p13 = pnand %p4596_p11, %p5315_p0 }
  0x67   : > { %p4603_p4 = por %p4602_p3, %p4601_p2 }
  0x68   : > { %p4599_p1 = pneg %p4598_p13 }
  0x6a   : > { %p4604_p7 = pnand %p4603_p4, %p4599_p1 }
  0x6c   : > { %4607 = shalt.err (!%p4604_p7)
}
  0x6d   : > { %4382 = dma.hbm_to_vmem [thread:$0]  (!%p5306_p12), %s5311_s11, 6144, %s788_s19, [#allocation10], %s6218_s15, %s6218_s15, %s6220_s28  }
  0x6e   : > { %s845_s21 = sshll.u32 %s5171_s12, 4  ;;  %s5078_s23 = smov [#allocation12]   ;;  %s5343_s21 = int_to_ptr.hbm [resolvable:$true] %s845_s21 }
  0x6f   : > { %s816_s22 = sshll.u32 %s5078_s23, 4  ;;  %s4623_s25 = sshra.s32 %s5329_s18, 4  ;;  %s817_s22 = int_to_ptr.vmem [resolvable:$true] %s816_s22  ;;  %s4624_s25 = int_to_ptr.hbm [resolvable:$true] %s4623_s25 }
  0x70   : > { %s4625_s1 = scalar_lea.hbm %s4624_s25, 384  ;;  %s4630_s16 = scalar_lea.hbm %s5156_s24, 384 }
  0x71   : > { %p4626_p8 = scmp.ne.s32.totalorder %s4624_s25, %s4625_s1  ;;  %p4631_p1 = scmp.lt.s32.totalorder %s4624_s25, %s5156_s24 }
  0x72   : > { %p4632_p2 = scmp.lt.s32.totalorder %s4630_s16, %s4625_s1 }
  0x73   : > { %p4628_p11 = pnand %p4626_p8, %p5315_p0 }
  0x74   : > { %p4633_p3 = por %p4632_p2, %p4631_p1 }
  0x75   : > { %p4629_p13 = pneg %p4628_p11 }
  0x77   : > { %p4634_p4 = pnand %p4633_p3, %p4629_p13 }
  0x79   : > { %4637 = shalt.err (!%p4634_p4)
}
  0x7a   : > { %4388 = dma.hbm_to_vmem [thread:$0]  (!%p5306_p12), %s5329_s18, 6144, %s817_s22, [#allocation13], %s6218_s15, %s6218_s15, %s6220_s28  }
  0x7b   : > { %s5079_s19 = smov [#allocation15]   ;;  %s882_s23 = sshll.u32 %s5196_s20, 4  ;;  %s5357_s23 = int_to_ptr.hbm [resolvable:$true] %s882_s23 }
  0x7c   : > { %s847_s11 = sshll.u32 %s5079_s19, 4  ;;  %s4653_s25 = sshra.s32 %s5343_s21, 4  ;;  %s848_s11 = int_to_ptr.vmem [resolvable:$true] %s847_s11  ;;  %s4654_s25 = int_to_ptr.hbm [resolvable:$true] %s4653_s25 }
  0x7d   : > { %s4655_s1 = scalar_lea.hbm %s4654_s25, 384  ;;  %s4660_s16 = scalar_lea.hbm %s5171_s12, 384 }
  0x7e   : > { %p4656_p7 = scmp.ne.s32.totalorder %s4654_s25, %s4655_s1  ;;  %p4661_p13 = scmp.lt.s32.totalorder %s4654_s25, %s5171_s12 }
  0x7f   : > { %p4662_p1 = scmp.lt.s32.totalorder %s4660_s16, %s4655_s1 }
  0x80   : > { %p4658_p8 = pnand %p4656_p7, %p5315_p0 }
  0x81   : > { %p4663_p2 = por %p4662_p1, %p4661_p13 }
  0x82   : > { %p4659_p11 = pneg %p4658_p8 }
  0x84   : > { %p4664_p3 = pnand %p4663_p2, %p4659_p11 }
  0x86   : > { %4667 = shalt.err (!%p4664_p3)
}
  0x87   : > { %4394 = dma.hbm_to_vmem [thread:$0]  (!%p5306_p12), %s5343_s21, 6144, %s848_s11, [#allocation16], %s6218_s15, %s6218_s15, %s6220_s28  }
  0x88   : > { %s5080_s18 = smov [#allocation18]   ;;  %s913_s19 = sshll.u32 %s5211_s30, 4  ;;  %s914_s19 = int_to_ptr.hbm [resolvable:$true] %s913_s19 }
  0x89   : > { %s884_s22 = sshll.u32 %s5080_s18, 4  ;;  %s4683_s25 = sshra.s32 %s5357_s23, 4  ;;  %s885_s22 = int_to_ptr.vmem [resolvable:$true] %s884_s22  ;;  %s4684_s25 = int_to_ptr.hbm [resolvable:$true] %s4683_s25 }
  0x8a   : > { %s4685_s1 = scalar_lea.hbm %s4684_s25, 12  ;;  %s4690_s16 = scalar_lea.hbm %s5196_s20, 12 }
  0x8b   : > { %p4686_p4 = scmp.ne.s32.totalorder %s4684_s25, %s4685_s1  ;;  %p4691_p11 = scmp.lt.s32.totalorder %s4684_s25, %s5196_s20 }
  0x8c   : > { %p4692_p13 = scmp.lt.s32.totalorder %s4690_s16, %s4685_s1 }
  0x8d   : > { %p4688_p7 = pnand %p4686_p4, %p5315_p0 }
  0x8e   : > { %p4693_p1 = por %p4692_p13, %p4691_p11 }
  0x8f   : > { %p4689_p8 = pneg %p4688_p7 }
  0x91   : > { %p4694_p2 = pnand %p4693_p1, %p4689_p8 }
  0x93   : > { %4697 = shalt.err (!%p4694_p2)
}
  0x94   : > { %s5081_s8 = smov 64   ;;  %s5082_s21 = smov 4  }
  0x95   : > { %4400 = dma.hbm_to_vmem [thread:$0]  (!%p5306_p12), %s5357_s23, 192, %s885_s22, [#allocation19], %s5081_s8, %s5081_s8, %s5082_s21  }
  0x96   : > { %s5083_s11 = smov [#allocation21]   ;;  %s742_s15 = sshll.u32 %s5116_s17, 4  ;;  %s5380_s15 = int_to_ptr.hbm [resolvable:$true] %s742_s15 }
  0x97   : > { %s915_s18 = sshll.u32 %s5083_s11, 4  ;;  %s4713_s25 = sshra.s32 %s914_s19, 4  ;;  %s916_s18 = int_to_ptr.vmem [resolvable:$true] %s915_s18  ;;  %s4714_s25 = int_to_ptr.hbm [resolvable:$true] %s4713_s25 }
  0x98   : > { %s4715_s1 = scalar_lea.hbm %s4714_s25, 12  ;;  %s4720_s16 = scalar_lea.hbm %s5211_s30, 12 }
  0x99   : > { %p4716_p3 = scmp.ne.s32.totalorder %s4714_s25, %s4715_s1  ;;  %p4721_p8 = scmp.lt.s32.totalorder %s4714_s25, %s5211_s30 }
  0x9a   : > { %p4722_p11 = scmp.lt.s32.totalorder %s4720_s16, %s4715_s1 }
  0x9b   : > { %p4718_p4 = pnand %p4716_p3, %p5315_p0 }
  0x9c   : > { %p4723_p13 = por %p4722_p11, %p4721_p8 }
  0x9d   : > { %p4719_p7 = pneg %p4718_p4 }
  0x9f   : > { %p4724_p1 = pnand %p4723_p13, %p4719_p7 }
  0xa1   : > { %4727 = shalt.err (!%p4724_p1)
}
  0xa2   : > { %4406 = dma.hbm_to_vmem [thread:$0]  (!%p5306_p12), %s914_s19, 192, %s916_s18, [#allocation22], %s5081_s8, %s5081_s8, %s5082_s21  }
  0xa3   : > { %s771_s23 = sshll.u32 %s5131_s29, 4  ;;  %s5084_s22 = smov [#allocation3]   ;;  %s5389_s23 = int_to_ptr.hbm [resolvable:$true] %s771_s23 }
  0xa4   : > { %s744_s11 = sshll.u32 %s5084_s22, 4  ;;  %s4743_s28 = sshra.s32 %s5380_s15, 4  ;;  %s745_s11 = int_to_ptr.vmem [resolvable:$true] %s744_s11  ;;  %s4744_s28 = int_to_ptr.hbm [resolvable:$true] %s4743_s28 }
  0xa5   : > { %s4745_s25 = scalar_lea.hbm %s4744_s28, 1  ;;  %s4750_s1 = scalar_lea.hbm %s5116_s17, 1 }
  0xa6   : > { %p4746_p2 = scmp.ne.s32.totalorder %s4744_s28, %s4745_s25  ;;  %p4751_p7 = scmp.lt.s32.totalorder %s4744_s28, %s5116_s17 }
  0xa7   : > { %p4752_p8 = scmp.lt.s32.totalorder %s4750_s1, %s4745_s25 }
  0xa8   : > { %p4748_p3 = pnand %p4746_p2, %p5315_p0 }
  0xa9   : > { %p4753_p11 = por %p4752_p8, %p4751_p7 }
  0xaa   : > { %p4749_p4 = pneg %p4748_p3 }
  0xac   : > { %p4754_p13 = pnand %p4753_p11, %p4749_p4 }
  0xae   : > { %4757 = shalt.err (!%p4754_p13)
}
  0xaf   : > { %4373 = dma.hbm_to_vmem [thread:$0]  (!%p5306_p12), %s5380_s15, 16, %s745_s11, [#allocation4]  }
  0xb0   : > { %s5085_s8 = smov [#allocation8]   ;;  %s800_s21 = sshll.u32 %s5146_s14, 4  ;;  %s5400_s21 = int_to_ptr.hbm [resolvable:$true] %s800_s21 }
  0xb1   : > { %s773_s19 = sshll.u32 %s5085_s8, 4  ;;  %s4773_s28 = sshra.s32 %s5389_s23, 4  ;;  %s774_s19 = int_to_ptr.vmem [resolvable:$true] %s773_s19  ;;  %s4774_s28 = int_to_ptr.hbm [resolvable:$true] %s4773_s28 }
  0xb2   : > { %s4775_s18 = scalar_lea.hbm %s4774_s28, 1  ;;  %s4780_s16 = scalar_lea.hbm %s5131_s29, 1 }
  0xb3   : > { %p4776_p1 = scmp.ne.s32.totalorder %s4774_s28, %s4775_s18  ;;  %p4781_p4 = scmp.lt.s32.totalorder %s4774_s28, %s5131_s29 }
  0xb4   : > { %p4782_p7 = scmp.lt.s32.totalorder %s4780_s16, %s4775_s18 }
  0xb5   : > { %p4778_p2 = pnand %p4776_p1, %p5315_p0 }
  0xb6   : > { %p4783_p8 = por %p4782_p7, %p4781_p4 }
  0xb7   : > { %p4779_p3 = pneg %p4778_p2 }
  0xb9   : > { %p4784_p11 = pnand %p4783_p8, %p4779_p3 }
  0xbb   : > { %4787 = shalt.err (!%p4784_p11)
}
  0xbc   : > { %4379 = dma.hbm_to_vmem [thread:$0]  (!%p5306_p12), %s5389_s23, 16, %s774_s19, [#allocation7]  }
  0xbd   : > { %s831_s15 = sshll.u32 %s5166_s6, 4  ;;  %s5086_s22 = smov [#allocation11]   ;;  %s5411_s15 = int_to_ptr.hbm [resolvable:$true] %s831_s15 }
  0xbe   : > { %s802_s11 = sshll.u32 %s5086_s22, 4  ;;  %s4803_s25 = sshra.s32 %s5400_s21, 4  ;;  %s803_s11 = int_to_ptr.vmem [resolvable:$true] %s802_s11  ;;  %s4804_s25 = int_to_ptr.hbm [resolvable:$true] %s4803_s25 }
  0xbf   : > { %s4805_s1 = scalar_lea.hbm %s4804_s25, 1  ;;  %s4810_s8 = scalar_lea.hbm %s5146_s14, 1 }
  0xc0   : > { %p4806_p13 = scmp.ne.s32.totalorder %s4804_s25, %s4805_s1  ;;  %p4811_p3 = scmp.lt.s32.totalorder %s4804_s25, %s5146_s14 }
  0xc1   : > { %p4812_p4 = scmp.lt.s32.totalorder %s4810_s8, %s4805_s1 }
  0xc2   : > { %p4808_p1 = pnand %p4806_p13, %p5315_p0 }
  0xc3   : > { %p4813_p7 = por %p4812_p4, %p4811_p3 }
  0xc4   : > { %p4809_p2 = pneg %p4808_p1 }
  0xc6   : > { %p4814_p8 = pnand %p4813_p7, %p4809_p2 }
  0xc8   : > { %4817 = shalt.err (!%p4814_p8)
}
  0xc9   : > { %4385 = dma.hbm_to_vmem [thread:$0]  (!%p5306_p12), %s5400_s21, 16, %s803_s11, [#allocation10]  }
  0xca   : > { %s5087_s23 = smov [#allocation14]   ;;  %s4833_s28 = sshra.s32 %s5411_s15, 4  ;;  %s4834_s28 = int_to_ptr.hbm [resolvable:$true] %s4833_s28 }
  0xcb   : > { %s833_s19 = sshll.u32 %s5087_s23, 4  ;;  %s4835_s18 = scalar_lea.hbm %s4834_s28, 24  ;;  %s834_s19 = int_to_ptr.vmem [resolvable:$true] %s833_s19 }
  0xcc   : > { %p4836_p11 = scmp.ne.s32.totalorder %s4834_s28, %s4835_s18  ;;  %s4840_s16 = scalar_lea.hbm %s5166_s6, 24 }
  0xcd   : > { %p4841_p2 = scmp.lt.s32.totalorder %s4834_s28, %s5166_s6  ;;  %p4842_p3 = scmp.lt.s32.totalorder %s4840_s16, %s4835_s18 }
  0xce   : > { %p4838_p13 = pnand %p4836_p11, %p5315_p0 }
  0xcf   : > { %p4843_p4 = por %p4842_p3, %p4841_p2 }
  0xd0   : > { %p4839_p1 = pneg %p4838_p13 }
  0xd2   : > { %p4844_p7 = pnand %p4843_p4, %p4839_p1 }
  0xd4   : > { %4847 = shalt.err (!%p4844_p7)
}
  0xd5   : > { %s5088_s22 = smov 128   ;;  %s5089_s21 = smov 8  }
  0xd6   : > { %4391 = dma.hbm_to_vmem [thread:$0]  (!%p5306_p12), %s5411_s15, 384, %s834_s19, [#allocation13], %s5088_s22, %s5088_s22, %s5089_s21  }
  0xd7   : > { %s865_s11 = sshll.u32 %s6243_s4, 4  ;;  %s5090_s25 = smov [#allocation17]   ;;  %s866_s11 = int_to_ptr.hbm [resolvable:$true] %s865_s11 }
  0xd8   : > { %s867_s1 = sshll.u32 %s5090_s25, 4  ;;  %s896_s8 = sshll.u32 %s5201_s27, 4  ;;  %s868_s1 = int_to_ptr.vmem [resolvable:$true] %s867_s1  ;;  %s897_s8 = int_to_ptr.hbm [resolvable:$true] %s896_s8 }
  0xd9   : > { %s4863_s23 = sshra.s32 %s866_s11, 4  ;;  %s4870_s18 = scalar_lea.hbm %s6243_s4, 384  ;;  %s4864_s23 = int_to_ptr.hbm [resolvable:$true] %s4863_s23 }
  0xda   : > { %s4865_s28 = scalar_lea.hbm %s4864_s23, 384  ;;  %p4871_p1 = scmp.lt.s32.totalorder %s4864_s23, %s6243_s4 }
  0xdb   : > { %p4866_p8 = scmp.ne.s32.totalorder %s4864_s23, %s4865_s28  ;;  %p4872_p2 = scmp.lt.s32.totalorder %s4870_s18, %s4865_s28 }
  0xdd   : > { %p4868_p11 = pnand %p4866_p8, %p5315_p0  ;;  %p4873_p3 = por %p4872_p2, %p4871_p1 }
  0xdf   : > { %p4869_p13 = pneg %p4868_p11 }
  0xe1   : > { %p4874_p4 = pnand %p4873_p3, %p4869_p13 }
  0xe3   : > { %4877 = shalt.err (!%p4874_p4)
}
  0xe4   : > { %s6259_s15 = smov 24   ;;  %s6260_s19 = smov 384  }
  0xe5   : > { %4397 = dma.hbm_to_vmem [thread:$0]  (!%p5306_p12), %s866_s11, 6144, %s868_s1, [#allocation16], %s6260_s19, %s6260_s19, %s6259_s15  }
  0xe6   : > { %s5091_s16 = smov [#allocation20]   ;;  %s927_s21 = sshll.u32 %s6244_s3, 4  ;;  %s928_s21 = int_to_ptr.hbm [resolvable:$true] %s927_s21 }
  0xe7   : > { %s898_s22 = sshll.u32 %s5091_s16, 4  ;;  %s4893_s25 = sshra.s32 %s897_s8, 4  ;;  %s899_s22 = int_to_ptr.vmem [resolvable:$true] %s898_s22  ;;  %s4894_s25 = int_to_ptr.hbm [resolvable:$true] %s4893_s25 }
  0xe8   : > { %s4895_s23 = scalar_lea.hbm %s4894_s25, 384  ;;  %s4900_s28 = scalar_lea.hbm %s5201_s27, 384 }
  0xe9   : > { %p4896_p7 = scmp.ne.s32.totalorder %s4894_s25, %s4895_s23  ;;  %p4901_p13 = scmp.lt.s32.totalorder %s4894_s25, %s5201_s27 }
  0xea   : > { %p4902_p1 = scmp.lt.s32.totalorder %s4900_s28, %s4895_s23 }
  0xeb   : > { %p4898_p8 = pnand %p4896_p7, %p5315_p0 }
  0xec   : > { %p4903_p2 = por %p4902_p1, %p4901_p13 }
  0xed   : > { %p4899_p11 = pneg %p4898_p8 }
  0xef   : > { %p4904_p3 = pnand %p4903_p2, %p4899_p11 }
  0xf1   : > { %4907 = shalt.err (!%p4904_p3)
}
  0xf2   : > { %4403 = dma.hbm_to_vmem [thread:$0]  (!%p5306_p12), %s897_s8, 6144, %s899_s22, [#allocation19], %s6260_s19, %s6260_s19, %s6259_s15  }
  0xf3   : > { %s5092_s11 = smov [#allocation23]   ;;  %s4923_s18 = sshra.s32 %s928_s21, 4  ;;  %s4924_s18 = int_to_ptr.hbm [resolvable:$true] %s4923_s18 }
  0xf4   : > { %s929_s1 = sshll.u32 %s5092_s11, 4  ;;  %s4925_s16 = scalar_lea.hbm %s4924_s18, 384  ;;  %s930_s1 = int_to_ptr.vmem [resolvable:$true] %s929_s1 }
  0xf5   : > { %p4926_p4 = scmp.ne.s32.totalorder %s4924_s18, %s4925_s16  ;;  %s4930_s25 = scalar_lea.hbm %s6244_s3, 384 }
  0xf6   : > { %p4931_p11 = scmp.lt.s32.totalorder %s4924_s18, %s6244_s3  ;;  %p4932_p13 = scmp.lt.s32.totalorder %s4930_s25, %s4925_s16 }
  0xf7   : > { %p4928_p7 = pnand %p4926_p4, %p5315_p0 }
  0xf8   : > { %p4933_p1 = por %p4932_p13, %p4931_p11 }
  0xf9   : > { %p4929_p8 = pneg %p4928_p7 }
  0xfb   : > { %p4934_p2 = pnand %p4933_p1, %p4929_p8 }
  0xfd   : > { %4937 = shalt.err (!%p4934_p2)
}
  0xfe   : > { %4409 = dma.hbm_to_vmem [thread:$0]  (!%p5306_p12), %s928_s21, 6144, %s930_s1, [#allocation22], %s6260_s19, %s6260_s19, %s6259_s15  }
  0xff   : > { %968 = sbr.rel (%p5297_p10) target bundleno = 3464 (0xd88), region = 136 }
 0x104   : > { %4998 = dma.done.wait (%p4414_p9), [#allocation4], 16  }
 0x105   : > { %5000 = vsyncadd (%p4414_p9), [#allocation4], 4294967280 }
 0x106   : > { %5002 = dma.done.wait (%p4414_p9), [#allocation7], 6160  }
 0x107   : > { %5004 = vsyncadd (%p4414_p9), [#allocation7], 4294961136 }
 0x108   : > { %5006 = dma.done.wait (%p4414_p9), [#allocation10], 6160  }
 0x109   : > { %5008 = vsyncadd (%p4414_p9), [#allocation10], 4294961136 }
 0x10a   : > { %5010 = dma.done.wait (%p4414_p9), [#allocation13], 6528  }
 0x10b   : > { %5012 = vsyncadd (%p4414_p9), [#allocation13], 4294960768 }
 0x10c   : > { %5014 = dma.done.wait (%p4414_p9), [#allocation16], 12288  }
 0x10d   : > { %5016 = vsyncadd (%p4414_p9), [#allocation16], 4294955008 }
 0x10e   : > { %5018 = dma.done.wait (%p4414_p9), [#allocation19], 6336  }
 0x10f   : > { %5020 = vsyncadd (%p4414_p9), [#allocation19], 4294960960 }
 0x110   : > { %5022 = dma.done.wait (%p4414_p9), [#allocation22], 6336  }
 0x111   : > { %5024 = vsyncadd (%p4414_p9), [#allocation22], 4294960960  ;;  %v1170_v0 = vld [vmem:[%s5111_s13 + $0x168] sm:$0xff]  ;;  %v1171_v1 = vld [vmem:[%s5111_s13 + $0x170] sm:$0xff]  ;;  %p1104_p10 = scmp.lt.s32.totalorder %s5269_s0, 1  ;;  %s6261_s26 = sld [smem:[#allocation33_spill]] }
 0x112   : > { %v1195_v2 = vld [vmem:[%s5111_s13 + $0x230] sm:$0xff]  ;;  %1222 = vmatpush.msra.mxu0 %v1170_v0  ;;  %1304 = vmatpush.msra.mxu2 %v1171_v1  ;;  %v1168_v4 = vld [vmem:[%s5111_s13 + $0x158] sm:$0xff]  ;;  %v1165_v7 = vld [vmem:[%s5111_s13 + $0x140] sm:$0xff]  ;;  %vm1197_vm0 = vcmask 523264   ;;  %s6262_s15 = sld [smem:[#allocation34_spill]] }
 0x113   : > { %v1167_v3 = vld [vmem:[%s5111_s13 + $0x150] sm:$0xff]  ;;  %v1192_v5 = vld [vmem:[%s5111_s13 + $0x218] sm:$0xff]  ;;  %1353 = vmatpush.msra.mxu3 %v1195_v2  ;;  %v1189_v8 = vld [vmem:[%s5111_s13 + $0x200] sm:$0xff]  ;;  %s5506_s7 = scalar_select %p1104_p10, %s5269_s0, 1 }
 0x114   : > { %v1164_v6 = vld [vmem:[%s5111_s13 + $0x138] sm:$0xff]  ;;  %1223 = vmatpush.msra.mxu0 %v1167_v3  ;;  %1305 = vmatpush.msra.mxu2 %v1168_v4  ;;  %v1194_v9 = vld [vmem:[%s5111_s13 + $0x228] sm:$0xff]  ;;  %v1161_v10 = vld [vmem:[%s5111_s13 + $0x120] sm:$0xff]  ;;  %s6264_s22 = sld [smem:[#allocation35_spill]] }
 0x115   : > { %1354 = vmatpush.msra.mxu3 %v1192_v5  ;;  %1271 = vmatpush.msra.mxu1 %v1194_v9  ;;  %v1162_v11 = vld [vmem:[%s5111_s13 + $0x128] sm:$0xff]  ;;  %v1191_v12 = vld [vmem:[%s5111_s13 + $0x210] sm:$0xff]  ;;  %v1188_v16 = vld [vmem:[%s5111_s13 + $0x1f8] sm:$0xff]  ;;  %s4315_s2 = sshll.u32 %s5506_s7, 7  ;;  %s6265_s21 = sld [smem:[#allocation37_spill]] }
 0x116   : > { %1224 = vmatpush.msra.mxu0 %v1164_v6  ;;  %1306 = vmatpush.msra.mxu2 %v1165_v7  ;;  %v1186_v13 = vld [vmem:[%s5111_s13 + $0x1e8] sm:$0xff]  ;;  %v1159_v15 = vld [vmem:[%s5111_s13 + $0x110] sm:$0xff]  ;;  %v1185_v18 = vld [vmem:[%s5111_s13 + $0x1e0] sm:$0xff]  ;;  %s6266_s23 = sld [smem:[#allocation39_spill]] }
 0x117   : > { %1355 = vmatpush.msra.mxu3 %v1189_v8  ;;  %v1158_v14 = vld [vmem:[%s5111_s13 + $0x108] sm:$0xff]  ;;  %1272 = vmatpush.msra.mxu1 %v1191_v12  ;;  %v1183_v17 = vld [vmem:[%s5111_s13 + $0x1d0] sm:$0xff]  ;;  %v1156_v20 = vld [vmem:[%s5111_s13 + $0xf8] sm:$0xff]  ;;  %s5523_s8 = scalar_lea.vmem %s6261_s26, %s4315_s2  ;;  %s6267_s28 = sld [smem:[#allocation40_spill]] }
 0x118   : > { %1225 = vmatpush.msra.mxu0 %v1161_v10  ;;  %1307 = vmatpush.msra.mxu2 %v1162_v11  ;;  %v1155_v19 = vld [vmem:[%s5111_s13 + $0xf0] sm:$0xff]  ;;  %v1180_v21 = vld [vmem:[%s5111_s13 + $0x1b8] sm:$0xff]  ;;  %v1182_v22 = vld [vmem:[%s5111_s13 + $0x1c8] sm:$0xff]  ;;  %s6263_s19 = smov %s6262_s15  ;;  %s6268_s11 = sld [smem:[#allocation41_spill]] }
 0x119   : > { %1356 = vmatpush.msra.mxu3 %v1186_v13  ;;  %1273 = vmatpush.msra.mxu1 %v1188_v16  ;;  %v1152_v23 = vld [vmem:[%s5111_s13 + $0xd8] sm:$0xff]  ;;  %v1153_v24 = vld [vmem:[%s5111_s13 + $0xe0] sm:$0xff]  ;;  %v1179_v26 = vld [vmem:[%s5111_s13 + $0x1b0] sm:$0xff]  ;;  %s6269_s1 = sld [smem:[#allocation42_spill]] }
 0x11a   : > { %1226 = vmatpush.msra.mxu0 %v1158_v14  ;;  %1308 = vmatpush.msra.mxu2 %v1159_v15  ;;  %v1177_v25 = vld [vmem:[%s5111_s13 + $0x1a0] sm:$0xff]  ;;  %v1150_v28 = vld [vmem:[%s5111_s13 + $0xc8] sm:$0xff]  ;;  %v1176_v30 = vld [vmem:[%s5111_s13 + $0x198] sm:$0xff]  ;;  %s6270_s18 = sld [smem:[#allocation44_spill]] }
 0x11b   : > { %1357 = vmatpush.msra.mxu3 %v1183_v17  ;;  %1274 = vmatpush.msra.mxu1 %v1185_v18  ;;  %v1149_v27 = vld [vmem:[%s5111_s13 + $0xc0] sm:$0xff]  ;;  %v1174_v29 = vld [vmem:[%s5111_s13 + $0x188] sm:$0xff]  ;;  %v1147_v33 = vld [vmem:[%s5111_s13 + $0xb0] sm:$0xff]  ;;  %s6271_s16 = sld [smem:[#allocation45_spill]] }
 0x11c   : > { %1227 = vmatpush.msra.mxu0 %v1155_v19  ;;  %1309 = vmatpush.msra.mxu2 %v1156_v20  ;;  %v5531_v31 = vld [vmem:[%s5523_s8 + $0x8] sm:$0xff]  ;;  %v1173_v34 = vld [vmem:[%s5111_s13 + $0x180] sm:$0xff]  ;;  %v1143_v35 = vld [vmem:[%s5111_s13 + $0x90] sm:$0xff]  ;;  %s6272_s25 = sld [smem:[#allocation47_spill]] }
 0x11d   : > { %1358 = vmatpush.msra.mxu3 %v1180_v21  ;;  %1275 = vmatpush.msra.mxu1 %v1182_v22  ;;  %v1146_v32 = vld [vmem:[%s5111_s13 + $0xa8] sm:$0xff]  ;;  %v1144_v36 = vld [vmem:[%s5111_s13 + $0x98] sm:$0xff]  ;;  %v1141_v38 = vld [vmem:[%s5111_s13 + $0x80] sm:$0xff]  ;;  %s6273_s7 = sld [smem:[#allocation48_spill]] }
 0x11e   : > { %1228 = vmatpush.msra.mxu0 %v1152_v23  ;;  %1310 = vmatpush.msra.mxu2 %v1153_v24  ;;  %v1140_v37 = vld [vmem:[%s5111_s13 + $0x78] sm:$0xff]  ;;  %v1137_v39 = vld [vmem:[%s5111_s13 + $0x60] sm:$0xff]  ;;  %v1138_v41 = vld [vmem:[%s5111_s13 + $0x68] sm:$0xff]  ;;  %s6279_s2 = sld [smem:[#allocation50_spill]] }
 0x11f   : > { %1359 = vmatpush.msra.mxu3 %v1177_v25  ;;  %1276 = vmatpush.msra.mxu1 %v1179_v26  ;;  %v1196_v40 = vld [vmem:[%s5111_s13 + $0x238] sm:$0xff]  ;;  %v1134_v44 = vld [vmem:[%s5111_s13 + $0x48] sm:$0xff]  ;;  %v1135_v45 = vld [vmem:[%s5111_s13 + $0x50] sm:$0xff] }
 0x120   : > { %1229 = vmatpush.msra.mxu0 %v1149_v27  ;;  %1311 = vmatpush.msra.mxu2 %v1150_v28  ;;  %v1172_v42 = vld [vmem:[%s5111_s13 + $0x178] sm:$0xff]  ;;  %v1131_v46 = vld [vmem:[%s5111_s13 + $0x30] sm:$0xff]  ;;  %v1169_v48 = vld [vmem:[%s5111_s13 + $0x160] sm:$0xff] }
 0x121   : > { %1360 = vmatpush.msra.mxu3 %v1174_v29  ;;  %1277 = vmatpush.msra.mxu1 %v1176_v30  ;;  %v5549_v43 = vld [vmem:[%s5523_s8 + $0x18] sm:$0xff]  ;;  %v1193_v49 = vld [vmem:[%s5111_s13 + $0x220] sm:$0xff]  ;;  %v1166_v51 = vld [vmem:[%s5111_s13 + $0x148] sm:$0xff] }
 0x122   : > { %4218 = vmatmul.msk.f32.vlgmr.msra.gmra.mxu3 %vm1197_vm0, %v5531_v31  ;;  %1230 = vmatpush.msra.mxu0 %v1146_v32  ;;  %v1132_v47 = vld [vmem:[%s5111_s13 + $0x38] sm:$0xff]  ;;  %v1129_v52 = vld [vmem:[%s5111_s13 + $0x20] sm:$0xff]  ;;  %v1163_v54 = vld [vmem:[%s5111_s13 + $0x130] sm:$0xff] }
 0x123   : > { %1312 = vmatpush.msra.mxu2 %v1147_v33  ;;  %1278 = vmatpush.msra.mxu1 %v1173_v34  ;;  %v1128_v50 = vld [vmem:[%s5111_s13 + $0x18] sm:$0xff]  ;;  %v1125_v53 = vld [vmem:[%s5111_s13] sm:$0xff]  ;;  %v1126_v55 = vld [vmem:[%s5111_s13 + $0x8] sm:$0xff]  ;;  %s6274_s26 = smov %s6273_s7 }
 0x124   : > { %1231 = vmatpush.msra.mxu0 %v1143_v35  ;;  %4210 = vmatmul.msk.f32.vlgmr.msra.gmra.mxu1 %vm1197_vm0, %v5531_v31  ;;  %v5568_v56 = vld [vmem:[%s5523_s8] sm:$0xff]  ;;  %v5571_v57 = vld [vmem:[%s5523_s8 + $0x28] sm:$0xff]  ;;  %v1160_v58 = vld [vmem:[%s5111_s13 + $0x118] sm:$0xff] }
 0x125   : > { %1313 = vmatpush.msra.mxu2 %v1144_v36  ;;  %1435 = vmatpush.msrb.mxu3 %v1196_v40  ;;  %v1157_v59 = vld [vmem:[%s5111_s13 + $0x100] sm:$0xff]  ;;  %v1190_v60 = vld [vmem:[%s5111_s13 + $0x208] sm:$0xff]  ;;  %v1187_v62 = vld [vmem:[%s5111_s13 + $0x1f0] sm:$0xff] }
 0x126   : > { %1232 = vmatpush.msra.mxu0 %v1140_v37  ;;  %1386 = vmatpush.msrb.mxu1 %v1172_v42  ;;  %v1154_v61 = vld [vmem:[%s5111_s13 + $0xe8] sm:$0xff]  ;;  %v5585_v63 = vld [vmem:[%s5523_s8 + $0x10] sm:$0xff]  ;;  %v5589_v1 = vld [vmem:[%s5523_s8 + $0x38] sm:$0xff] }
 0x127   : > { %1314 = vmatpush.msra.mxu2 %v1141_v38  ;;  %1436 = vmatpush.msrb.mxu3 %v1193_v49  ;;  %v1151_v0 = vld [vmem:[%s5111_s13 + $0xd0] sm:$0xff]  ;;  %v1148_v2 = vld [vmem:[%s5111_s13 + $0xb8] sm:$0xff]  ;;  %v1145_v3 = vld [vmem:[%s5111_s13 + $0xa0] sm:$0xff] }
 0x128   : > { %1233 = vmatpush.msra.mxu0 %v1137_v39  ;;  %1387 = vmatpush.msrb.mxu1 %v1169_v48  ;;  %v1184_v4 = vld [vmem:[%s5111_s13 + $0x1d8] sm:$0xff]  ;;  %v1181_v5 = vld [vmem:[%s5111_s13 + $0x1c0] sm:$0xff]  ;;  %v1142_v6 = vld [vmem:[%s5111_s13 + $0x88] sm:$0xff] }
 0x129   : > { %1315 = vmatpush.msra.mxu2 %v1138_v41  ;;  %1437 = vmatpush.msrb.mxu3 %v1190_v60  ;;  %v1178_v7 = vld [vmem:[%s5111_s13 + $0x1a8] sm:$0xff]  ;;  %v1113_v8 = vld [vmem:[%s5523_s8 + $0x20] sm:$0xff]  ;;  %v1139_v9 = vld [vmem:[%s5111_s13 + $0x70] sm:$0xff] }
 0x12a   : > { %4219 = vmatmul.msk.f32.gmra.mxu3 %vm1197_vm0, %v5549_v43  ;;  %1234 = vmatpush.msra.mxu0 %v1134_v44  ;;  %v1118_v10 = vld [vmem:[%s5523_s8 + $0x48] sm:$0xff]  ;;  %v1136_v11 = vld [vmem:[%s5111_s13 + $0x58] sm:$0xff]  ;;  %v1175_v12 = vld [vmem:[%s5111_s13 + $0x190] sm:$0xff] }
 0x12b   : > { %1316 = vmatpush.msra.mxu2 %v1135_v45  ;;  %1388 = vmatpush.msrb.mxu1 %v1166_v51  ;;  %v1133_v13 = vld [vmem:[%s5111_s13 + $0x40] sm:$0xff]  ;;  %v1130_v14 = vld [vmem:[%s5111_s13 + $0x28] sm:$0xff]  ;;  %v1115_v15 = vld [vmem:[%s5523_s8 + $0x30] sm:$0xff] }
 0x12c   : > { %1235 = vmatpush.msra.mxu0 %v1131_v46  ;;  %4211 = vmatmul.msk.f32.gmra.mxu1 %vm1197_vm0, %v5549_v43  ;;  %v1127_v16 = vld [vmem:[%s5111_s13 + $0x10] sm:$0xff]  ;;  %v1120_v17 = vld [vmem:[%s5523_s8 + $0x58] sm:$0xff]  ;;  %v1117_v18 = vld [vmem:[%s5523_s8 + $0x40] sm:$0xff] }
 0x12d   : > { %1317 = vmatpush.msra.mxu2 %v1132_v47  ;;  %1389 = vmatpush.msrb.mxu1 %v1163_v54  ;;  %v1122_v19 = vld [vmem:[%s5523_s8 + $0x68] sm:$0xff]  ;;  %v1119_v20 = vld [vmem:[%s5523_s8 + $0x50] sm:$0xff]  ;;  %v1124_v21 = vld [vmem:[%s5523_s8 + $0x78] sm:$0xff] }
 0x12e   : > { %1236 = vmatpush.msra.mxu0 %v1128_v50  ;;  %1438 = vmatpush.msrb.mxu3 %v1187_v62  ;;  %v1121_v22 = vld [vmem:[%s5523_s8 + $0x60] sm:$0xff]  ;;  %v1123_v23 = vld [vmem:[%s5523_s8 + $0x70] sm:$0xff]  ;;  %s6280_s8 = sld [smem:[#allocation49_spill]] }
 0x12f   : > { %1318 = vmatpush.msra.mxu2 %v1129_v52  ;;  %1390 = vmatpush.msrb.mxu1 %v1160_v58 }
 0x130   : > { %1237 = vmatpush.msra.mxu0 %v1125_v53  ;;  %1439 = vmatpush.msrb.mxu3 %v1184_v4 }
 0x131   : > { %1319 = vmatpush.msra.mxu2 %v1126_v55  ;;  %1238 = vmatmul.f32.vlgmr.msra.gmra.mxu0 %v5568_v56 }
 0x132   : > { %1320 = vmatmul.f32.vlgmr.msra.gmra.mxu2 %v5568_v56  ;;  %4220 = vmatmul.msk.f32.gmra.mxu3 %vm1197_vm0, %v5571_v57 }
 0x133   : > { %1391 = vmatpush.msrb.mxu1 %v1157_v59  ;;  %1440 = vmatpush.msrb.mxu3 %v1181_v5 }
 0x134   : > { %4212 = vmatmul.msk.f32.gmra.mxu1 %vm1197_vm0, %v5571_v57 }
 0x135   : > { %1392 = vmatpush.msrb.mxu1 %v1154_v61  ;;  %1441 = vmatpush.msrb.mxu3 %v1178_v7 }
 0x137   : > { %1393 = vmatpush.msrb.mxu1 %v1151_v0  ;;  %1442 = vmatpush.msrb.mxu3 %v1175_v12 }
 0x139   : > { %1241 = vmatmul.f32.gmra.mxu0 %v5585_v63  ;;  %1394 = vmatpush.msrb.mxu1 %v1148_v2 }
 0x13a   : > { %1323 = vmatmul.f32.gmra.mxu2 %v5585_v63  ;;  %4221 = vmatmul.msk.f32.gmra.mxu3 %vm1197_vm0, %v5589_v1 }
 0x13b   : > { %1395 = vmatpush.msrb.mxu1 %v1145_v3 }
 0x13c   : > { %4213 = vmatmul.msk.f32.gmra.mxu1 %vm1197_vm0, %v5589_v1 }
 0x13d   : > { %1396 = vmatpush.msrb.mxu1 %v1142_v6 }
 0x13f   : > { %1397 = vmatpush.msrb.mxu1 %v1139_v9 }
 0x141   : > { %1244 = vmatmul.f32.gmra.mxu0 %v1113_v8  ;;  %1398 = vmatpush.msrb.mxu1 %v1136_v11 }
 0x142   : > { %1326 = vmatmul.f32.gmra.mxu2 %v1113_v8  ;;  %4222 = vmatmul.msk.f32.gmra.mxu3 %vm1197_vm0, %v1118_v10 }
 0x143   : > { %1399 = vmatpush.msrb.mxu1 %v1133_v13 }
 0x144   : > { %4214 = vmatmul.msk.f32.gmra.mxu1 %vm1197_vm0, %v1118_v10 }
 0x145   : > { %1400 = vmatpush.msrb.mxu1 %v1130_v14 }
 0x147   : > { %1401 = vmatpush.msrb.mxu1 %v1127_v16  ;;  %v4234_v16 = vld [vmem:[%s6263_s19 + $0x20] sm:$0xff] }
 0x149   : > { %1247 = vmatmul.f32.gmra.mxu0 %v1115_v15 }
 0x14a   : > { %1329 = vmatmul.f32.gmra.mxu2 %v1115_v15  ;;  %4223 = vmatmul.msk.f32.gmra.mxu3 %vm1197_vm0, %v1120_v17 }
 0x14c   : > { %4215 = vmatmul.msk.f32.gmra.mxu1 %vm1197_vm0, %v1120_v17 }
 0x151   : > { %1250 = vmatmul.f32.gmra.mxu0 %v1117_v18 }
 0x152   : > { %1332 = vmatmul.f32.gmra.mxu2 %v1117_v18  ;;  %4224 = vmatmul.msk.f32.gmra.mxu3 %vm1197_vm0, %v1122_v19 }
 0x154   : > { %4216 = vmatmul.msk.f32.gmra.mxu1 %vm1197_vm0, %v1122_v19 }
 0x159   : > { %1253 = vmatmul.f32.gmra.mxu0 %v1119_v20 }
 0x15a   : > { %1335 = vmatmul.f32.gmra.mxu2 %v1119_v20  ;;  %4225 = vmatmul.msk.f32.gmra.mxu3 %vm1197_vm0, %v1124_v21 }
 0x15c   : > { %4217 = vmatmul.msk.f32.gmra.mxu1 %vm1197_vm0, %v1124_v21 }
 0x161   : > { %1256 = vmatmul.f32.gmra.mxu0 %v1121_v22 }
 0x162   : > { %1338 = vmatmul.f32.gmra.mxu2 %v1121_v22  ;;  %4226 = vmatmul.msk.f32.vlgmr.msrb.gmra.mxu3 %vm1197_vm0, %v5531_v31 }
 0x164   : > { %1402 = vmatmul.f32.vlgmr.msrb.gmra.mxu1 %v5568_v56 }
 0x169   : > { %1259 = vmatmul.f32.gmra.mxu0 %v1123_v23 }
 0x16a   : > { %1341 = vmatmul.f32.gmra.mxu2 %v1123_v23  ;;  %4227 = vmatmul.msk.f32.gmra.mxu3 %vm1197_vm0, %v5549_v43 }
 0x16c   : > { %1405 = vmatmul.f32.gmra.mxu1 %v5585_v63 }
 0x172   : > { %4228 = vmatmul.msk.f32.gmra.mxu3 %vm1197_vm0, %v5571_v57 }
 0x174   : > { %1408 = vmatmul.f32.gmra.mxu1 %v1113_v8 }
 0x17a   : > { %4229 = vmatmul.msk.f32.gmra.mxu3 %vm1197_vm0, %v5589_v1 }
 0x17c   : > { %1411 = vmatmul.f32.gmra.mxu1 %v1115_v15 }
 0x182   : > { %4230 = vmatmul.msk.f32.gmra.mxu3 %vm1197_vm0, %v1118_v10  ;;  %v1468_v10 = vld [vmem:[%s6262_s15] sm:$0xff]  ;;  %s1102_s15 = sand.u32 1, %s5035_s10  }
 0x184   : > { %1414 = vmatmul.f32.gmra.mxu1 %v1117_v18  ;;  %v1469_v18 = vld [vmem:[%s6263_s19 + $0x8] sm:$0xff] }
 0x18a   : > { %4231 = vmatmul.msk.f32.gmra.mxu3 %vm1197_vm0, %v1120_v17 }
 0x18c   : > { %1417 = vmatmul.f32.gmra.mxu1 %v1119_v20  ;;  %v4235_v20 = vld [vmem:[%s6263_s19 + $0x28] sm:$0xff] }
 0x192   : > { %4232 = vmatmul.msk.f32.gmra.mxu3 %vm1197_vm0, %v1122_v19 }
 0x194   : > { %1420 = vmatmul.f32.gmra.mxu1 %v1121_v22  ;;  %v1470_v22 = vld [vmem:[%s6263_s19 + $0x10] sm:$0xff] }
 0x19a   : > { %4233 = vmatmul.msk.f32.gmra.mxu3 %vm1197_vm0, %v1124_v21 }
 0x19c   : > { %1423 = vmatmul.f32.gmra.mxu1 %v1123_v23 }
 0x1a1   : > { %v1280_v24 = vpop.f32.mrf.mxu1 }
 0x1a5   : > { %v5641_v25 = vpop.f32.mrf.mxu3 }
 0x1a9   : > { %v1283_v26 = vpop.f32.mrf.mxu1 }
 0x1ad   : > { %v5643_v27 = vpop.f32.mrf.mxu3 }
 0x1ae   : > { %v1239_v28 = vpop.f32.mrf.mxu0 }
 0x1af   : > { %v1281_v9 = vadd.f32 %v1280_v24, %v1239_v28  ;;  %v4236_v24 = vld [vmem:[%s6263_s19 + $0x30] sm:$0xff]  ;;  %v4237_v28 = vld [vmem:[%s6263_s19 + $0x38] sm:$0xff] }
 0x1b1   : > { %v1286_v29 = vpop.f32.mrf.mxu1 }
 0x1b5   : > { %v5645_v30 = vpop.f32.mrf.mxu2  ;;  %v1368_v31 = vpop.f32.mrf.mxu3 }
 0x1b6   : > { %v1242_v32 = vpop.f32.mrf.mxu0  ;;  %v1363_v15 = vadd.f32 %v5641_v25, %v5645_v30 }
 0x1b7   : > { %v1284_v6 = vadd.f32 %v1283_v26, %v1242_v32  ;;  %v1471_v26 = vld [vmem:[%s6263_s19 + $0x18] sm:$0xff] }
 0x1b9   : > { %v1289_v33 = vpop.f32.mrf.mxu1 }
 0x1bd   : > { %v1324_v34 = vpop.f32.mrf.mxu2  ;;  %v1371_v35 = vpop.f32.mrf.mxu3 }
 0x1be   : > { %v1245_v36 = vpop.f32.mrf.mxu0  ;;  %v1366_v14 = vadd.f32 %v5643_v27, %v1324_v34 }
 0x1bf   : > { %v1287_v3 = vadd.f32 %v1286_v29, %v1245_v36 }
 0x1c1   : > { %v1292_v37 = vpop.f32.mrf.mxu1 }
 0x1c5   : > { %v1327_v38 = vpop.f32.mrf.mxu2  ;;  %v1374_v39 = vpop.f32.mrf.mxu3 }
 0x1c6   : > { %v1248_v40 = vpop.f32.mrf.mxu0  ;;  %v1369_v12 = vadd.f32 %v1368_v31, %v1327_v38 }
 0x1c7   : > { %v1290_v1 = vadd.f32 %v1289_v33, %v1248_v40  ;;  %v4246_v40 = vld [vmem:[%s6263_s19 + $0x40] sm:$0xff] }
 0x1c9   : > { %v1295_v41 = vpop.f32.mrf.mxu1 }
 0x1cd   : > { %v1330_v42 = vpop.f32.mrf.mxu2  ;;  %v1377_v43 = vpop.f32.mrf.mxu3 }
 0x1ce   : > { %v1251_v44 = vpop.f32.mrf.mxu0  ;;  %v1372_v11 = vadd.f32 %v1371_v35, %v1330_v42  ;;  %v4248_v42 = vld [vmem:[%s6263_s19 + $0x50] sm:$0xff] }
 0x1cf   : > { %v1293_v63 = vadd.f32 %v1292_v37, %v1251_v44 }
 0x1d1   : > { %v1298_v45 = vpop.f32.mrf.mxu1 }
 0x1d5   : > { %v1333_v46 = vpop.f32.mrf.mxu2  ;;  %v1380_v47 = vpop.f32.mrf.mxu3 }
 0x1d6   : > { %v1254_v48 = vpop.f32.mrf.mxu0  ;;  %v1375_v7 = vadd.f32 %v1374_v39, %v1333_v46 }
 0x1d7   : > { %v1296_v60 = vadd.f32 %v1295_v41, %v1254_v48  ;;  %v4247_v41 = vld [vmem:[%s6263_s19 + $0x48] sm:$0xff] }
 0x1d9   : > { %v1301_v49 = vpop.f32.mrf.mxu1 }
 0x1dd   : > { %v1336_v50 = vpop.f32.mrf.mxu2  ;;  %v1383_v51 = vpop.f32.mrf.mxu3 }
 0x1de   : > { %v1257_v52 = vpop.f32.mrf.mxu0  ;;  %v1378_v5 = vadd.f32 %v1377_v43, %v1336_v50  ;;  %v4249_v43 = vld [vmem:[%s6263_s19 + $0x58] sm:$0xff] }
 0x1df   : > { %v1299_v58 = vadd.f32 %v1298_v45, %v1257_v52  ;;  %v1839_v50 = vld [vmem:[#allocation6 + $0x170] sm:$0xff] }
 0x1e0   : > { %1870 = vmatpush.msra.mxu1 %v1839_v50  ;;  %v1835_v52 = vld [vmem:[#allocation6 + $0x150] sm:$0xff]  ;;  %v1802_v50 = vld [vmem:[#allocation6 + $0x48] sm:$0xff] }
 0x1e1   : > { %v5647_v53 = vpop.f32.mrf.mxu1 }
 0x1e5   : > { %v1339_v54 = vpop.f32.mrf.mxu2  ;;  %v5649_v55 = vpop.f32.mrf.mxu3 }
 0x1e6   : > { %v1260_v56 = vpop.f32.mrf.mxu0  ;;  %v1381_v2 = vadd.f32 %v1380_v47, %v1339_v54  ;;  %v1445_v39 = vadd.f32 %v5649_v55, %v5647_v53  ;;  %v1836_v53 = vld [vmem:[#allocation6 + $0x158] sm:$0xff]  ;;  %v1837_v54 = vld [vmem:[#allocation6 + $0x160] sm:$0xff] }
 0x1e7   : > { %v1302_v57 = vadd.f32 %v1301_v49, %v1260_v56  ;;  %v1838_v49 = vld [vmem:[#allocation6 + $0x168] sm:$0xff]  ;;  %1871 = vmatpush.msra.mxu1 %v1836_v53  ;;  %v1832_v55 = vld [vmem:[#allocation6 + $0x138] sm:$0xff]  ;;  %v1833_v56 = vld [vmem:[#allocation6 + $0x140] sm:$0xff] }
 0x1e9   : > { %1538 = vmatpush.msrb.mxu2 %v1302_v57  ;;  %v5651_v59 = vpop.f32.mrf.mxu1  ;;  %v1834_v57 = vld [vmem:[#allocation6 + $0x148] sm:$0xff]  ;;  %1872 = vmatpush.msra.mxu1 %v1833_v56 }
 0x1eb   : > { %1539 = vmatpush.msrb.mxu2 %v1299_v58 }
 0x1ed   : > { %v1342_v61 = vpop.f32.mrf.mxu2  ;;  %v5653_v62 = vpop.f32.mrf.mxu3  ;;  %1540 = vmatpush.msrb.mxu2 %v1296_v60 }
 0x1ee   : > { %v1384_v0 = vadd.f32 %v1383_v51, %v1342_v61  ;;  %v1448_v38 = vadd.f32 %v5653_v62, %v5651_v59  ;;  %v1840_v51 = vld [vmem:[#allocation6 + $0x178] sm:$0xff]  ;;  %v1829_v62 = vld [vmem:[#allocation6 + $0x120] sm:$0xff] }
 0x1ef   : > { %1541 = vmatpush.msrb.mxu2 %v1293_v63  ;;  %1899 = vmatpush.msra.mxu3 %v1840_v51  ;;  %v5690_v59 = vld [vmem:[#allocation3] ss:$0 sm:$0xff]  ;;  %v1830_v63 = vld [vmem:[#allocation6 + $0x128] sm:$0xff]  ;;  %v1803_v51 = vld [vmem:[#allocation6 + $0x50] sm:$0xff] }
 0x1f0   : > { %1497 = vmatpush.msrb.mxu0 %v1384_v0  ;;  %v1831_v0 = vld [vmem:[#allocation6 + $0x130] sm:$0xff]  ;;  %1873 = vmatpush.msra.mxu1 %v1830_v63 }
 0x1f1   : > { %1542 = vmatpush.msrb.mxu2 %v1290_v1  ;;  %v1409_v4 = vpop.f32.mrf.mxu1  ;;  %1900 = vmatpush.msra.mxu3 %v1837_v54 }
 0x1f2   : > { %1498 = vmatpush.msrb.mxu0 %v1381_v2  ;;  %v1826_v2 = vld [vmem:[#allocation6 + $0x108] sm:$0xff] }
 0x1f3   : > { %1543 = vmatpush.msrb.mxu2 %v1287_v3  ;;  %1901 = vmatpush.msra.mxu3 %v1834_v57  ;;  %v1827_v3 = vld [vmem:[#allocation6 + $0x110] sm:$0xff] }
 0x1f4   : > { %1499 = vmatpush.msrb.mxu0 %v1378_v5  ;;  %1874 = vmatpush.msra.mxu1 %v1827_v3 }
 0x1f5   : > { %v1450_v8 = vpop.f32.mrf.mxu3  ;;  %1544 = vmatpush.msrb.mxu2 %v1284_v6  ;;  %1902 = vmatpush.msra.mxu3 %v1831_v0  ;;  %v1823_v6 = vld [vmem:[#allocation6 + $0xf0] sm:$0xff] }
 0x1f6   : > { %1500 = vmatpush.msrb.mxu0 %v1375_v7  ;;  %v1451_v37 = vadd.f32 %v1450_v8, %v1409_v4  ;;  %v1828_v4 = vld [vmem:[#allocation6 + $0x118] sm:$0xff]  ;;  %v1825_v8 = vld [vmem:[#allocation6 + $0x100] sm:$0xff] }
 0x1f7   : > { %1545 = vmatpush.msrb.mxu2 %v1281_v9  ;;  %1903 = vmatpush.msra.mxu3 %v1828_v4  ;;  %v1824_v7 = vld [vmem:[#allocation6 + $0xf8] sm:$0xff] }
 0x1f8   : > { %1501 = vmatpush.msrb.mxu0 %v1372_v11  ;;  %4242 = vmatmul.msk.f32.vlgmr.msrb.gmra.mxu2 %vm1197_vm0, %v1468_v10  ;;  %v1820_v10 = vld [vmem:[#allocation6 + $0xd8] sm:$0xff]  ;;  %v1821_v11 = vld [vmem:[#allocation6 + $0xe0] sm:$0xff] }
 0x1f9   : > { %v1412_v13 = vpop.f32.mrf.mxu1  ;;  %1841 = vmatpush.msra.mxu2 %v1838_v49  ;;  %1875 = vmatpush.msra.mxu1 %v1824_v7 }
 0x1fa   : > { %1502 = vmatpush.msrb.mxu0 %v1369_v12  ;;  %1904 = vmatpush.msra.mxu3 %v1825_v8  ;;  %v1822_v12 = vld [vmem:[#allocation6 + $0xe8] sm:$0xff] }
 0x1fb   : > { %1842 = vmatpush.msra.mxu2 %v1835_v52  ;;  %1876 = vmatpush.msra.mxu1 %v1821_v11  ;;  %v1804_v52 = vld [vmem:[#allocation6 + $0x58] sm:$0xff] }
 0x1fc   : > { %1503 = vmatpush.msrb.mxu0 %v1366_v14  ;;  %1905 = vmatpush.msra.mxu3 %v1822_v12  ;;  %v1793_v12 = vld [vmem:[#allocation6] sm:$0xff] }
 0x1fd   : > { %v1453_v17 = vpop.f32.mrf.mxu3  ;;  %1843 = vmatpush.msra.mxu2 %v1832_v55 }
 0x1fe   : > { %1504 = vmatpush.msrb.mxu0 %v1363_v15  ;;  %v1454_v36 = vadd.f32 %v1453_v17, %v1412_v13  ;;  %v1818_v17 = vld [vmem:[#allocation6 + $0xc8] sm:$0xff] }
 0x1ff   : > { %4238 = vmatmul.msk.f32.vlgmr.msrb.gmra.mxu0 %vm1197_vm0, %v4234_v16  ;;  %1844 = vmatpush.msra.mxu2 %v1829_v62  ;;  %v1817_v16 = vld [vmem:[#allocation6 + $0xc0] sm:$0xff] }
 0x200   : > { %4243 = vmatmul.msk.f32.gmra.mxu2 %vm1197_vm0, %v1469_v18  ;;  %v1819_v18 = vld [vmem:[#allocation6 + $0xd0] sm:$0xff]  ;;  %1877 = vmatpush.msra.mxu1 %v1818_v17 }
 0x201   : > { %v1415_v19 = vpop.f32.mrf.mxu1  ;;  %1845 = vmatpush.msra.mxu2 %v1826_v2  ;;  %1906 = vmatpush.msra.mxu3 %v1819_v18  ;;  %v1797_v2 = vld [vmem:[#allocation6 + $0x20] sm:$0xff] }
 0x203   : > { %1846 = vmatpush.msra.mxu2 %v1823_v6  ;;  %v1798_v6 = vld [vmem:[#allocation6 + $0x28] sm:$0xff] }
 0x205   : > { %v1456_v21 = vpop.f32.mrf.mxu3  ;;  %1847 = vmatpush.msra.mxu2 %v1820_v10 }
 0x206   : > { %v1457_v35 = vadd.f32 %v1456_v21, %v1415_v19 }
 0x207   : > { %4239 = vmatmul.msk.f32.gmra.mxu0 %vm1197_vm0, %v4235_v20  ;;  %1848 = vmatpush.msra.mxu2 %v1817_v16 }
 0x208   : > { %4244 = vmatmul.msk.f32.gmra.mxu2 %vm1197_vm0, %v1470_v22  ;;  %v1814_v22 = vld [vmem:[#allocation6 + $0xa8] sm:$0xff] }
 0x209   : > { %v1418_v23 = vpop.f32.mrf.mxu1  ;;  %1849 = vmatpush.msra.mxu2 %v1814_v22 }
 0x20d   : > { %v1459_v25 = vpop.f32.mrf.mxu3 }
 0x20e   : > { %v1460_v34 = vadd.f32 %v1459_v25, %v1418_v23  ;;  %v1815_v23 = vld [vmem:[#allocation6 + $0xb0] sm:$0xff] }
 0x20f   : > { %4240 = vmatmul.msk.f32.gmra.mxu0 %vm1197_vm0, %v4236_v24  ;;  %v1816_v24 = vld [vmem:[#allocation6 + $0xb8] sm:$0xff]  ;;  %1878 = vmatpush.msra.mxu1 %v1815_v23 }
 0x210   : > { %4245 = vmatmul.msk.f32.gmra.mxu2 %vm1197_vm0, %v1471_v26  ;;  %1907 = vmatpush.msra.mxu3 %v1816_v24 }
 0x211   : > { %v1421_v27 = vpop.f32.mrf.mxu1 }
 0x215   : > { %v1462_v29 = vpop.f32.mrf.mxu3 }
 0x216   : > { %v1463_v33 = vadd.f32 %v1462_v29, %v1421_v27  ;;  %v1812_v29 = vld [vmem:[#allocation6 + $0x98] sm:$0xff] }
 0x217   : > { %4241 = vmatmul.msk.f32.gmra.mxu0 %vm1197_vm0, %v4237_v28  ;;  %v1811_v28 = vld [vmem:[#allocation6 + $0x90] sm:$0xff]  ;;  %1879 = vmatpush.msra.mxu1 %v1812_v29 }
 0x218   : > { %1850 = vmatpush.msra.mxu2 %v1811_v28 }
 0x219   : > { %v1424_v30 = vpop.f32.mrf.mxu1 }
 0x21d   : > { %v1465_v31 = vpop.f32.mrf.mxu3 }
 0x21e   : > { %v1466_v32 = vadd.f32 %v1465_v31, %v1424_v30  ;;  %v1813_v30 = vld [vmem:[#allocation6 + $0xa0] sm:$0xff] }
 0x21f   : > { %1908 = vmatpush.msra.mxu3 %v1813_v30 }
 0x220   : > { %1584 = vmatpush.msra.mxu0 %v1466_v32 }
 0x222   : > { %1585 = vmatpush.msra.mxu0 %v1463_v33 }
 0x224   : > { %1586 = vmatpush.msra.mxu0 %v1460_v34  ;;  %v1808_v34 = vld [vmem:[#allocation6 + $0x78] sm:$0xff] }
 0x225   : > { %1851 = vmatpush.msra.mxu2 %v1808_v34 }
 0x226   : > { %1587 = vmatpush.msra.mxu0 %v1457_v35  ;;  %v1809_v35 = vld [vmem:[#allocation6 + $0x80] sm:$0xff] }
 0x227   : > { %1880 = vmatpush.msra.mxu1 %v1809_v35 }
 0x228   : > { %1588 = vmatpush.msra.mxu0 %v1454_v36  ;;  %v1810_v36 = vld [vmem:[#allocation6 + $0x88] sm:$0xff] }
 0x229   : > { %1909 = vmatpush.msra.mxu3 %v1810_v36 }
 0x22a   : > { %1589 = vmatpush.msra.mxu0 %v1451_v37 }
 0x22c   : > { %1590 = vmatpush.msra.mxu0 %v1448_v38 }
 0x22e   : > { %1591 = vmatpush.msra.mxu0 %v1445_v39 }
 0x22f   : > { %4250 = vmatmul.msk.f32.vlgmr.msra.gmra.mxu0 %vm1197_vm0, %v4246_v40 }
 0x237   : > { %4251 = vmatmul.msk.f32.gmra.mxu0 %vm1197_vm0, %v4247_v41 }
 0x23f   : > { %4252 = vmatmul.msk.f32.gmra.mxu0 %vm1197_vm0, %v4248_v42  ;;  %v1805_v42 = vld [vmem:[#allocation6 + $0x60] sm:$0xff] }
 0x240   : > { %1852 = vmatpush.msra.mxu2 %v1805_v42 }
 0x242   : > { %1853 = vmatpush.msra.mxu2 %v1802_v50 }
 0x247   : > { %4253 = vmatmul.msk.f32.gmra.mxu0 %vm1197_vm0, %v4249_v43  ;;  %v1806_v43 = vld [vmem:[#allocation6 + $0x68] sm:$0xff] }
 0x248   : > { %1881 = vmatpush.msra.mxu1 %v1806_v43 }
 0x24a   : > { %1882 = vmatpush.msra.mxu1 %v1803_v51 }
 0x27b   : > { %v1547_v47 = vpop.f32.mrf.mxu2 }
 0x27c   : > { %v1506_v44 = vpop.f32.mrf.mxu0 }
 0x27d   : > { %v1548_v58 = vadd.f32 %v1547_v47, %v1506_v44  ;;  %v1807_v44 = vld [vmem:[#allocation6 + $0x70] sm:$0xff] }
 0x27e   : > { %1910 = vmatpush.msra.mxu3 %v1807_v44 }
 0x280   : > { %1911 = vmatpush.msra.mxu3 %v1804_v52 }
 0x283   : > { %v1550_v60 = vpop.f32.mrf.mxu2 }
 0x284   : > { %v1509_v45 = vpop.f32.mrf.mxu0 }
 0x285   : > { %v1551_v13 = vadd.f32 %v1550_v60, %v1509_v45  ;;  %v1800_v60 = vld [vmem:[#allocation6 + $0x38] sm:$0xff] }
 0x286   : > { %1883 = vmatpush.msra.mxu1 %v1800_v60 }
 0x288   : > { %1884 = vmatpush.msra.mxu1 %v1797_v2 }
 0x28b   : > { %v1553_v21 = vpop.f32.mrf.mxu2 }
 0x28c   : > { %v5686_v46 = vpop.f32.mrf.mxu0 }
 0x28d   : > { %v1554_v37 = vadd.f32 %v1553_v21, %v5686_v46 }
 0x293   : > { %v1556_v55 = vpop.f32.mrf.mxu2 }
 0x294   : > { %v5688_v48 = vpop.f32.mrf.mxu0 }
 0x295   : > { %v1557_v3 = vadd.f32 %v1556_v55, %v5688_v48 }
 0x2ac   : > { %v1593_v61 = vpop.f32.mrf.mxu0 }
 0x2ad   : > { %v1605_v1 = vadd.f32 %v1593_v61, %v1548_v58  ;;  %v1799_v58 = vld [vmem:[#allocation6 + $0x30] sm:$0xff]  ;;  %v1801_v61 = vld [vmem:[#allocation6 + $0x40] sm:$0xff] }
 0x2ae   : > { %1854 = vmatpush.msra.mxu2 %v1799_v58  ;;  %1912 = vmatpush.msra.mxu3 %v1801_v61 }
 0x2af   : > { %v5693_v5 = vadd.f32 %v5690_v59, %v1605_v1  ;;  %v1796_v1 = vld [vmem:[#allocation6 + $0x18] sm:$0xff] }
 0x2b0   : > { %1855 = vmatpush.msra.mxu2 %v1796_v1  ;;  %1913 = vmatpush.msra.mxu3 %v1798_v6 }
 0x2b1   : > { %v5696_v9 = vmul.f32 0.70710677, %v5693_v5 }
 0x2b2   : > { %1856 = vmatpush.msra.mxu2 %v1793_v12 }
 0x2b3   : > { %v1625_v14 = vmul.f32 %v5696_v9, %v5696_v9 }
 0x2b4   : > { %v1596_v15 = vpop.f32.mrf.mxu0 }
 0x2b5   : > { %v5700_v19 = vmin.f32 %v1625_v14, 16.0  ;;  %v1606_v20 = vadd.f32 %v1596_v15, %v1551_v13  ;;  %v1794_v13 = vld [vmem:[#allocation6 + $0x8] sm:$0xff]  ;;  %v1795_v14 = vld [vmem:[#allocation6 + $0x10] sm:$0xff] }
 0x2b6   : > { %1885 = vmatpush.msra.mxu1 %v1794_v13  ;;  %1914 = vmatpush.msra.mxu3 %v1795_v14 }
 0x2b7   : > { %v1627_v25 = vmul.f32 2.1237322e-06, %v5700_v19  ;;  %v1638_v26 = vmul.f32 3.8918573e-05, %v5700_v19  ;;  %v5705_v27 = vadd.f32 %v5690_v59, %v1606_v20 }
 0x2b9   : > { %v1628_v31 = vadd.f32 0.00028619796, %v1627_v25  ;;  %v1639_v32 = vadd.f32 0.001143296, %v1638_v26  ;;  %v5708_v33 = vmul.f32 0.70710677, %v5705_v27 }
 0x2bb   : > { %v1629_v38 = vmul.f32 %v1628_v31, %v5700_v19  ;;  %v1640_v39 = vmul.f32 %v1639_v32, %v5700_v19  ;;  %v1665_v40 = vmul.f32 %v5708_v33, %v5708_v33 }
 0x2bc   : > { %v1599_v41 = vpop.f32.mrf.mxu0 }
 0x2bd   : > { %v1630_v45 = vadd.f32 0.0036580483, %v1629_v38  ;;  %v1641_v47 = vadd.f32 0.014752088, %v1640_v39  ;;  %v1607_v49 = vadd.f32 %v1599_v41, %v1554_v37  ;;  %v5715_v46 = vmin.f32 %v1665_v40, 16.0 }
 0x2bf   : > { %v1642_v53 = vmul.f32 %v1641_v47, %v5700_v19  ;;  %v5719_v54 = vadd.f32 %v5690_v59, %v1607_v49  ;;  %v1631_v56 = vmul.f32 %v1630_v45, %v5700_v19  ;;  %v1667_v57 = vmul.f32 2.1237322e-06, %v5715_v46 }
 0x2c0   : > { %v1678_v7 = vmul.f32 3.8918573e-05, %v5715_v46 }
 0x2c1   : > { %v1643_v62 = vadd.f32 0.112945676, %v1642_v53  ;;  %v1668_v63 = vadd.f32 0.00028619796, %v1667_v57  ;;  %v5724_v0 = vmul.f32 0.70710677, %v5719_v54 }
 0x2c2   : > { %v1632_v8 = vadd.f32 0.05243302, %v1631_v56  ;;  %v1679_v48 = vadd.f32 0.001143296, %v1678_v7 }
 0x2c3   : > { %v1644_v4 = vmul.f32 %v1643_v62, %v5700_v19  ;;  %v1705_v10 = vmul.f32 %v5724_v0, %v5724_v0  ;;  %v1669_v17 = vmul.f32 %v1668_v63, %v5715_v46 }
 0x2c4   : > { %v1602_v11 = vpop.f32.mrf.mxu0  ;;  %v1680_v22 = vmul.f32 %v1679_v48, %v5715_v46  ;;  %v1633_v23 = vmul.f32 %v1632_v8, %v5700_v19 }
 0x2c5   : > { %v1645_v15 = vadd.f32 0.4994258, %v1644_v4  ;;  %v1608_v16 = vadd.f32 %v1602_v11, %v1557_v3  ;;  %v5732_v18 = vmin.f32 %v1705_v10, 16.0  ;;  %v1670_v29 = vadd.f32 0.0036580483, %v1669_v17 }
 0x2c6   : > { %v1681_v31 = vadd.f32 0.014752088, %v1680_v22  ;;  %v1634_v32 = vadd.f32 0.18741608, %v1633_v23 }
 0x2c7   : > { %v1646_v20 = vmul.f32 %v1645_v15, %v5700_v19  ;;  %v5736_v21 = vadd.f32 %v5690_v59, %v1608_v16  ;;  %v1707_v24 = vmul.f32 2.1237322e-06, %v5732_v18  ;;  %v1718_v28 = vmul.f32 3.8918573e-05, %v5732_v18 }
 0x2c8   : > { %v1682_v34 = vmul.f32 %v1681_v31, %v5715_v46  ;;  %v1671_v36 = vmul.f32 %v1670_v29, %v5715_v46  ;;  %v1635_v41 = vmul.f32 %v1634_v32, %v5700_v19 }
 0x2c9   : > { %v1647_v25 = vadd.f32 1.0, %v1646_v20  ;;  %v5742_v26 = vmul.f32 0.70710677, %v5736_v21  ;;  %v1708_v30 = vadd.f32 0.00028619796, %v1707_v24 }
 0x2ca   : > { %v1719_v35 = vadd.f32 0.001143296, %v1718_v28  ;;  %v1683_v39 = vadd.f32 0.112945676, %v1682_v34  ;;  %v1672_v50 = vadd.f32 0.05243302, %v1671_v36 }
 0x2cb   : > { %4529 = vrcp.f32 %v1647_v25  ;;  %v1745_v59 = vmul.f32 %v5742_v26, %v5742_v26  ;;  %v1709_v37 = vmul.f32 %v1708_v30, %v5732_v18  ;;  %v1636_v57 = vadd.f32 1.1283791, %v1635_v41 }
 0x2cc   : > { %v1720_v40 = vmul.f32 %v1719_v35, %v5732_v18  ;;  %v1684_v45 = vmul.f32 %v1683_v39, %v5715_v46  ;;  %v1657_v60 = vand.u32 2147483647, %v1647_v25  ;;  %v1659_v19 = vand.u32 2147483648, %v1647_v25 }
 0x2cd   : > { %v5750_v38 = vmin.f32 %v1745_v59, 16.0  ;;  %v1710_v51 = vadd.f32 0.0036580483, %v1709_v37  ;;  %v1673_v2 = vmul.f32 %v1672_v50, %v5715_v46  ;;  %vm1653_vm2 = vweird.f32 %v1647_v25 }
 0x2ce   : > { %v1721_v47 = vadd.f32 0.014752088, %v1720_v40  ;;  %v1685_v53 = vadd.f32 0.4994258, %v1684_v45  ;;  %v1637_v11 = vmul.f32 %v1636_v57, %v5696_v9  ;;  %v1660_v12 = vor.u32 1.1754944e-38, %v1659_v19 }
 0x2cf   : > { %v1747_v42 = vmul.f32 2.1237322e-06, %v5750_v38  ;;  %v1758_v43 = vmul.f32 3.8918573e-05, %v5750_v38  ;;  %v1711_v4 = vmul.f32 %v1710_v51, %v5732_v18  ;;  %vm1658_vm4 = vcmp.eq.f32.partialorder %v1657_v60, 8.507059e+37 }
 0x2d0   : > { %v1722_v55 = vmul.f32 %v1721_v47, %v5732_v18  ;;  %v1686_v61 = vmul.f32 %v1685_v53, %v5715_v46  ;;  %v1674_v48 = vadd.f32 0.18741608, %v1673_v2  ;;  %v1617_v59 = vmul.f32 0.5, %v5693_v5 }
 0x2d1   : > { %v4530_v44 = vpop.eup %4529  ;;  %v1748_v52 = vadd.f32 0.00028619796, %v1747_v42  ;;  %v1759_v56 = vadd.f32 0.001143296, %v1758_v43  ;;  %v1712_v17 = vadd.f32 0.05243302, %v1711_v4 }
 0x2d2   : > { %v1649_v49 = vmul.f32 %v4530_v44, %v1647_v25  ;;  %v1723_v62 = vadd.f32 0.112945676, %v1722_v55  ;;  %vm1654_vm1 = vweird.f32 %v4530_v44  ;;  %v1687_v6 = vadd.f32 1.0, %v1686_v61 }
 0x2d3   : > { %v1760_v63 = vmul.f32 %v1759_v56, %v5750_v38  ;;  %v1749_v3 = vmul.f32 %v1748_v52, %v5750_v38  ;;  %vm1655_vm3 = vmor %vm1653_vm2, %vm1654_vm1  ;;  %v1675_v30 = vmul.f32 %v1674_v48, %v5715_v46  ;;  %v1713_v31 = vmul.f32 %v1712_v17, %v5732_v18 }
 0x2d4   : > { %v1650_v58 = vsub.f32 1.0, %v1649_v49  ;;  %v1724_v7 = vmul.f32 %v1723_v62, %v5732_v18  ;;  %4531 = vrcp.f32 %v1687_v6  ;;  %v1699_v43 = vand.u32 2147483648, %v1687_v6 }
 0x2d5   : > { %v1761_v8 = vadd.f32 0.014752088, %v1760_v63  ;;  %v1750_v14 = vadd.f32 0.0036580483, %v1749_v3  ;;  %v1676_v41 = vadd.f32 1.1283791, %v1675_v30  ;;  %vm1693_vm6 = vweird.f32 %v1687_v6 }
 0x2d6   : > { %v1651_v1 = vmul.f32 %v4530_v44, %v1650_v58  ;;  %v1725_v15 = vadd.f32 0.4994258, %v1724_v7  ;;  %v1714_v42 = vadd.f32 0.18741608, %v1713_v31  ;;  %v1697_v46 = vand.u32 2147483647, %v1687_v6 }
 0x2d7   : > { %v1762_v20 = vmul.f32 %v1761_v8, %v5750_v38  ;;  %v1751_v25 = vmul.f32 %v1750_v14, %v5750_v38  ;;  %v1700_v52 = vor.u32 1.1754944e-38, %v1699_v43  ;;  %v1677_v55 = vmul.f32 %v1676_v41, %v5708_v33  ;;  %v4262_v41 = vld [vmem:[%s6264_s22 + $0x40] sm:$0xff]  ;;  %v4263_v43 = vld [vmem:[%s6264_s22 + $0x48] sm:$0xff] }
 0x2d8   : > { %v1652_v10 = vadd.f32 %v4530_v44, %v1651_v1  ;;  %v1726_v23 = vmul.f32 %v1725_v15, %v5732_v18  ;;  %v1715_v51 = vmul.f32 %v1714_v42, %v5732_v18  ;;  %vm1698_vm8 = vcmp.eq.f32.partialorder %v1697_v46, 8.507059e+37  ;;  %v1929_v42 = vld [vmem:[%s6264_s22 + $0x8] sm:$0xff]  ;;  %v4264_v46 = vld [vmem:[%s6264_s22 + $0x50] sm:$0xff] }
 0x2d9   : > { %v1763_v24 = vadd.f32 0.112945676, %v1762_v20  ;;  %v1752_v37 = vadd.f32 0.05243302, %v1751_v25  ;;  %v1618_v4 = vmul.f32 0.5, %v5705_v27  ;;  %v1619_v20 = vmul.f32 0.5, %v5719_v54 }
 0x2da   : > { %v1656_v13 = vsel %vm1655_vm3, %v4530_v44, %v1652_v10  ;;  %v1727_v9 = vadd.f32 1.0, %v1726_v23  ;;  %v4532_v29 = vpop.eup %4531  ;;  %v1716_v62 = vadd.f32 1.1283791, %v1715_v51  ;;  %v1620_v31 = vmul.f32 0.5, %v5736_v21  ;;  %v1928_v21 = vld [vmem:[%s6264_s22] sm:$0xff] }
 0x2db   : > { %v1661_v16 = vsel %vm1658_vm4, %v1660_v12, %v1656_v13  ;;  %v1764_v32 = vmul.f32 %v1763_v24, %v5750_v38  ;;  %v1689_v35 = vmul.f32 %v4532_v29, %v1687_v6  ;;  %vm1694_vm5 = vweird.f32 %v4532_v29  ;;  %v2254_v51 = vld [vmem:[#allocation9 + $0x170] sm:$0xff] }
 0x2dc   : > { %v1662_v22 = vmul.f32 %v1661_v16, %v1637_v11  ;;  %4533 = vrcp.f32 %v1727_v9  ;;  %v1753_v5 = vmul.f32 %v1752_v37, %v5750_v38  ;;  %vm1695_vm7 = vmor %vm1693_vm6, %vm1694_vm5  ;;  %v1739_v61 = vand.u32 2147483648, %v1727_v9  ;;  %2285 = vmatpush.msrb.mxu3 %v2254_v51 }
 0x2dd   : > { %v1690_v39 = vsub.f32 1.0, %v1689_v35  ;;  %v1765_v40 = vadd.f32 0.4994258, %v1764_v32  ;;  %v1737_v1 = vand.u32 2147483647, %v1727_v9  ;;  %vm1733_vm10 = vweird.f32 %v1727_v9 }
 0x2de   : > { %v4254_v28 = vclamps-f32 %v1662_v22, 1.0  ;;  %v1754_v60 = vadd.f32 0.18741608, %v1753_v5  ;;  %v1740_v7 = vor.u32 1.1754944e-38, %v1739_v61  ;;  %v1717_v8 = vmul.f32 %v1716_v62, %v5724_v0  ;;  %v5798_v61 = vld [vmem:[#allocation8] ss:$0 sm:$0xff] }
 0x2df   : > { %v1691_v44 = vmul.f32 %v4532_v29, %v1690_v39  ;;  %v1766_v45 = vmul.f32 %v1765_v40, %v5750_v38  ;;  %vm1738_vm12 = vcmp.eq.f32.partialorder %v1737_v1, 8.507059e+37  ;;  %vm1932_vm1 = vcmask 261120   ;;  %v2245_v1 = vld [vmem:[#allocation9 + $0x128] sm:$0xff] }
 0x2e0   : > { %v1785_v34 = vadd.f32 1.0, %v4254_v28  ;;  %v1755_v33 = vmul.f32 %v1754_v60, %v5750_v38  ;;  %v2249_v60 = vld [vmem:[#allocation9 + $0x148] sm:$0xff] }
 0x2e1   : > { %v1692_v49 = vadd.f32 %v4532_v29, %v1691_v44  ;;  %v1767_v50 = vadd.f32 1.0, %v1766_v45  ;;  %v1930_v44 = vld [vmem:[%s6264_s22 + $0x10] sm:$0xff]  ;;  %v1931_v45 = vld [vmem:[%s6264_s22 + $0x18] sm:$0xff] }
 0x2e2   : > { %v1789_v36 = vmul.f32 %v1785_v34, %v1617_v59  ;;  %v4534_v47 = vpop.eup %4533  ;;  %v1756_v16 = vadd.f32 1.1283791, %v1755_v33  ;;  %v2241_v33 = vld [vmem:[#allocation9 + $0x108] sm:$0xff] }
 0x2e3   : > { %v1729_v53 = vmul.f32 %v4534_v47, %v1727_v9  ;;  %v1696_v56 = vsel %vm1695_vm7, %v4532_v29, %v1692_v49  ;;  %4535 = vrcp.f32 %v1767_v50  ;;  %vm1734_vm9 = vweird.f32 %v4534_v47 }
 0x2e4   : > { %1857 = vmatmul.f32.vlgmr.msra.gmra.mxu2 %v1789_v36  ;;  %1886 = vmatmul.f32.vlgmr.msra.gmra.mxu1 %v1789_v36  ;;  %v1701_v57 = vsel %vm1698_vm8, %v1700_v52, %v1696_v56  ;;  %vm1735_vm11 = vmor %vm1733_vm10, %vm1734_vm9  ;;  %v1779_v48 = vand.u32 2147483648, %v1767_v50  ;;  %v1777_v38 = vand.u32 2147483647, %v1767_v50  ;;  %vm1773_vm14 = vweird.f32 %v1767_v50  ;;  %v2255_v52 = vld [vmem:[#allocation9 + $0x178] sm:$0xff]  ;;  %v2252_v56 = vld [vmem:[#allocation9 + $0x160] sm:$0xff] }
 0x2e5   : > { %1915 = vmatmul.f32.vlgmr.msra.gmra.mxu3 %v1789_v36  ;;  %v1730_v58 = vsub.f32 1.0, %v1729_v53  ;;  %v1702_v19 = vmul.f32 %v1701_v57, %v1677_v55  ;;  %v1757_v24 = vmul.f32 %v1756_v16, %v5742_v26  ;;  %v2250_v53 = vld [vmem:[#allocation9 + $0x150] sm:$0xff]  ;;  %v2251_v55 = vld [vmem:[#allocation9 + $0x158] sm:$0xff]  ;;  %v2237_v16 = vld [vmem:[#allocation9 + $0xe8] sm:$0xff] }
 0x2e6   : > { %v1780_v23 = vor.u32 1.1754944e-38, %v1779_v48  ;;  %vm1778_vm0 = vcmp.eq.f32.partialorder %v1777_v38, 8.507059e+37  ;;  %2286 = vmatpush.msrb.mxu3 %v2251_v55  ;;  %v2247_v57 = vld [vmem:[#allocation9 + $0x138] sm:$0xff]  ;;  %v2232_v38 = vld [vmem:[#allocation9 + $0xc0] sm:$0xff] }
 0x2e7   : > { %v1731_v63 = vmul.f32 %v4534_v47, %v1730_v58  ;;  %v4255_v2 = vclamps-f32 %v1702_v19, 1.0  ;;  %v2248_v58 = vld [vmem:[#allocation9 + $0x140] sm:$0xff]  ;;  %v2219_v55 = vld [vmem:[#allocation9 + $0x58] sm:$0xff] }
 0x2e8   : > { %2287 = vmatpush.msrb.mxu3 %v2248_v58 }
 0x2e9   : > { %v1732_v3 = vadd.f32 %v4534_v47, %v1731_v63  ;;  %v4536_v18 = vpop.eup %4535  ;;  %v1786_v6 = vadd.f32 1.0, %v4255_v2  ;;  %v2244_v63 = vld [vmem:[#allocation9 + $0x120] sm:$0xff]  ;;  %v2246_v2 = vld [vmem:[#allocation9 + $0x130] sm:$0xff] }
 0x2ea   : > { %v1769_v11 = vmul.f32 %v4536_v18, %v1767_v50  ;;  %vm1774_vm13 = vweird.f32 %v4536_v18  ;;  %v2253_v50 = vld [vmem:[#allocation9 + $0x168] sm:$0xff]  ;;  %2288 = vmatpush.msrb.mxu3 %v2245_v1  ;;  %v2216_v1 = vld [vmem:[#allocation9 + $0x40] sm:$0xff] }
 0x2eb   : > { %v1736_v10 = vsel %vm1735_vm11, %v4534_v47, %v1732_v3  ;;  %v1790_v12 = vmul.f32 %v1786_v6, %v1618_v4  ;;  %vm1775_vm15 = vmor %vm1773_vm14, %vm1774_vm13  ;;  %v4265_v47 = vld [vmem:[%s6264_s22 + $0x58] sm:$0xff]  ;;  %2256 = vmatpush.msrb.mxu1 %v2253_v50  ;;  %v2242_v6 = vld [vmem:[#allocation9 + $0x110] sm:$0xff] }
 0x2ec   : > { %v1741_v13 = vsel %vm1738_vm12, %v1740_v7, %v1736_v10  ;;  %v1770_v15 = vsub.f32 1.0, %v1769_v11  ;;  %v2243_v7 = vld [vmem:[#allocation9 + $0x118] sm:$0xff]  ;;  %2289 = vmatpush.msrb.mxu3 %v2242_v6  ;;  %v2238_v10 = vld [vmem:[#allocation9 + $0xf0] sm:$0xff]  ;;  %v2212_v6 = vld [vmem:[#allocation9 + $0x20] sm:$0xff] }
 0x2ed   : > { %v1742_v14 = vmul.f32 %v1741_v13, %v1717_v8  ;;  %1860 = vmatmul.f32.gmra.mxu2 %v1790_v12  ;;  %1889 = vmatmul.f32.gmra.mxu1 %v1790_v12  ;;  %v2239_v11 = vld [vmem:[#allocation9 + $0xf8] sm:$0xff] }
 0x2ee   : > { %1918 = vmatmul.f32.gmra.mxu3 %v1790_v12  ;;  %v1771_v17 = vmul.f32 %v4536_v18, %v1770_v15  ;;  %2257 = vmatpush.msrb.mxu1 %v2250_v53  ;;  %v2240_v12 = vld [vmem:[#allocation9 + $0x100] sm:$0xff]  ;;  %v2218_v53 = vld [vmem:[#allocation9 + $0x50] sm:$0xff] }
 0x2ef   : > { %v4256_v27 = vclamps-f32 %v1742_v14, 1.0  ;;  %2290 = vmatpush.msrb.mxu3 %v2239_v11  ;;  %v2235_v14 = vld [vmem:[#allocation9 + $0xd8] sm:$0xff]  ;;  %v2236_v15 = vld [vmem:[#allocation9 + $0xe0] sm:$0xff]  ;;  %v2213_v11 = vld [vmem:[#allocation9 + $0x28] sm:$0xff] }
 0x2f0   : > { %v1772_v0 = vadd.f32 %v4536_v18, %v1771_v17  ;;  %2258 = vmatpush.msrb.mxu1 %v2247_v57 }
 0x2f1   : > { %v1787_v22 = vadd.f32 1.0, %v4256_v27  ;;  %2291 = vmatpush.msrb.mxu3 %v2236_v15 }
 0x2f2   : > { %v1776_v25 = vsel %vm1775_vm15, %v4536_v18, %v1772_v0  ;;  %2259 = vmatpush.msrb.mxu1 %v2244_v63  ;;  %v2215_v63 = vld [vmem:[#allocation9 + $0x38] sm:$0xff] }
 0x2f3   : > { %v1791_v28 = vmul.f32 %v1787_v22, %v1619_v20  ;;  %v1781_v9 = vsel %vm1778_vm0, %v1780_v23, %v1776_v25  ;;  %v2233_v20 = vld [vmem:[#allocation9 + $0xc8] sm:$0xff]  ;;  %v2234_v22 = vld [vmem:[#allocation9 + $0xd0] sm:$0xff] }
 0x2f4   : > { %v1782_v29 = vmul.f32 %v1781_v9, %v1757_v24  ;;  %2260 = vmatpush.msrb.mxu1 %v2241_v33  ;;  %2292 = vmatpush.msrb.mxu3 %v2233_v20  ;;  %v2230_v25 = vld [vmem:[#allocation9 + $0xb0] sm:$0xff]  ;;  %v2231_v9 = vld [vmem:[#allocation9 + $0xb8] sm:$0xff] }
 0x2f5   : > { %1863 = vmatmul.f32.gmra.mxu2 %v1791_v28  ;;  %1892 = vmatmul.f32.gmra.mxu1 %v1791_v28  ;;  %v2211_v33 = vld [vmem:[#allocation9 + $0x18] sm:$0xff] }
 0x2f6   : > { %1921 = vmatmul.f32.gmra.mxu3 %v1791_v28  ;;  %v4257_v30 = vclamps-f32 %v1782_v29, 1.0  ;;  %2261 = vmatpush.msrb.mxu1 %v2238_v10  ;;  %v2229_v28 = vld [vmem:[#allocation9 + $0xa8] sm:$0xff] }
 0x2f7   : > { %2293 = vmatpush.msrb.mxu3 %v2230_v25 }
 0x2f8   : > { %v1788_v32 = vadd.f32 1.0, %v4257_v30  ;;  %2262 = vmatpush.msrb.mxu1 %v2235_v14 }
 0x2fa   : > { %v1792_v54 = vmul.f32 %v1788_v32, %v1620_v31  ;;  %2263 = vmatpush.msrb.mxu1 %v2232_v38 }
 0x2fc   : > { %2264 = vmatpush.msrb.mxu1 %v2229_v28 }
 0x2fd   : > { %1866 = vmatmul.f32.gmra.mxu2 %v1792_v54  ;;  %1895 = vmatmul.f32.gmra.mxu1 %v1792_v54 }
 0x2fe   : > { %1924 = vmatmul.f32.gmra.mxu3 %v1792_v54  ;;  %v2226_v54 = vld [vmem:[#allocation9 + $0x90] sm:$0xff] }
 0x2ff   : > { %2265 = vmatpush.msrb.mxu1 %v2226_v54 }
 0x361   : > { %v1887_v5 = vpop.f32.mrf.mxu1 }
 0x367   : > { %v1858_v59 = vpop.f32.mrf.mxu2 }
 0x368   : > { %v1916_v26 = vpop.f32.mrf.mxu3 }
 0x36a   : > { %v1890_v4 = vpop.f32.mrf.mxu1 }
 0x370   : > { %v1861_v34 = vpop.f32.mrf.mxu2 }
 0x371   : > { %v1919_v35 = vpop.f32.mrf.mxu3 }
 0x372   : > { %v1893_v32 = vpop.f32.mrf.mxu1 }
 0x378   : > { %v1864_v36 = vpop.f32.mrf.mxu2 }
 0x379   : > { %v1922_v37 = vpop.f32.mrf.mxu3 }
 0x380   : > { %v1867_v39 = vpop.f32.mrf.mxu2 }
 0x381   : > { %v1925_v40 = vpop.f32.mrf.mxu3  ;;  %1957 = vmatpush.msrb.mxu0 %v1867_v39  ;;  %v2224_v39 = vld [vmem:[#allocation9 + $0x80] sm:$0xff] }
 0x382   : > { %2003 = vmatpush.msrb.mxu2 %v1925_v40  ;;  %v2225_v40 = vld [vmem:[#allocation9 + $0x88] sm:$0xff] }
 0x383   : > { %1958 = vmatpush.msrb.mxu0 %v1864_v36 }
 0x384   : > { %2004 = vmatpush.msrb.mxu2 %v1922_v37  ;;  %v2223_v37 = vld [vmem:[#allocation9 + $0x78] sm:$0xff] }
 0x385   : > { %1959 = vmatpush.msrb.mxu0 %v1861_v34  ;;  %2266 = vmatpush.msrb.mxu1 %v2223_v37 }
 0x386   : > { %2005 = vmatpush.msrb.mxu2 %v1919_v35 }
 0x387   : > { %1960 = vmatpush.msrb.mxu0 %v1858_v59  ;;  %v2227_v59 = vld [vmem:[#allocation9 + $0x98] sm:$0xff] }
 0x388   : > { %2006 = vmatpush.msrb.mxu2 %v1916_v26  ;;  %4258 = vmatmul.msk.f32.vlgmr.msrb.gmra.mxu0 %vm1932_vm1, %v1928_v21  ;;  %v2228_v26 = vld [vmem:[#allocation9 + $0xa0] sm:$0xff] }
 0x389   : > { %4266 = vmatmul.msk.f32.vlgmr.msrb.gmra.mxu2 %vm1932_vm1, %v4262_v41  ;;  %2314 = vmatpush.msra.mxu0 %v2255_v52  ;;  %v2217_v52 = vld [vmem:[#allocation9 + $0x48] sm:$0xff] }
 0x38a   : > { %2294 = vmatpush.msrb.mxu3 %v2227_v59 }
 0x38b   : > { %2315 = vmatpush.msra.mxu0 %v2252_v56 }
 0x38c   : > { %2295 = vmatpush.msrb.mxu3 %v2224_v39 }
 0x38d   : > { %2316 = vmatpush.msra.mxu0 %v2249_v60 }
 0x38f   : > { %2317 = vmatpush.msra.mxu0 %v2246_v2 }
 0x390   : > { %4259 = vmatmul.msk.f32.gmra.mxu0 %vm1932_vm1, %v1929_v42 }
 0x391   : > { %4267 = vmatmul.msk.f32.gmra.mxu2 %vm1932_vm1, %v4263_v43  ;;  %2318 = vmatpush.msra.mxu0 %v2243_v7 }
 0x393   : > { %2319 = vmatpush.msra.mxu0 %v2240_v12 }
 0x395   : > { %2320 = vmatpush.msra.mxu0 %v2237_v16 }
 0x397   : > { %2321 = vmatpush.msra.mxu0 %v2234_v22 }
 0x398   : > { %4260 = vmatmul.msk.f32.gmra.mxu0 %vm1932_vm1, %v1930_v44 }
 0x399   : > { %4268 = vmatmul.msk.f32.gmra.mxu2 %vm1932_vm1, %v4264_v46  ;;  %2322 = vmatpush.msra.mxu0 %v2231_v9  ;;  %v2220_v46 = vld [vmem:[#allocation9 + $0x60] sm:$0xff] }
 0x39a   : > { %2267 = vmatpush.msrb.mxu1 %v2220_v46 }
 0x39b   : > { %2323 = vmatpush.msra.mxu0 %v2228_v26 }
 0x39c   : > { %2268 = vmatpush.msrb.mxu1 %v2217_v52 }
 0x39d   : > { %2324 = vmatpush.msra.mxu0 %v2225_v40 }
 0x3a0   : > { %4261 = vmatmul.msk.f32.gmra.mxu0 %vm1932_vm1, %v1931_v45  ;;  %v2221_v45 = vld [vmem:[#allocation9 + $0x68] sm:$0xff] }
 0x3a1   : > { %4269 = vmatmul.msk.f32.gmra.mxu2 %vm1932_vm1, %v4265_v47  ;;  %v2222_v47 = vld [vmem:[#allocation9 + $0x70] sm:$0xff]  ;;  %2296 = vmatpush.msrb.mxu3 %v2221_v45 }
 0x3a2   : > { %2325 = vmatpush.msra.mxu0 %v2222_v47 }
 0x3a3   : > { %2297 = vmatpush.msrb.mxu3 %v2218_v53 }
 0x3a4   : > { %2326 = vmatpush.msra.mxu0 %v2219_v55 }
 0x3a5   : > { %2298 = vmatpush.msrb.mxu3 %v2215_v63 }
 0x3a6   : > { %2327 = vmatpush.msra.mxu0 %v2216_v1 }
 0x3a7   : > { %2299 = vmatpush.msrb.mxu3 %v2212_v6 }
 0x3a8   : > { %2328 = vmatpush.msra.mxu0 %v2213_v11 }
 0x405   : > { %v1962_v49 = vpop.f32.mrf.mxu0 }
 0x406   : > { %v1963_v19 = vadd.f32 %v1962_v49, %v1887_v5 }
 0x40c   : > { %v2008_v62 = vpop.f32.mrf.mxu2 }
 0x40d   : > { %v2020_v3 = vadd.f32 %v2008_v62, %v1963_v19  ;;  %v1965_v18 = vpop.f32.mrf.mxu0  ;;  %v2214_v62 = vld [vmem:[#allocation9 + $0x30] sm:$0xff] }
 0x40e   : > { %v1966_v27 = vadd.f32 %v1965_v18, %v1890_v4  ;;  %2269 = vmatpush.msrb.mxu1 %v2214_v62 }
 0x40f   : > { %v5801_v8 = vadd.f32 %v5798_v61, %v2020_v3  ;;  %v1896_v3 = vpop.f32.mrf.mxu1 }
 0x410   : > { %2270 = vmatpush.msrb.mxu1 %v2211_v33 }
 0x411   : > { %v5804_v13 = vmul.f32 0.70710677, %v5801_v8 }
 0x413   : > { %v2040_v48 = vmul.f32 %v5804_v13, %v5804_v13 }
 0x414   : > { %v2011_v17 = vpop.f32.mrf.mxu2 }
 0x415   : > { %v5808_v0 = vmin.f32 %v2040_v48, 16.0  ;;  %v2021_v23 = vadd.f32 %v2011_v17, %v1966_v27  ;;  %v1968_v24 = vpop.f32.mrf.mxu0  ;;  %v2208_v48 = vld [vmem:[#allocation9] sm:$0xff]  ;;  %v2209_v27 = vld [vmem:[#allocation9 + $0x8] sm:$0xff]  ;;  %v2210_v17 = vld [vmem:[#allocation9 + $0x10] sm:$0xff] }
 0x416   : > { %v1969_v42 = vadd.f32 %v1968_v24, %v1893_v32  ;;  %2271 = vmatpush.msrb.mxu1 %v2208_v48  ;;  %2300 = vmatpush.msrb.mxu3 %v2209_v27 }
 0x417   : > { %v2042_v29 = vmul.f32 2.1237322e-06, %v5808_v0  ;;  %v2053_v30 = vmul.f32 3.8918573e-05, %v5808_v0  ;;  %v5813_v31 = vadd.f32 %v5798_v61, %v2021_v23  ;;  %2329 = vmatpush.msra.mxu0 %v2210_v17 }
 0x419   : > { %v2043_v34 = vadd.f32 0.00028619796, %v2042_v29  ;;  %v2054_v35 = vadd.f32 0.001143296, %v2053_v30  ;;  %v5816_v36 = vmul.f32 0.70710677, %v5813_v31 }
 0x41b   : > { %v2044_v21 = vmul.f32 %v2043_v34, %v5808_v0  ;;  %v2055_v41 = vmul.f32 %v2054_v35, %v5808_v0  ;;  %v2080_v43 = vmul.f32 %v5816_v36, %v5816_v36 }
 0x41c   : > { %v2014_v44 = vpop.f32.mrf.mxu2 }
 0x41d   : > { %v2045_v5 = vadd.f32 0.0036580483, %v2044_v21  ;;  %v2056_v49 = vadd.f32 0.014752088, %v2055_v41  ;;  %v2022_v50 = vadd.f32 %v2014_v44, %v1969_v42  ;;  %v5822_v51 = vmin.f32 %v2080_v43, 16.0  ;;  %v1971_v19 = vpop.f32.mrf.mxu0 }
 0x41e   : > { %v1972_v10 = vadd.f32 %v1971_v19, %v1896_v3 }
 0x41f   : > { %v2057_v56 = vmul.f32 %v2056_v49, %v5808_v0  ;;  %v5826_v57 = vadd.f32 %v5798_v61, %v2022_v50  ;;  %v2046_v58 = vmul.f32 %v2045_v5, %v5808_v0  ;;  %v2082_v60 = vmul.f32 2.1237322e-06, %v5822_v51 }
 0x420   : > { %v2093_v12 = vmul.f32 3.8918573e-05, %v5822_v51 }
 0x421   : > { %v2058_v2 = vadd.f32 0.112945676, %v2057_v56  ;;  %v2083_v18 = vadd.f32 0.00028619796, %v2082_v60  ;;  %v5831_v4 = vmul.f32 0.70710677, %v5826_v57 }
 0x422   : > { %v2047_v14 = vadd.f32 0.05243302, %v2046_v58  ;;  %v2094_v22 = vadd.f32 0.001143296, %v2093_v12 }
 0x423   : > { %v2059_v7 = vmul.f32 %v2058_v2, %v5808_v0  ;;  %v2120_v15 = vmul.f32 %v5831_v4, %v5831_v4  ;;  %v2084_v23 = vmul.f32 %v2083_v18, %v5822_v51 }
 0x424   : > { %v2017_v16 = vpop.f32.mrf.mxu2  ;;  %v2095_v9 = vmul.f32 %v2094_v22, %v5822_v51  ;;  %v2048_v29 = vmul.f32 %v2047_v14, %v5808_v0 }
 0x425   : > { %v2060_v38 = vadd.f32 0.4994258, %v2059_v7  ;;  %v2023_v20 = vadd.f32 %v2017_v16, %v1972_v10  ;;  %v5838_v24 = vmin.f32 %v2120_v15, 16.0  ;;  %v2085_v26 = vadd.f32 0.0036580483, %v2084_v23 }
 0x426   : > { %v2096_v35 = vadd.f32 0.014752088, %v2095_v9  ;;  %v2049_v37 = vadd.f32 0.18741608, %v2048_v29 }
 0x427   : > { %v2061_v28 = vmul.f32 %v2060_v38, %v5808_v0  ;;  %v5842_v25 = vadd.f32 %v5798_v61, %v2023_v20  ;;  %v2122_v30 = vmul.f32 2.1237322e-06, %v5838_v24  ;;  %v2133_v59 = vmul.f32 3.8918573e-05, %v5838_v24 }
 0x428   : > { %v2097_v39 = vmul.f32 %v2096_v35, %v5822_v51  ;;  %v2086_v21 = vmul.f32 %v2085_v26, %v5822_v51  ;;  %v2050_v46 = vmul.f32 %v2049_v37, %v5808_v0 }
 0x429   : > { %v2062_v32 = vadd.f32 1.0, %v2061_v28  ;;  %v5848_v54 = vmul.f32 0.70710677, %v5842_v25  ;;  %v2123_v34 = vadd.f32 0.00028619796, %v2122_v30 }
 0x42a   : > { %v2134_v40 = vadd.f32 0.001143296, %v2133_v59  ;;  %v2098_v43 = vadd.f32 0.112945676, %v2097_v39  ;;  %v2087_v53 = vadd.f32 0.05243302, %v2086_v21 }
 0x42b   : > { %4537 = vrcp.f32 %v2062_v32  ;;  %v2160_v61 = vmul.f32 %v5848_v54, %v5848_v54  ;;  %v2124_v41 = vmul.f32 %v2123_v34, %v5838_v24  ;;  %v2051_v62 = vadd.f32 1.1283791, %v2050_v46 }
 0x42c   : > { %v2135_v44 = vmul.f32 %v2134_v40, %v5838_v24  ;;  %v2099_v49 = vmul.f32 %v2098_v43, %v5822_v51  ;;  %v2072_v1 = vand.u32 2147483647, %v2062_v32  ;;  %v2074_v0 = vand.u32 2147483648, %v2062_v32 }
 0x42d   : > { %v5856_v42 = vmin.f32 %v2160_v61, 16.0  ;;  %v2125_v55 = vadd.f32 0.0036580483, %v2124_v41  ;;  %v2088_v6 = vmul.f32 %v2087_v53, %v5822_v51  ;;  %vm2068_vm3 = vweird.f32 %v2062_v32 }
 0x42e   : > { %v2136_v50 = vadd.f32 0.014752088, %v2135_v44  ;;  %v2100_v58 = vadd.f32 0.4994258, %v2099_v49  ;;  %v2052_v16 = vmul.f32 %v2051_v62, %v5804_v13  ;;  %v2075_v48 = vor.u32 1.1754944e-38, %v2074_v0 }
 0x42f   : > { %v2162_v45 = vmul.f32 2.1237322e-06, %v5856_v42  ;;  %v2173_v47 = vmul.f32 3.8918573e-05, %v5856_v42  ;;  %v2126_v10 = vmul.f32 %v2125_v55, %v5838_v24  ;;  %vm2073_vm5 = vcmp.eq.f32.partialorder %v2072_v1, 8.507059e+37 }
 0x430   : > { %v2137_v60 = vmul.f32 %v2136_v50, %v5838_v24  ;;  %v2101_v2 = vmul.f32 %v2100_v58, %v5822_v51  ;;  %v2089_v22 = vadd.f32 0.18741608, %v2088_v6  ;;  %v2032_v61 = vmul.f32 0.5, %v5801_v8 }
 0x431   : > { %v4538_v5 = vpop.eup %4537  ;;  %v2163_v56 = vadd.f32 0.00028619796, %v2162_v45  ;;  %v2174_v19 = vadd.f32 0.001143296, %v2173_v47  ;;  %v2127_v23 = vadd.f32 0.05243302, %v2126_v10 }
 0x432   : > { %v2064_v52 = vmul.f32 %v4538_v5, %v2062_v32  ;;  %v2138_v3 = vadd.f32 0.112945676, %v2137_v60  ;;  %vm2069_vm2 = vweird.f32 %v4538_v5  ;;  %v2102_v11 = vadd.f32 1.0, %v2101_v2 }
 0x433   : > { %v2175_v18 = vmul.f32 %v2174_v19, %v5856_v42  ;;  %v2164_v7 = vmul.f32 %v2163_v56, %v5856_v42  ;;  %vm2070_vm4 = vmor %vm2068_vm3, %vm2069_vm2  ;;  %v2090_v34 = vmul.f32 %v2089_v22, %v5822_v51  ;;  %v2128_v35 = vmul.f32 %v2127_v23, %v5838_v24 }
 0x434   : > { %v2065_v63 = vsub.f32 1.0, %v2064_v52  ;;  %v2139_v12 = vmul.f32 %v2138_v3, %v5838_v24  ;;  %4539 = vrcp.f32 %v2102_v11  ;;  %v2114_v47 = vand.u32 2147483648, %v2102_v11 }
 0x435   : > { %v2176_v14 = vadd.f32 0.014752088, %v2175_v18  ;;  %v2165_v17 = vadd.f32 0.0036580483, %v2164_v7  ;;  %v2091_v46 = vadd.f32 1.1283791, %v2090_v34  ;;  %vm2108_vm7 = vweird.f32 %v2102_v11 }
 0x436   : > { %v2066_v33 = vmul.f32 %v4538_v5, %v2065_v63  ;;  %v2140_v38 = vadd.f32 0.4994258, %v2139_v12  ;;  %v2129_v45 = vadd.f32 0.18741608, %v2128_v35  ;;  %v2112_v51 = vand.u32 2147483647, %v2102_v11 }
 0x437   : > { %v2177_v28 = vmul.f32 %v2176_v14, %v5856_v42  ;;  %v2166_v32 = vmul.f32 %v2165_v17, %v5856_v42  ;;  %v2115_v56 = vor.u32 1.1754944e-38, %v2114_v47  ;;  %v2092_v60 = vmul.f32 %v2091_v46, %v5816_v36 }
 0x438   : > { %v2067_v15 = vadd.f32 %v4538_v5, %v2066_v33  ;;  %v2141_v29 = vmul.f32 %v2140_v38, %v5838_v24  ;;  %v2130_v55 = vmul.f32 %v2129_v45, %v5838_v24  ;;  %vm2113_vm9 = vcmp.eq.f32.partialorder %v2112_v51, 8.507059e+37  ;;  %v2343_v45 = vld [vmem:[%s6265_s21] sm:$0xff]  ;;  %v2344_v51 = vld [vmem:[%s6265_s21 + $0x8] sm:$0xff] }
 0x439   : > { %v2178_v30 = vadd.f32 0.112945676, %v2177_v28  ;;  %v2167_v41 = vadd.f32 0.05243302, %v2166_v32  ;;  %v2033_v10 = vmul.f32 0.5, %v5813_v31  ;;  %v2034_v28 = vmul.f32 0.5, %v5826_v57 }
 0x43a   : > { %v2071_v27 = vsel %vm2070_vm4, %v4538_v5, %v2067_v15  ;;  %v2142_v13 = vadd.f32 1.0, %v2141_v29  ;;  %v4540_v26 = vpop.eup %4539  ;;  %v2131_v3 = vadd.f32 1.1283791, %v2130_v55  ;;  %v2035_v35 = vmul.f32 0.5, %v5842_v25 }
 0x43b   : > { %v2076_v20 = vsel %vm2073_vm5, %v2075_v48, %v2071_v27  ;;  %v2179_v37 = vmul.f32 %v2178_v30, %v5856_v42  ;;  %v2104_v40 = vmul.f32 %v4540_v26, %v2102_v11  ;;  %vm2109_vm6 = vweird.f32 %v4540_v26 }
 0x43c   : > { %v2077_v9 = vmul.f32 %v2076_v20, %v2052_v16  ;;  %4541 = vrcp.f32 %v2142_v13  ;;  %v2168_v8 = vmul.f32 %v2167_v41, %v5856_v42  ;;  %vm2110_vm8 = vmor %vm2108_vm7, %vm2109_vm6  ;;  %v2154_v2 = vand.u32 2147483648, %v2142_v13 }
 0x43d   : > { %v2105_v43 = vsub.f32 1.0, %v2104_v40  ;;  %v2180_v44 = vadd.f32 0.4994258, %v2179_v37  ;;  %v2152_v33 = vand.u32 2147483647, %v2142_v13  ;;  %vm2148_vm11 = vweird.f32 %v2142_v13 }
 0x43e   : > { %v4270_v59 = vclamps-f32 %v2077_v9, 1.0  ;;  %v2169_v1 = vadd.f32 0.18741608, %v2168_v8  ;;  %v2155_v12 = vor.u32 1.1754944e-38, %v2154_v2  ;;  %v2132_v14 = vmul.f32 %v2131_v3, %v5831_v4  ;;  %v4280_v8 = vld [vmem:[%s6265_s21 + $0x20] sm:$0xff]  ;;  %v2574_v2 = vld [vmem:[#allocation12 + $0x140] sm:$0xff] }
 0x43f   : > { %v2106_v5 = vmul.f32 %v4540_v26, %v2105_v43  ;;  %v2181_v49 = vmul.f32 %v2180_v44, %v5856_v42  ;;  %vm2153_vm13 = vcmp.eq.f32.partialorder %v2152_v33, 8.507059e+37  ;;  %v2575_v3 = vld [vmem:[#allocation12 + $0x148] sm:$0xff] }
 0x440   : > { %v2200_v39 = vadd.f32 1.0, %v4270_v59  ;;  %v2170_v36 = vmul.f32 %v2169_v1, %v5856_v42  ;;  %v2578_v1 = vld [vmem:[#allocation12 + $0x160] sm:$0xff] }
 0x441   : > { %v2107_v52 = vadd.f32 %v4540_v26, %v2106_v5  ;;  %v2182_v53 = vadd.f32 1.0, %v2181_v49  ;;  %v4274_v5 = vld [vmem:[%s6265_s21 + $0x10] sm:$0xff] }
 0x442   : > { %v2204_v21 = vmul.f32 %v2200_v39, %v2032_v61  ;;  %v4542_v50 = vpop.eup %4541  ;;  %v2171_v20 = vadd.f32 1.1283791, %v2170_v36 }
 0x443   : > { %v2144_v58 = vmul.f32 %v4542_v50, %v2142_v13  ;;  %v2111_v19 = vsel %vm2110_vm8, %v4540_v26, %v2107_v52  ;;  %4543 = vrcp.f32 %v2182_v53  ;;  %vm2149_vm10 = vweird.f32 %v4542_v50  ;;  %v4281_v52 = vld [vmem:[%s6265_s21 + $0x28] sm:$0xff] }
 0x444   : > { %2272 = vmatmul.f32.vlgmr.msrb.gmra.mxu1 %v2204_v21  ;;  %2301 = vmatmul.f32.vlgmr.msrb.gmra.mxu3 %v2204_v21  ;;  %v2116_v62 = vsel %vm2113_vm9, %v2115_v56, %v2111_v19  ;;  %vm2150_vm12 = vmor %vm2148_vm11, %vm2149_vm10  ;;  %v2194_v22 = vand.u32 2147483648, %v2182_v53  ;;  %v2192_v42 = vand.u32 2147483647, %v2182_v53  ;;  %vm2188_vm15 = vweird.f32 %v2182_v53  ;;  %v2579_v56 = vld [vmem:[#allocation12 + $0x168] sm:$0xff] }
 0x445   : > { %2330 = vmatmul.f32.vlgmr.msra.gmra.mxu0 %v2204_v21  ;;  %v2145_v63 = vsub.f32 1.0, %v2144_v58  ;;  %v2117_v0 = vmul.f32 %v2116_v62, %v2092_v60  ;;  %v2172_v30 = vmul.f32 %v2171_v20, %v5848_v54  ;;  %v2580_v58 = vld [vmem:[#allocation12 + $0x170] sm:$0xff]  ;;  %v2581_v60 = vld [vmem:[#allocation12 + $0x178] sm:$0xff]  ;;  %2582 = vmatpush.msra.mxu3 %v2579_v56  ;;  %vm2653_vm10 = vcmask 130048  }
 0x446   : > { %v2195_v29 = vor.u32 1.1754944e-38, %v2194_v22  ;;  %vm2193_vm2 = vcmp.eq.f32.partialorder %v2192_v42, 8.507059e+37  ;;  %2605 = vmatpush.msrb.mxu0 %v2580_v58  ;;  %v2576_v62 = vld [vmem:[#allocation12 + $0x150] sm:$0xff]  ;;  %v2561_v20 = vld [vmem:[#allocation12 + $0xd8] sm:$0xff]  ;;  %v2562_v22 = vld [vmem:[#allocation12 + $0xe0] sm:$0xff] }
 0x447   : > { %v2146_v18 = vmul.f32 %v4542_v50, %v2145_v63  ;;  %v4271_v6 = vclamps-f32 %v2117_v0, 1.0  ;;  %v2577_v63 = vld [vmem:[#allocation12 + $0x158] sm:$0xff]  ;;  %2583 = vmatpush.msra.mxu3 %v2576_v62  ;;  %v2540_v58 = vld [vmem:[#allocation12 + $0x30] sm:$0xff] }
 0x448   : > { %2606 = vmatpush.msrb.mxu0 %v2577_v63  ;;  %v2573_v0 = vld [vmem:[#allocation12 + $0x138] sm:$0xff] }
 0x449   : > { %v2147_v7 = vadd.f32 %v4542_v50, %v2146_v18  ;;  %v4544_v24 = vpop.eup %4543  ;;  %v2201_v11 = vadd.f32 1.0, %v4271_v6  ;;  %v4523_v18 = vld [vmem:[#allocation11] ss:$0 sm:$0xff]  ;;  %2584 = vmatpush.msra.mxu3 %v2573_v0  ;;  %v2570_v6 = vld [vmem:[#allocation12 + $0x120] sm:$0xff] }
 0x44a   : > { %v2184_v16 = vmul.f32 %v4544_v24, %v2182_v53  ;;  %vm2189_vm14 = vweird.f32 %v4544_v24  ;;  %2607 = vmatpush.msrb.mxu0 %v2574_v2  ;;  %v2537_v2 = vld [vmem:[#allocation12 + $0x18] sm:$0xff] }
 0x44b   : > { %v2151_v15 = vsel %vm2150_vm12, %v4542_v50, %v2147_v7  ;;  %v2205_v48 = vmul.f32 %v2201_v11, %v2033_v10  ;;  %vm2190_vm0 = vmor %vm2188_vm15, %vm2189_vm14  ;;  %v4275_v50 = vld [vmem:[%s6265_s21 + $0x18] sm:$0xff]  ;;  %2585 = vmatpush.msra.mxu3 %v2570_v6 }
 0x44c   : > { %v2156_v27 = vsel %vm2153_vm13, %v2155_v12, %v2151_v15  ;;  %v2185_v38 = vsub.f32 1.0, %v2184_v16  ;;  %v2571_v7 = vld [vmem:[#allocation12 + $0x128] sm:$0xff]  ;;  %v2568_v12 = vld [vmem:[#allocation12 + $0x110] sm:$0xff]  ;;  %v2534_v6 = vld [vmem:[#allocation12] sm:$0xff] }
 0x44d   : > { %v2157_v17 = vmul.f32 %v2156_v27, %v2132_v14  ;;  %2275 = vmatmul.f32.gmra.mxu1 %v2205_v48  ;;  %2304 = vmatmul.f32.gmra.mxu3 %v2205_v48  ;;  %v2567_v11 = vld [vmem:[#allocation12 + $0x108] sm:$0xff]  ;;  %v2569_v14 = vld [vmem:[#allocation12 + $0x118] sm:$0xff]  ;;  %v2564_v16 = vld [vmem:[#allocation12 + $0xf0] sm:$0xff] }
 0x44e   : > { %2333 = vmatmul.f32.gmra.mxu0 %v2205_v48  ;;  %v2186_v23 = vmul.f32 %v4544_v24, %v2185_v38  ;;  %2586 = vmatpush.msra.mxu3 %v2567_v11  ;;  %v2565_v48 = vld [vmem:[#allocation12 + $0xf8] sm:$0xff]  ;;  %v2566_v27 = vld [vmem:[#allocation12 + $0x100] sm:$0xff] }
 0x44f   : > { %v4272_v31 = vclamps-f32 %v2157_v17, 1.0  ;;  %2608 = vmatpush.msrb.mxu0 %v2571_v7  ;;  %v2535_v7 = vld [vmem:[#allocation12 + $0x8] sm:$0xff] }
 0x450   : > { %v2187_v4 = vadd.f32 %v4544_v24, %v2186_v23  ;;  %2587 = vmatpush.msra.mxu3 %v2564_v16 }
 0x451   : > { %v2202_v9 = vadd.f32 1.0, %v4272_v31  ;;  %2609 = vmatpush.msrb.mxu0 %v2568_v12  ;;  %v2563_v31 = vld [vmem:[#allocation12 + $0xe8] sm:$0xff] }
 0x452   : > { %v2191_v32 = vsel %vm2190_vm0, %v4544_v24, %v2187_v4  ;;  %v2572_v24 = vld [vmem:[#allocation12 + $0x130] sm:$0xff]  ;;  %2588 = vmatpush.msra.mxu3 %v2561_v20 }
 0x453   : > { %v2206_v59 = vmul.f32 %v2202_v9, %v2034_v28  ;;  %v2196_v13 = vsel %vm2193_vm2, %v2195_v29, %v2191_v32  ;;  %2610 = vmatpush.msrb.mxu0 %v2565_v48  ;;  %v2558_v28 = vld [vmem:[#allocation12 + $0xc0] sm:$0xff]  ;;  %v2559_v9 = vld [vmem:[#allocation12 + $0xc8] sm:$0xff]  ;;  %v2560_v4 = vld [vmem:[#allocation12 + $0xd0] sm:$0xff] }
 0x454   : > { %v2197_v26 = vmul.f32 %v2196_v13, %v2172_v30  ;;  %2589 = vmatpush.msra.mxu3 %v2558_v28  ;;  %v2555_v32 = vld [vmem:[#allocation12 + $0xa8] sm:$0xff]  ;;  %v2556_v13 = vld [vmem:[#allocation12 + $0xb0] sm:$0xff] }
 0x455   : > { %2278 = vmatmul.f32.gmra.mxu1 %v2206_v59  ;;  %2307 = vmatmul.f32.gmra.mxu3 %v2206_v59 }
 0x456   : > { %2336 = vmatmul.f32.gmra.mxu0 %v2206_v59  ;;  %v4273_v34 = vclamps-f32 %v2197_v26, 1.0  ;;  %v2557_v26 = vld [vmem:[#allocation12 + $0xb8] sm:$0xff]  ;;  %2590 = vmatpush.msra.mxu3 %v2555_v32 }
 0x457   : > { %2611 = vmatpush.msrb.mxu0 %v2562_v22 }
 0x458   : > { %v2203_v37 = vadd.f32 1.0, %v4273_v34 }
 0x459   : > { %2612 = vmatpush.msrb.mxu0 %v2559_v9 }
 0x45a   : > { %v2207_v57 = vmul.f32 %v2203_v37, %v2035_v35 }
 0x45b   : > { %2613 = vmatpush.msrb.mxu0 %v2556_v13 }
 0x45d   : > { %2281 = vmatmul.f32.gmra.mxu1 %v2207_v57  ;;  %2310 = vmatmul.f32.gmra.mxu3 %v2207_v57 }
 0x45e   : > { %2339 = vmatmul.f32.gmra.mxu0 %v2207_v57  ;;  %v2552_v57 = vld [vmem:[#allocation12 + $0x90] sm:$0xff] }
 0x45f   : > { %2591 = vmatpush.msra.mxu3 %v2552_v57 }
 0x4c1   : > { %v2273_v61 = vpop.f32.mrf.mxu1 }
 0x4c2   : > { %v2331_v54 = vpop.f32.mrf.mxu0 }
 0x4c7   : > { %v2302_v39 = vpop.f32.mrf.mxu3 }
 0x4ca   : > { %v2276_v40 = vpop.f32.mrf.mxu1 }
 0x4cb   : > { %v2334_v43 = vpop.f32.mrf.mxu0 }
 0x4d0   : > { %v2305_v21 = vpop.f32.mrf.mxu3 }
 0x4d2   : > { %v2279_v41 = vpop.f32.mrf.mxu1 }
 0x4d3   : > { %v2337_v25 = vpop.f32.mrf.mxu0 }
 0x4d8   : > { %v2308_v44 = vpop.f32.mrf.mxu3 }
 0x4da   : > { %v2282_v46 = vpop.f32.mrf.mxu1 }
 0x4db   : > { %2395 = vmatpush.msra.mxu1 %v2282_v46  ;;  %v2340_v49 = vpop.f32.mrf.mxu0 }
 0x4dd   : > { %2396 = vmatpush.msra.mxu1 %v2279_v41 }
 0x4df   : > { %2397 = vmatpush.msra.mxu1 %v2276_v40 }
 0x4e0   : > { %v2311_v47 = vpop.f32.mrf.mxu3 }
 0x4e1   : > { %2366 = vmatpush.msra.mxu2 %v2311_v47  ;;  %2398 = vmatpush.msra.mxu1 %v2273_v61  ;;  %v2553_v61 = vld [vmem:[#allocation12 + $0x98] sm:$0xff]  ;;  %v2547_v47 = vld [vmem:[#allocation12 + $0x68] sm:$0xff] }
 0x4e2   : > { %4278 = vmatmul.msk.f32.vlgmr.msra.gmra.mxu1 %vm1932_vm1, %v2343_v45  ;;  %2614 = vmatpush.msrb.mxu0 %v2553_v61  ;;  %v2546_v45 = vld [vmem:[#allocation12 + $0x60] sm:$0xff] }
 0x4e3   : > { %2367 = vmatpush.msra.mxu2 %v2308_v44  ;;  %2628 = vmatpush.msrb.mxu1 %v2581_v60  ;;  %v2551_v44 = vld [vmem:[#allocation12 + $0x88] sm:$0xff]  ;;  %v2541_v60 = vld [vmem:[#allocation12 + $0x38] sm:$0xff] }
 0x4e5   : > { %2368 = vmatpush.msra.mxu2 %v2305_v21  ;;  %2629 = vmatpush.msrb.mxu1 %v2578_v1  ;;  %v2549_v21 = vld [vmem:[#allocation12 + $0x78] sm:$0xff] }
 0x4e6   : > { %2592 = vmatpush.msra.mxu3 %v2549_v21 }
 0x4e7   : > { %2369 = vmatpush.msra.mxu2 %v2302_v39  ;;  %2630 = vmatpush.msrb.mxu1 %v2575_v3  ;;  %v2554_v39 = vld [vmem:[#allocation12 + $0xa0] sm:$0xff] }
 0x4e8   : > { %4276 = vmatmul.msk.f32.vlgmr.msra.gmra.mxu2 %vm1932_vm1, %v4274_v5  ;;  %v2548_v5 = vld [vmem:[#allocation12 + $0x70] sm:$0xff]  ;;  %2593 = vmatpush.msra.mxu3 %v2546_v45  ;;  %v2538_v3 = vld [vmem:[#allocation12 + $0x20] sm:$0xff] }
 0x4e9   : > { %2427 = vmatpush.msrb.mxu2 %v2340_v49  ;;  %2631 = vmatpush.msrb.mxu1 %v2572_v24 }
 0x4ea   : > { %4279 = vmatmul.msk.f32.gmra.mxu1 %vm1932_vm1, %v2344_v51 }
 0x4eb   : > { %2428 = vmatpush.msrb.mxu2 %v2337_v25  ;;  %2632 = vmatpush.msrb.mxu1 %v2569_v14 }
 0x4ed   : > { %2429 = vmatpush.msrb.mxu2 %v2334_v43  ;;  %2633 = vmatpush.msrb.mxu1 %v2566_v27  ;;  %v2550_v43 = vld [vmem:[#allocation12 + $0x80] sm:$0xff] }
 0x4ee   : > { %2615 = vmatpush.msrb.mxu0 %v2550_v43 }
 0x4ef   : > { %2430 = vmatpush.msrb.mxu2 %v2331_v54  ;;  %2634 = vmatpush.msrb.mxu1 %v2563_v31 }
 0x4f0   : > { %4277 = vmatmul.msk.f32.gmra.mxu2 %vm1932_vm1, %v4275_v50  ;;  %2616 = vmatpush.msrb.mxu0 %v2547_v47 }
 0x4f1   : > { %2635 = vmatpush.msrb.mxu1 %v2560_v4 }
 0x4f3   : > { %2636 = vmatpush.msrb.mxu1 %v2557_v26 }
 0x4f5   : > { %2637 = vmatpush.msrb.mxu1 %v2554_v39 }
 0x4f7   : > { %2638 = vmatpush.msrb.mxu1 %v2551_v44 }
 0x4f8   : > { %4282 = vmatmul.msk.f32.vlgmr.msrb.gmra.mxu2 %vm1932_vm1, %v4280_v8  ;;  %v2543_v8 = vld [vmem:[#allocation12 + $0x48] sm:$0xff] }
 0x4f9   : > { %2639 = vmatpush.msrb.mxu1 %v2548_v5  ;;  %2594 = vmatpush.msra.mxu3 %v2543_v8 }
 0x4fb   : > { %2595 = vmatpush.msra.mxu3 %v2540_v58 }
 0x4fd   : > { %2596 = vmatpush.msra.mxu3 %v2537_v2 }
 0x4ff   : > { %2597 = vmatpush.msra.mxu3 %v2534_v6 }
 0x500   : > { %4283 = vmatmul.msk.f32.gmra.mxu2 %vm1932_vm1, %v4281_v52  ;;  %v2544_v52 = vld [vmem:[#allocation12 + $0x50] sm:$0xff] }
 0x501   : > { %2617 = vmatpush.msrb.mxu0 %v2544_v52 }
 0x503   : > { %2618 = vmatpush.msrb.mxu0 %v2541_v60 }
 0x505   : > { %2619 = vmatpush.msrb.mxu0 %v2538_v3 }
 0x507   : > { %2620 = vmatpush.msrb.mxu0 %v2535_v7  ;;  %v4288_v7 = vld [vmem:[%s6266_s23 + $0x20] sm:$0xff] }
 0x55f   : > { %v2400_v19 = vpop.f32.mrf.mxu1 }
 0x567   : > { %v2403_v17 = vpop.f32.mrf.mxu1 }
 0x56b   : > { %v2371_v53 = vpop.f32.mrf.mxu2 }
 0x56c   : > { %v2401_v33 = vadd.f32 %v2400_v19, %v2371_v53  ;;  %v2542_v19 = vld [vmem:[#allocation12 + $0x40] sm:$0xff] }
 0x573   : > { %v2374_v55 = vpop.f32.mrf.mxu2 }
 0x574   : > { %v2404_v42 = vadd.f32 %v2403_v17, %v2374_v55  ;;  %v2545_v55 = vld [vmem:[#allocation12 + $0x58] sm:$0xff] }
 0x575   : > { %2640 = vmatpush.msrb.mxu1 %v2545_v55 }
 0x577   : > { %2641 = vmatpush.msrb.mxu1 %v2542_v19 }
 0x57b   : > { %v2432_v10 = vpop.f32.mrf.mxu2 }
 0x57c   : > { %v2438_v36 = vadd.f32 %v2432_v10, %v2401_v33  ;;  %v2539_v33 = vld [vmem:[#allocation12 + $0x28] sm:$0xff]  ;;  %v2536_v10 = vld [vmem:[#allocation12 + $0x10] sm:$0xff] }
 0x57d   : > { %2642 = vmatpush.msrb.mxu1 %v2539_v33 }
 0x57e   : > { %v5900_v15 = vadd.f32 %v4523_v18, %v2438_v36 }
 0x57f   : > { %2643 = vmatpush.msrb.mxu1 %v2536_v10  ;;  %v4289_v10 = vld [vmem:[%s6266_s23 + $0x28] sm:$0xff] }
 0x580   : > { %v5903_v38 = vmul.f32 0.70710677, %v5900_v15  ;;  %v2446_v8 = vmul.f32 0.5, %v5900_v15 }
 0x582   : > { %v2450_v23 = vmul.f32 %v5903_v38, %v5903_v38 }
 0x583   : > { %v2435_v29 = vpop.f32.mrf.mxu2 }
 0x584   : > { %v5907_v30 = vmin.f32 %v2450_v23, 16.0  ;;  %v2439_v59 = vadd.f32 %v2435_v29, %v2404_v42 }
 0x586   : > { %v2452_v34 = vmul.f32 2.1237322e-06, %v5907_v30  ;;  %v2463_v35 = vmul.f32 3.8918573e-05, %v5907_v30  ;;  %v5911_v37 = vadd.f32 %v4523_v18, %v2439_v59 }
 0x588   : > { %v2453_v54 = vadd.f32 0.00028619796, %v2452_v34  ;;  %v2464_v40 = vadd.f32 0.001143296, %v2463_v35  ;;  %v5914_v41 = vmul.f32 0.70710677, %v5911_v37 }
 0x589   : > { %v2447_v2 = vmul.f32 0.5, %v5911_v37  ;;  %v2651_v37 = vld [vmem:[%s6266_s23] sm:$0xff] }
 0x58a   : > { %v2454_v46 = vmul.f32 %v2453_v54, %v5907_v30  ;;  %v2465_v25 = vmul.f32 %v2464_v40, %v5907_v30  ;;  %v2490_v51 = vmul.f32 %v5914_v41, %v5914_v41 }
 0x58c   : > { %v2455_v49 = vadd.f32 0.0036580483, %v2454_v46  ;;  %v2466_v50 = vadd.f32 0.014752088, %v2465_v25  ;;  %v5920_v53 = vmin.f32 %v2490_v51, 16.0 }
 0x58e   : > { %v2467_v56 = vmul.f32 %v2466_v50, %v5907_v30  ;;  %v2492_v62 = vmul.f32 2.1237322e-06, %v5920_v53  ;;  %v2503_v63 = vmul.f32 3.8918573e-05, %v5920_v53  ;;  %v2456_v1 = vmul.f32 %v2455_v49, %v5907_v30 }
 0x590   : > { %v2468_v0 = vadd.f32 0.112945676, %v2467_v56  ;;  %v2493_v18 = vadd.f32 0.00028619796, %v2492_v62  ;;  %v2504_v36 = vadd.f32 0.001143296, %v2503_v63 }
 0x591   : > { %v2457_v11 = vadd.f32 0.05243302, %v2456_v1 }
 0x592   : > { %v2469_v24 = vmul.f32 %v2468_v0, %v5907_v30  ;;  %v2494_v14 = vmul.f32 %v2493_v18, %v5920_v53  ;;  %v2505_v16 = vmul.f32 %v2504_v36, %v5920_v53  ;;  %v2652_v36 = vld [vmem:[%s6266_s23 + $0x8] sm:$0xff] }
 0x593   : > { %v2458_v17 = vmul.f32 %v2457_v11, %v5907_v30  ;;  %v2856_v11 = vld [vmem:[#allocation15 + $0x168] sm:$0xff] }
 0x594   : > { %v2470_v12 = vadd.f32 0.4994258, %v2469_v24  ;;  %v2506_v27 = vadd.f32 0.014752088, %v2505_v16  ;;  %v2495_v22 = vadd.f32 0.0036580483, %v2494_v14  ;;  %2859 = vmatpush.msra.mxu0 %v2856_v11 }
 0x595   : > { %v2459_v42 = vadd.f32 0.18741608, %v2458_v17  ;;  %v2858_v14 = vld [vmem:[#allocation15 + $0x178] sm:$0xff]  ;;  %v2855_v17 = vld [vmem:[#allocation15 + $0x160] sm:$0xff] }
 0x596   : > { %v2471_v48 = vmul.f32 %v2470_v12, %v5907_v30  ;;  %v2507_v31 = vmul.f32 %v2506_v27, %v5920_v53  ;;  %v2496_v28 = vmul.f32 %v2495_v22, %v5920_v53  ;;  %v2857_v12 = vld [vmem:[#allocation15 + $0x170] sm:$0xff]  ;;  %v2854_v27 = vld [vmem:[#allocation15 + $0x158] sm:$0xff] }
 0x597   : > { %v2460_v59 = vmul.f32 %v2459_v42, %v5907_v30  ;;  %v2850_v22 = vld [vmem:[#allocation15 + $0x138] sm:$0xff] }
 0x598   : > { %v2472_v20 = vadd.f32 1.0, %v2471_v48  ;;  %v2508_v23 = vadd.f32 0.112945676, %v2507_v31  ;;  %v2497_v32 = vadd.f32 0.05243302, %v2496_v28  ;;  %v2853_v48 = vld [vmem:[#allocation15 + $0x150] sm:$0xff] }
 0x599   : > { %v2461_v57 = vadd.f32 1.1283791, %v2460_v59  ;;  %2860 = vmatpush.msra.mxu0 %v2853_v48  ;;  %v2851_v31 = vld [vmem:[#allocation15 + $0x140] sm:$0xff]  ;;  %v4524_v28 = vld [vmem:[%s6267_s28] ss:$0 sm:$0xff]  ;;  %v2818_v48 = vld [vmem:[#allocation15 + $0x38] sm:$0xff]  ;;  %s3964_s28 = scalar_lea.hbm %s6279_s2, %s5269_s0 }
 0x59a   : > { %4545 = vrcp.f32 %v2472_v20  ;;  %v2509_v9 = vmul.f32 %v2508_v23, %v5920_v53  ;;  %v2484_v61 = vand.u32 2147483648, %v2472_v20  ;;  %v2498_v39 = vmul.f32 %v2497_v32, %v5920_v53  ;;  %v2852_v23 = vld [vmem:[#allocation15 + $0x148] sm:$0xff]  ;;  %v2849_v59 = vld [vmem:[#allocation15 + $0x130] sm:$0xff]  ;;  %s4973_s0 = scalar_lea.hbm %s6279_s2, 2 }
 0x59b   : > { %v2482_v40 = vand.u32 2147483647, %v2472_v20  ;;  %vm2478_vm3 = vweird.f32 %v2472_v20  ;;  %v2462_v30 = vmul.f32 %v2461_v57, %v5903_v38  ;;  %2861 = vmatpush.msra.mxu0 %v2850_v22  ;;  %v2841_v57 = vld [vmem:[#allocation15 + $0xf0] sm:$0xff] }
 0x59c   : > { %v2510_v4 = vadd.f32 0.4994258, %v2509_v9  ;;  %v2485_v43 = vor.u32 1.1754944e-38, %v2484_v61  ;;  %v2499_v44 = vadd.f32 0.18741608, %v2498_v39  ;;  %v2842_v61 = vld [vmem:[#allocation15 + $0xf8] sm:$0xff] }
 0x59d   : > { %vm2483_vm5 = vcmp.eq.f32.partialorder %v2482_v40, 8.507059e+37  ;;  %v2843_v39 = vld [vmem:[#allocation15 + $0x100] sm:$0xff] }
 0x59e   : > { %v2511_v26 = vmul.f32 %v2510_v4, %v5920_v53  ;;  %v2500_v5 = vmul.f32 %v2499_v44, %v5920_v53  ;;  %v2847_v4 = vld [vmem:[#allocation15 + $0x120] sm:$0xff]  ;;  %v2840_v44 = vld [vmem:[#allocation15 + $0xe8] sm:$0xff] }
 0x59f   : > { %2862 = vmatpush.msra.mxu0 %v2847_v4  ;;  %v2811_v4 = vld [vmem:[#allocation15] sm:$0xff] }
 0x5a0   : > { %v4546_v29 = vpop.eup %4545  ;;  %v2512_v35 = vadd.f32 1.0, %v2511_v26  ;;  %v2501_v56 = vadd.f32 1.1283791, %v2500_v5  ;;  %v2845_v26 = vld [vmem:[#allocation15 + $0x110] sm:$0xff]  ;;  %v2836_v5 = vld [vmem:[#allocation15 + $0xc8] sm:$0xff] }
 0x5a1   : > { %v2474_v13 = vmul.f32 %v4546_v29, %v2472_v20  ;;  %vm2479_vm1 = vweird.f32 %v4546_v29 }
 0x5a2   : > { %4547 = vrcp.f32 %v2512_v35  ;;  %vm2480_vm4 = vmor %vm2478_vm3, %vm2479_vm1  ;;  %v2524_v55 = vand.u32 2147483648, %v2512_v35  ;;  %v2522_v60 = vand.u32 2147483647, %v2512_v35  ;;  %vm2518_vm7 = vweird.f32 %v2512_v35 }
 0x5a3   : > { %v2475_v34 = vsub.f32 1.0, %v2474_v13  ;;  %v2502_v53 = vmul.f32 %v2501_v56, %v5914_v41  ;;  %v2844_v13 = vld [vmem:[#allocation15 + $0x108] sm:$0xff] }
 0x5a4   : > { %v2525_v62 = vor.u32 1.1754944e-38, %v2524_v55  ;;  %vm2523_vm9 = vcmp.eq.f32.partialorder %v2522_v60, 8.507059e+37  ;;  %2863 = vmatpush.msra.mxu0 %v2844_v13  ;;  %v2834_v55 = vld [vmem:[#allocation15 + $0xb8] sm:$0xff] }
 0x5a5   : > { %v2476_v54 = vmul.f32 %v4546_v29, %v2475_v34  ;;  %v2846_v34 = vld [vmem:[#allocation15 + $0x118] sm:$0xff] }
 0x5a6   : > { %2864 = vmatpush.msra.mxu0 %v2841_v57 }
 0x5a7   : > { %v2477_v21 = vadd.f32 %v4546_v29, %v2476_v54 }
 0x5a8   : > { %v4548_v45 = vpop.eup %4547 }
 0x5a9   : > { %v2481_v46 = vsel %vm2480_vm4, %v4546_v29, %v2477_v21  ;;  %v2514_v51 = vmul.f32 %v4548_v45, %v2512_v35  ;;  %vm2519_vm6 = vweird.f32 %v4548_v45  ;;  %v2848_v29 = vld [vmem:[#allocation15 + $0x128] sm:$0xff]  ;;  %v2838_v21 = vld [vmem:[#allocation15 + $0xd8] sm:$0xff] }
 0x5aa   : > { %v2486_v25 = vsel %vm2483_vm5, %v2485_v43, %v2481_v46  ;;  %vm2520_vm8 = vmor %vm2518_vm7, %vm2519_vm6  ;;  %v2839_v43 = vld [vmem:[#allocation15 + $0xe0] sm:$0xff]  ;;  %2865 = vmatpush.msra.mxu0 %v2838_v21  ;;  %vm3161_vm7 = vcmask 64512  }
 0x5ab   : > { %v2487_v47 = vmul.f32 %v2486_v25, %v2462_v30  ;;  %v2515_v50 = vsub.f32 1.0, %v2514_v51  ;;  %v2837_v51 = vld [vmem:[#allocation15 + $0xd0] sm:$0xff] }
 0x5ad   : > { %v4284_v49 = vclamps-f32 %v2487_v47, 1.0  ;;  %v2516_v58 = vmul.f32 %v4548_v45, %v2515_v50  ;;  %v2835_v47 = vld [vmem:[#allocation15 + $0xc0] sm:$0xff] }
 0x5ae   : > { %2866 = vmatpush.msra.mxu0 %v2835_v47 }
 0x5af   : > { %v2530_v52 = vadd.f32 1.0, %v4284_v49  ;;  %v2517_v38 = vadd.f32 %v4548_v45, %v2516_v58 }
 0x5b1   : > { %v2532_v19 = vmul.f32 %v2530_v52, %v2446_v8  ;;  %v2521_v63 = vsel %vm2520_vm8, %v4548_v45, %v2517_v38  ;;  %v2832_v8 = vld [vmem:[#allocation15 + $0xa8] sm:$0xff]  ;;  %v2833_v52 = vld [vmem:[#allocation15 + $0xb0] sm:$0xff]  ;;  %v2830_v38 = vld [vmem:[#allocation15 + $0x98] sm:$0xff] }
 0x5b2   : > { %v2526_v15 = vsel %vm2523_vm9, %v2525_v62, %v2521_v63  ;;  %2867 = vmatpush.msra.mxu0 %v2832_v8  ;;  %v2831_v62 = vld [vmem:[#allocation15 + $0xa0] sm:$0xff] }
 0x5b3   : > { %2598 = vmatmul.f32.vlgmr.msra.gmra.mxu3 %v2532_v19  ;;  %2621 = vmatmul.f32.vlgmr.msrb.gmra.mxu0 %v2532_v19  ;;  %v2527_v1 = vmul.f32 %v2526_v15, %v2502_v53  ;;  %v2826_v15 = vld [vmem:[#allocation15 + $0x78] sm:$0xff] }
 0x5b4   : > { %2644 = vmatmul.f32.vlgmr.msrb.gmra.mxu1 %v2532_v19  ;;  %v2829_v19 = vld [vmem:[#allocation15 + $0x90] sm:$0xff] }
 0x5b5   : > { %v4285_v0 = vclamps-f32 %v2527_v1, 1.0  ;;  %2868 = vmatpush.msra.mxu0 %v2829_v19 }
 0x5b7   : > { %v2531_v3 = vadd.f32 1.0, %v4285_v0  ;;  %2869 = vmatpush.msra.mxu0 %v2826_v15  ;;  %v2827_v0 = vld [vmem:[#allocation15 + $0x80] sm:$0xff] }
 0x5b9   : > { %v2533_v18 = vmul.f32 %v2531_v3, %v2447_v2  ;;  %v2828_v2 = vld [vmem:[#allocation15 + $0x88] sm:$0xff] }
 0x5bb   : > { %2601 = vmatmul.f32.gmra.mxu3 %v2533_v18  ;;  %2624 = vmatmul.f32.gmra.mxu0 %v2533_v18 }
 0x5bc   : > { %2647 = vmatmul.f32.gmra.mxu1 %v2533_v18 }
 0x630   : > { %v2622_v16 = vpop.f32.mrf.mxu0 }
 0x631   : > { %v2645_v33 = vpop.f32.mrf.mxu1 }
 0x636   : > { %v2599_v6 = vpop.f32.mrf.mxu3 }
 0x638   : > { %v2625_v54 = vpop.f32.mrf.mxu0 }
 0x639   : > { %v2648_v41 = vpop.f32.mrf.mxu1 }
 0x63a   : > { %2706 = vmatpush.msrb.mxu3 %v2648_v41  ;;  %v2825_v41 = vld [vmem:[#allocation15 + $0x70] sm:$0xff] }
 0x63c   : > { %2707 = vmatpush.msrb.mxu3 %v2645_v33  ;;  %v2823_v33 = vld [vmem:[#allocation15 + $0x60] sm:$0xff] }
 0x63d   : > { %4290 = vmatmul.msk.f32.vlgmr.msrb.gmra.mxu3 %vm2653_vm10, %v4288_v7  ;;  %2870 = vmatpush.msra.mxu0 %v2823_v33 }
 0x63e   : > { %v2602_v24 = vpop.f32.mrf.mxu3  ;;  %2905 = vmatpush.msra.mxu3 %v2858_v14 }
 0x63f   : > { %2674 = vmatpush.msra.mxu2 %v2602_v24 }
 0x640   : > { %2906 = vmatpush.msra.mxu3 %v2855_v17 }
 0x641   : > { %2675 = vmatpush.msra.mxu2 %v2599_v6  ;;  %v2824_v6 = vld [vmem:[#allocation15 + $0x68] sm:$0xff] }
 0x642   : > { %4286 = vmatmul.msk.f32.vlgmr.msra.gmra.mxu2 %vm2653_vm10, %v2651_v37  ;;  %2907 = vmatpush.msra.mxu3 %v2852_v23  ;;  %v2814_v23 = vld [vmem:[#allocation15 + $0x18] sm:$0xff] }
 0x643   : > { %2882 = vmatpush.msrb.mxu2 %v2857_v12  ;;  %v2822_v12 = vld [vmem:[#allocation15 + $0x58] sm:$0xff] }
 0x644   : > { %2908 = vmatpush.msra.mxu3 %v2849_v59 }
 0x645   : > { %4291 = vmatmul.msk.f32.gmra.mxu3 %vm2653_vm10, %v4289_v10  ;;  %2883 = vmatpush.msrb.mxu2 %v2854_v27  ;;  %v2820_v10 = vld [vmem:[#allocation15 + $0x48] sm:$0xff]  ;;  %v2819_v27 = vld [vmem:[#allocation15 + $0x40] sm:$0xff] }
 0x646   : > { %2909 = vmatpush.msra.mxu3 %v2846_v34  ;;  %2871 = vmatpush.msra.mxu0 %v2820_v10 }
 0x647   : > { %2884 = vmatpush.msrb.mxu2 %v2851_v31 }
 0x648   : > { %2910 = vmatpush.msra.mxu3 %v2843_v39 }
 0x649   : > { %2885 = vmatpush.msrb.mxu2 %v2848_v29  ;;  %v2812_v29 = vld [vmem:[#allocation15 + $0x8] sm:$0xff] }
 0x64a   : > { %4287 = vmatmul.msk.f32.gmra.mxu2 %vm2653_vm10, %v2652_v36  ;;  %2911 = vmatpush.msra.mxu3 %v2840_v44  ;;  %v2821_v36 = vld [vmem:[#allocation15 + $0x50] sm:$0xff] }
 0x64b   : > { %2886 = vmatpush.msrb.mxu2 %v2845_v26 }
 0x64c   : > { %2912 = vmatpush.msra.mxu3 %v2837_v51 }
 0x64d   : > { %2887 = vmatpush.msrb.mxu2 %v2842_v61 }
 0x64e   : > { %2913 = vmatpush.msra.mxu3 %v2834_v55 }
 0x64f   : > { %2888 = vmatpush.msrb.mxu2 %v2839_v43 }
 0x650   : > { %2914 = vmatpush.msra.mxu3 %v2831_v62 }
 0x651   : > { %2889 = vmatpush.msrb.mxu2 %v2836_v5 }
 0x652   : > { %2915 = vmatpush.msra.mxu3 %v2828_v2 }
 0x653   : > { %2890 = vmatpush.msrb.mxu2 %v2833_v52 }
 0x654   : > { %2916 = vmatpush.msra.mxu3 %v2825_v41 }
 0x655   : > { %2891 = vmatpush.msrb.mxu2 %v2830_v38 }
 0x656   : > { %2917 = vmatpush.msra.mxu3 %v2822_v12 }
 0x657   : > { %2892 = vmatpush.msrb.mxu2 %v2827_v0 }
 0x658   : > { %2918 = vmatpush.msra.mxu3 %v2819_v27 }
 0x659   : > { %2893 = vmatpush.msrb.mxu2 %v2824_v6 }
 0x65b   : > { %2894 = vmatpush.msrb.mxu2 %v2821_v36 }
 0x65d   : > { %2895 = vmatpush.msrb.mxu2 %v2818_v48 }
 0x6c0   : > { %v2709_v20 = vpop.f32.mrf.mxu3 }
 0x6c5   : > { %v2677_v42 = vpop.f32.mrf.mxu2 }
 0x6c6   : > { %v2678_v9 = vadd.f32 %v2677_v42, %v2622_v16  ;;  %v2817_v16 = vld [vmem:[#allocation15 + $0x30] sm:$0xff]  ;;  %v2815_v42 = vld [vmem:[#allocation15 + $0x20] sm:$0xff] }
 0x6c7   : > { %2872 = vmatpush.msra.mxu0 %v2817_v16  ;;  %2896 = vmatpush.msrb.mxu2 %v2815_v42 }
 0x6c8   : > { %v2715_v32 = vadd.f32 %v2709_v20, %v2678_v9  ;;  %v2712_v46 = vpop.f32.mrf.mxu3  ;;  %v2816_v9 = vld [vmem:[#allocation15 + $0x28] sm:$0xff] }
 0x6c9   : > { %2873 = vmatpush.msra.mxu0 %v2814_v23  ;;  %2919 = vmatpush.msra.mxu3 %v2816_v9 }
 0x6ca   : > { %v5951_v35 = vadd.f32 %v4524_v28, %v2715_v32  ;;  %v2813_v32 = vld [vmem:[#allocation15 + $0x10] sm:$0xff]  ;;  %2897 = vmatpush.msrb.mxu2 %v2812_v29 }
 0x6cb   : > { %2874 = vmatpush.msra.mxu0 %v2811_v4  ;;  %2920 = vmatpush.msra.mxu3 %v2813_v32 }
 0x6cc   : > { %v5954_v40 = vmul.f32 0.70710677, %v5951_v35  ;;  %v2723_v10 = vmul.f32 0.5, %v5951_v35 }
 0x6cd   : > { %v2680_v30 = vpop.f32.mrf.mxu2 }
 0x6ce   : > { %v2727_v25 = vmul.f32 %v5954_v40, %v5954_v40  ;;  %v2681_v45 = vadd.f32 %v2680_v30, %v2625_v54 }
 0x6d0   : > { %v5958_v49 = vmin.f32 %v2727_v25, 16.0  ;;  %v2716_v50 = vadd.f32 %v2712_v46, %v2681_v45 }
 0x6d2   : > { %v2729_v56 = vmul.f32 2.1237322e-06, %v5958_v49  ;;  %v2740_v58 = vmul.f32 3.8918573e-05, %v5958_v49  ;;  %v5962_v60 = vadd.f32 %v4524_v28, %v2716_v50 }
 0x6d4   : > { %v2730_v53 = vadd.f32 0.00028619796, %v2729_v56  ;;  %v2741_v63 = vadd.f32 0.001143296, %v2740_v58  ;;  %v5965_v1 = vmul.f32 0.70710677, %v5962_v60 }
 0x6d5   : > { %v2724_v23 = vmul.f32 0.5, %v5962_v60  ;;  %v2928_v60 = vld [vmem:[#allocation14] sm:$0xff] }
 0x6d6   : > { %v2731_v3 = vmul.f32 %v2730_v53, %v5958_v49  ;;  %v2742_v18 = vmul.f32 %v2741_v63, %v5958_v49  ;;  %v2767_v7 = vmul.f32 %v5965_v1, %v5965_v1 }
 0x6d8   : > { %v2732_v24 = vadd.f32 0.0036580483, %v2731_v3  ;;  %v2743_v37 = vadd.f32 0.014752088, %v2742_v18  ;;  %v5971_v11 = vmin.f32 %v2767_v7, 16.0 }
 0x6da   : > { %v2744_v14 = vmul.f32 %v2743_v37, %v5958_v49  ;;  %v2769_v17 = vmul.f32 2.1237322e-06, %v5971_v11  ;;  %v2780_v20 = vmul.f32 3.8918573e-05, %v5971_v11  ;;  %v2733_v22 = vmul.f32 %v2732_v24, %v5958_v49 }
 0x6dc   : > { %v2745_v31 = vadd.f32 0.112945676, %v2744_v14  ;;  %v2770_v28 = vadd.f32 0.00028619796, %v2769_v17  ;;  %v2781_v13 = vadd.f32 0.001143296, %v2780_v20 }
 0x6dd   : > { %v2734_v26 = vadd.f32 0.05243302, %v2733_v22 }
 0x6de   : > { %v2746_v59 = vmul.f32 %v2745_v31, %v5958_v49  ;;  %v2771_v57 = vmul.f32 %v2770_v28, %v5971_v11  ;;  %v2782_v61 = vmul.f32 %v2781_v13, %v5971_v11  ;;  %v2978_v13 = vld [vmem:[#allocation14 + $0x10] sm:$0xff] }
 0x6df   : > { %v2735_v21 = vmul.f32 %v2734_v26, %v5958_v49 }
 0x6e0   : > { %v2747_v34 = vadd.f32 0.4994258, %v2746_v59  ;;  %v2783_v54 = vadd.f32 0.014752088, %v2782_v61  ;;  %v2772_v44 = vadd.f32 0.0036580483, %v2771_v57 }
 0x6e1   : > { %v2736_v25 = vadd.f32 0.18741608, %v2735_v21  ;;  %v3097_v57 = vld [vmem:[#allocation17 + $0x168] sm:$0xff]  ;;  %v3098_v61 = vld [vmem:[#allocation17 + $0x170] sm:$0xff]  ;;  %v3095_v21 = vld [vmem:[#allocation17 + $0x158] sm:$0xff] }
 0x6e2   : > { %v2748_v39 = vmul.f32 %v2747_v34, %v5958_v49  ;;  %v2784_v30 = vmul.f32 %v2783_v54, %v5971_v11  ;;  %v2773_v45 = vmul.f32 %v2772_v44, %v5971_v11  ;;  %3100 = vmatpush.msra.mxu2 %v3097_v57  ;;  %3120 = vmatpush.msrb.mxu3 %v3098_v61  ;;  %v3094_v54 = vld [vmem:[#allocation17 + $0x150] sm:$0xff]  ;;  %v3091_v44 = vld [vmem:[#allocation17 + $0x138] sm:$0xff]  ;;  %v3057_v57 = vld [vmem:[#allocation17 + $0x28] sm:$0xff] }
 0x6e3   : > { %v2737_v50 = vmul.f32 %v2736_v25, %v5958_v49  ;;  %v3052_v61 = vld [vmem:[#allocation17] sm:$0xff] }
 0x6e4   : > { %v2749_v43 = vadd.f32 1.0, %v2748_v39  ;;  %v2785_v46 = vadd.f32 0.112945676, %v2784_v30  ;;  %v2774_v8 = vadd.f32 0.05243302, %v2773_v45  ;;  %v3099_v39 = vld [vmem:[#allocation17 + $0x178] sm:$0xff]  ;;  %3101 = vmatpush.msra.mxu2 %v3094_v54  ;;  %3121 = vmatpush.msrb.mxu3 %v3095_v21 }
 0x6e5   : > { %v2738_v19 = vadd.f32 1.1283791, %v2737_v50  ;;  %v3092_v30 = vld [vmem:[#allocation17 + $0x140] sm:$0xff]  ;;  %v3089_v50 = vld [vmem:[#allocation17 + $0x128] sm:$0xff]  ;;  %v3054_v21 = vld [vmem:[#allocation17 + $0x10] sm:$0xff] }
 0x6e6   : > { %4549 = vrcp.f32 %v2749_v43  ;;  %v2786_v47 = vmul.f32 %v2785_v46, %v5971_v11  ;;  %v2761_v38 = vand.u32 2147483648, %v2749_v43  ;;  %v2775_v62 = vmul.f32 %v2774_v8, %v5971_v11  ;;  %v3093_v46 = vld [vmem:[#allocation17 + $0x148] sm:$0xff]  ;;  %3102 = vmatpush.msra.mxu2 %v3091_v44  ;;  %3122 = vmatpush.msrb.mxu3 %v3092_v30  ;;  %v3090_v8 = vld [vmem:[#allocation17 + $0x130] sm:$0xff] }
 0x6e7   : > { %v2759_v63 = vand.u32 2147483647, %v2749_v43  ;;  %vm2755_vm12 = vweird.f32 %v2749_v43  ;;  %v2739_v49 = vmul.f32 %v2738_v19, %v5954_v40 }
 0x6e8   : > { %v2787_v5 = vadd.f32 0.4994258, %v2786_v47  ;;  %v2762_v0 = vor.u32 1.1754944e-38, %v2761_v38  ;;  %v2776_v2 = vadd.f32 0.18741608, %v2775_v62  ;;  %3123 = vmatpush.msrb.mxu3 %v3089_v50  ;;  %v3082_v38 = vld [vmem:[#allocation17 + $0xf0] sm:$0xff] }
 0x6e9   : > { %vm2760_vm14 = vcmp.eq.f32.partialorder %v2759_v63, 8.507059e+37  ;;  %v4525_v47 = vld [vmem:[%s6268_s11] ss:$0 sm:$0xff]  ;;  %v3083_v62 = vld [vmem:[#allocation17 + $0xf8] sm:$0xff] }
 0x6ea   : > { %v2788_v55 = vmul.f32 %v2787_v5, %v5971_v11  ;;  %v2777_v41 = vmul.f32 %v2776_v2, %v5971_v11  ;;  %v3081_v2 = vld [vmem:[#allocation17 + $0xe8] sm:$0xff] }
 0x6ec   : > { %v4550_v51 = vpop.eup %4549  ;;  %v2789_v58 = vadd.f32 1.0, %v2788_v55  ;;  %v2778_v14 = vadd.f32 1.1283791, %v2777_v41  ;;  %v3085_v55 = vld [vmem:[#allocation17 + $0x108] sm:$0xff] }
 0x6ed   : > { %v2751_v52 = vmul.f32 %v4550_v51, %v2749_v43  ;;  %vm2756_vm11 = vweird.f32 %v4550_v51  ;;  %v3096_v43 = vld [vmem:[#allocation17 + $0x160] sm:$0xff]  ;;  %v3073_v41 = vld [vmem:[#allocation17 + $0xa8] sm:$0xff] }
 0x6ee   : > { %4551 = vrcp.f32 %v2789_v58  ;;  %vm2757_vm13 = vmor %vm2755_vm12, %vm2756_vm11  ;;  %v2801_v12 = vand.u32 2147483648, %v2789_v58  ;;  %v2799_v48 = vand.u32 2147483647, %v2789_v58  ;;  %vm2795_vm0 = vweird.f32 %v2789_v58 }
 0x6ef   : > { %v2752_v56 = vsub.f32 1.0, %v2751_v52  ;;  %v2779_v11 = vmul.f32 %v2778_v14, %v5965_v1  ;;  %v2930_v1 = vld [vmem:[#allocation14 + $0x8] sm:$0xff]  ;;  %v3072_v14 = vld [vmem:[#allocation17 + $0xa0] sm:$0xff] }
 0x6f0   : > { %v2802_v17 = vor.u32 1.1754944e-38, %v2801_v12  ;;  %vm2800_vm1 = vcmp.eq.f32.partialorder %v2799_v48, 8.507059e+37  ;;  %v3071_v12 = vld [vmem:[#allocation17 + $0x98] sm:$0xff] }
 0x6f1   : > { %v2753_v53 = vmul.f32 %v4550_v51, %v2752_v56  ;;  %v3086_v56 = vld [vmem:[#allocation17 + $0x110] sm:$0xff] }
 0x6f2   : > { %3124 = vmatpush.msrb.mxu3 %v3086_v56 }
 0x6f3   : > { %v2754_v15 = vadd.f32 %v4550_v51, %v2753_v53  ;;  %v3084_v53 = vld [vmem:[#allocation17 + $0x100] sm:$0xff] }
 0x6f4   : > { %v4552_v33 = vpop.eup %4551  ;;  %3125 = vmatpush.msrb.mxu3 %v3083_v62 }
 0x6f5   : > { %v2758_v3 = vsel %vm2757_vm13, %v4550_v51, %v2754_v15  ;;  %v2791_v7 = vmul.f32 %v4552_v33, %v2789_v58  ;;  %vm2796_vm15 = vweird.f32 %v4552_v33  ;;  %v3088_v51 = vld [vmem:[#allocation17 + $0x120] sm:$0xff]  ;;  %v3087_v58 = vld [vmem:[#allocation17 + $0x118] sm:$0xff] }
 0x6f6   : > { %v2763_v18 = vsel %vm2760_vm14, %v2762_v0, %v2758_v3  ;;  %vm2797_vm2 = vmor %vm2795_vm0, %vm2796_vm15  ;;  %3103 = vmatpush.msra.mxu2 %v3088_v51  ;;  %v3079_v15 = vld [vmem:[#allocation17 + $0xd8] sm:$0xff]  ;;  %v3080_v0 = vld [vmem:[#allocation17 + $0xe0] sm:$0xff] }
 0x6f7   : > { %v2764_v6 = vmul.f32 %v2763_v18, %v2739_v49  ;;  %v2792_v37 = vsub.f32 1.0, %v2791_v7  ;;  %3126 = vmatpush.msrb.mxu3 %v3080_v0  ;;  %v3076_v3 = vld [vmem:[#allocation17 + $0xc0] sm:$0xff]  ;;  %v3077_v18 = vld [vmem:[#allocation17 + $0xc8] sm:$0xff]  ;;  %v3074_v7 = vld [vmem:[#allocation17 + $0xb0] sm:$0xff] }
 0x6f8   : > { %3104 = vmatpush.msra.mxu2 %v3085_v55 }
 0x6f9   : > { %v4292_v24 = vclamps-f32 %v2764_v6, 1.0  ;;  %v2793_v16 = vmul.f32 %v4552_v33, %v2792_v37  ;;  %3127 = vmatpush.msrb.mxu3 %v3077_v18 }
 0x6fa   : > { %3105 = vmatpush.msra.mxu2 %v3082_v38 }
 0x6fb   : > { %v2807_v36 = vadd.f32 1.0, %v4292_v24  ;;  %v2794_v40 = vadd.f32 %v4552_v33, %v2793_v16  ;;  %v3075_v24 = vld [vmem:[#allocation17 + $0xb8] sm:$0xff]  ;;  %3128 = vmatpush.msrb.mxu3 %v3074_v7 }
 0x6fc   : > { %3106 = vmatpush.msra.mxu2 %v3079_v15 }
 0x6fd   : > { %v2809_v27 = vmul.f32 %v2807_v36, %v2723_v10  ;;  %v2798_v20 = vsel %vm2797_vm2, %v4552_v33, %v2794_v40  ;;  %v3078_v33 = vld [vmem:[#allocation17 + $0xd0] sm:$0xff]  ;;  %3129 = vmatpush.msrb.mxu3 %v3071_v12  ;;  %v3068_v40 = vld [vmem:[#allocation17 + $0x80] sm:$0xff]  ;;  %vm3605_vm2 = vcmask 1043456  }
 0x6fe   : > { %v2803_v22 = vsel %vm2800_vm1, %v2802_v17, %v2798_v20  ;;  %3107 = vmatpush.msra.mxu2 %v3076_v3  ;;  %v3070_v36 = vld [vmem:[#allocation17 + $0x90] sm:$0xff]  ;;  %v3069_v17 = vld [vmem:[#allocation17 + $0x88] sm:$0xff]  ;;  %vm3601_vm1 = vcmask 31744  }
 0x6ff   : > { %2875 = vmatmul.f32.vlgmr.msra.gmra.mxu0 %v2809_v27  ;;  %2898 = vmatmul.f32.vlgmr.msrb.gmra.mxu2 %v2809_v27  ;;  %v2804_v35 = vmul.f32 %v2803_v22, %v2779_v11  ;;  %v3064_v22 = vld [vmem:[#allocation17 + $0x60] sm:$0xff]  ;;  %v3304_v12 = vld [vmem:[#allocation20 + $0x160] sm:$0xff] }
 0x700   : > { %2921 = vmatmul.f32.vlgmr.msra.gmra.mxu3 %v2809_v27  ;;  %3108 = vmatpush.msra.mxu2 %v3073_v41  ;;  %v3067_v27 = vld [vmem:[#allocation17 + $0x78] sm:$0xff] }
 0x701   : > { %v4293_v31 = vclamps-f32 %v2804_v35, 1.0  ;;  %3130 = vmatpush.msrb.mxu3 %v3068_v40  ;;  %v3065_v35 = vld [vmem:[#allocation17 + $0x68] sm:$0xff]  ;;  %v4526_v40 = vld [vmem:[%s6270_s18] ss:$0 sm:$0xff]  ;;  %s1103_s18 = scalar_lea.vmem [#allocation24], %s1102_s15 }
 0x702   : > { %3109 = vmatpush.msra.mxu2 %v3070_v36  ;;  %v3303_v36 = vld [vmem:[#allocation20 + $0x158] sm:$0xff] }
 0x703   : > { %v2808_v42 = vadd.f32 1.0, %v4293_v31  ;;  %v3066_v31 = vld [vmem:[#allocation17 + $0x70] sm:$0xff]  ;;  %3131 = vmatpush.msrb.mxu3 %v3065_v35 }
 0x704   : > { %3110 = vmatpush.msra.mxu2 %v3067_v27 }
 0x705   : > { %v2810_v28 = vmul.f32 %v2808_v42, %v2724_v23  ;;  %v3061_v42 = vld [vmem:[#allocation17 + $0x48] sm:$0xff] }
 0x706   : > { %3111 = vmatpush.msra.mxu2 %v3064_v22  ;;  %v3298_v22 = vld [vmem:[#allocation20 + $0x130] sm:$0xff] }
 0x707   : > { %2878 = vmatmul.f32.gmra.mxu0 %v2810_v28  ;;  %2901 = vmatmul.f32.gmra.mxu2 %v2810_v28 }
 0x708   : > { %2924 = vmatmul.f32.gmra.mxu3 %v2810_v28  ;;  %v3062_v28 = vld [vmem:[#allocation17 + $0x50] sm:$0xff]  ;;  %3112 = vmatpush.msra.mxu2 %v3061_v42  ;;  %v3294_v42 = vld [vmem:[#allocation20 + $0x110] sm:$0xff] }
 0x709   : > { %3132 = vmatpush.msrb.mxu3 %v3062_v28  ;;  %v3295_v28 = vld [vmem:[#allocation20 + $0x118] sm:$0xff] }
 0x77c   : > { %v2876_v29 = vpop.f32.mrf.mxu0 }
 0x782   : > { %v2899_v9 = vpop.f32.mrf.mxu2 }
 0x783   : > { %v2922_v4 = vpop.f32.mrf.mxu3 }
 0x784   : > { %v2879_v26 = vpop.f32.mrf.mxu0 }
 0x78a   : > { %v2902_v59 = vpop.f32.mrf.mxu2 }
 0x78b   : > { %v2925_v32 = vpop.f32.mrf.mxu3  ;;  %2948 = vmatpush.msra.mxu1 %v2902_v59  ;;  %v3058_v59 = vld [vmem:[#allocation17 + $0x30] sm:$0xff] }
 0x78c   : > { %2996 = vmatpush.msrb.mxu0 %v2925_v32  ;;  %v3059_v32 = vld [vmem:[#allocation17 + $0x38] sm:$0xff]  ;;  %3113 = vmatpush.msra.mxu2 %v3058_v59  ;;  %v3292_v59 = vld [vmem:[#allocation20 + $0x100] sm:$0xff] }
 0x78d   : > { %2949 = vmatpush.msra.mxu1 %v2899_v9  ;;  %3133 = vmatpush.msrb.mxu3 %v3059_v32 }
 0x78e   : > { %2997 = vmatpush.msrb.mxu0 %v2922_v4  ;;  %4294 = vmatmul.msk.f32.vlgmr.msra.gmra.mxu1 %vm2653_vm10, %v2930_v1  ;;  %v3063_v4 = vld [vmem:[#allocation17 + $0x58] sm:$0xff]  ;;  %v3060_v1 = vld [vmem:[#allocation17 + $0x40] sm:$0xff] }
 0x78f   : > { %2971 = vmatpush.msrb.mxu1 %v2879_v26  ;;  %4296 = vmatmul.msk.f32.vlgmr.msrb.gmra.mxu0 %vm2653_vm10, %v2978_v13  ;;  %v3055_v26 = vld [vmem:[#allocation17 + $0x18] sm:$0xff] }
 0x790   : > { %3114 = vmatpush.msra.mxu2 %v3055_v26  ;;  %v3289_v26 = vld [vmem:[#allocation20 + $0xe8] sm:$0xff] }
 0x791   : > { %2972 = vmatpush.msrb.mxu1 %v2876_v29 }
 0x792   : > { %3115 = vmatpush.msra.mxu2 %v3052_v61  ;;  %v3286_v61 = vld [vmem:[#allocation20 + $0xd0] sm:$0xff] }
 0x793   : > { %3140 = vmatpush.msra.mxu1 %v3099_v39  ;;  %v3053_v39 = vld [vmem:[#allocation17 + $0x8] sm:$0xff] }
 0x795   : > { %3141 = vmatpush.msra.mxu1 %v3096_v43 }
 0x796   : > { %4295 = vmatmul.msk.f32.vlgmr.msrb.gmra.mxu1 %vm2653_vm10, %v2928_v60  ;;  %v3056_v60 = vld [vmem:[#allocation17 + $0x20] sm:$0xff] }
 0x797   : > { %3142 = vmatpush.msra.mxu1 %v3093_v46  ;;  %3134 = vmatpush.msrb.mxu3 %v3056_v60 }
 0x799   : > { %3143 = vmatpush.msra.mxu1 %v3090_v8  ;;  %3135 = vmatpush.msrb.mxu3 %v3053_v39 }
 0x79b   : > { %3144 = vmatpush.msra.mxu1 %v3087_v58 }
 0x79d   : > { %3145 = vmatpush.msra.mxu1 %v3084_v53 }
 0x79f   : > { %3146 = vmatpush.msra.mxu1 %v3081_v2 }
 0x7a1   : > { %3147 = vmatpush.msra.mxu1 %v3078_v33  ;;  %v3160_v33 = vld [vmem:[%s6269_s1] sm:$0xff] }
 0x7a3   : > { %3148 = vmatpush.msra.mxu1 %v3075_v24  ;;  %v3305_v24 = vld [vmem:[#allocation20 + $0x168] sm:$0xff] }
 0x7a5   : > { %3149 = vmatpush.msra.mxu1 %v3072_v14  ;;  %v3299_v14 = vld [vmem:[#allocation20 + $0x138] sm:$0xff] }
 0x7a7   : > { %3150 = vmatpush.msra.mxu1 %v3069_v17 }
 0x7a9   : > { %3151 = vmatpush.msra.mxu1 %v3066_v31 }
 0x7ab   : > { %3152 = vmatpush.msra.mxu1 %v3063_v4  ;;  %v3290_v4 = vld [vmem:[#allocation20 + $0xf0] sm:$0xff] }
 0x7ad   : > { %3153 = vmatpush.msra.mxu1 %v3060_v1  ;;  %v3287_v1 = vld [vmem:[#allocation20 + $0xd8] sm:$0xff] }
 0x7af   : > { %3154 = vmatpush.msra.mxu1 %v3057_v57  ;;  %v3285_v57 = vld [vmem:[#allocation20 + $0xc8] sm:$0xff] }
 0x7b1   : > { %3155 = vmatpush.msra.mxu1 %v3054_v21  ;;  %v3282_v21 = vld [vmem:[#allocation20 + $0xb0] sm:$0xff] }
 0x80b   : > { %v2951_v34 = vpop.f32.mrf.mxu1 }
 0x80c   : > { %v2999_v45 = vpop.f32.mrf.mxu0 }
 0x813   : > { %v2974_v25 = vpop.f32.mrf.mxu1 }
 0x814   : > { %v2975_v5 = vadd.f32 %v2974_v25, %v2951_v34 }
 0x816   : > { %v3002_v52 = vadd.f32 %v2999_v45, %v2975_v5 }
 0x818   : > { %v5997_v19 = vadd.f32 %v4525_v47, %v3002_v52 }
 0x81a   : > { %v6000_v63 = vmul.f32 0.70710677, %v5997_v19 }
 0x81c   : > { %v3010_v49 = vmul.f32 %v6000_v63, %v6000_v63 }
 0x81e   : > { %v6004_v6 = vmin.f32 %v3010_v49, 16.0  ;;  %v3008_v49 = vmul.f32 0.5, %v5997_v19  ;;  %v3306_v19 = vld [vmem:[#allocation20 + $0x170] sm:$0xff] }
 0x81f   : > { %3328 = vmatpush.msrb.mxu2 %v3306_v19  ;;  %v3260_v19 = vld [vmem:[#allocation20] sm:$0xff] }
 0x820   : > { %v3012_v37 = vmul.f32 2.1237322e-06, %v6004_v6  ;;  %v3023_v10 = vmul.f32 3.8918573e-05, %v6004_v6 }
 0x821   : > { %3329 = vmatpush.msrb.mxu2 %v3303_v36  ;;  %v3262_v36 = vld [vmem:[#allocation20 + $0x10] sm:$0xff] }
 0x822   : > { %v3013_v16 = vadd.f32 0.00028619796, %v3012_v37  ;;  %v3024_v48 = vadd.f32 0.001143296, %v3023_v10  ;;  %v3307_v37 = vld [vmem:[#allocation20 + $0x178] sm:$0xff]  ;;  %v3302_v10 = vld [vmem:[#allocation20 + $0x150] sm:$0xff] }
 0x823   : > { %3348 = vmatpush.msra.mxu3 %v3307_v37  ;;  %v3261_v37 = vld [vmem:[#allocation20 + $0x8] sm:$0xff] }
 0x824   : > { %v3014_v11 = vmul.f32 %v3013_v16, %v6004_v6  ;;  %v3025_v20 = vmul.f32 %v3024_v48, %v6004_v6  ;;  %v3300_v16 = vld [vmem:[#allocation20 + $0x140] sm:$0xff]  ;;  %v3301_v48 = vld [vmem:[#allocation20 + $0x148] sm:$0xff] }
 0x825   : > { %3349 = vmatpush.msra.mxu3 %v3304_v12  ;;  %3330 = vmatpush.msrb.mxu2 %v3300_v16 }
 0x826   : > { %v3026_v23 = vadd.f32 0.014752088, %v3025_v20  ;;  %v3015_v9 = vadd.f32 0.0036580483, %v3014_v11  ;;  %v3296_v11 = vld [vmem:[#allocation20 + $0x120] sm:$0xff]  ;;  %v3297_v20 = vld [vmem:[#allocation20 + $0x128] sm:$0xff] }
 0x827   : > { %3350 = vmatpush.msra.mxu3 %v3301_v48  ;;  %3331 = vmatpush.msrb.mxu2 %v3297_v20 }
 0x828   : > { %v3027_v29 = vmul.f32 %v3026_v23, %v6004_v6  ;;  %v3016_v34 = vmul.f32 %v3015_v9, %v6004_v6  ;;  %v3293_v23 = vld [vmem:[#allocation20 + $0x108] sm:$0xff] }
 0x829   : > { %3351 = vmatpush.msra.mxu3 %v3298_v22  ;;  %3332 = vmatpush.msrb.mxu2 %v3294_v42 }
 0x82a   : > { %v3028_v13 = vadd.f32 0.112945676, %v3027_v29  ;;  %v3017_v44 = vadd.f32 0.05243302, %v3016_v34  ;;  %v3291_v29 = vld [vmem:[#allocation20 + $0xf8] sm:$0xff]  ;;  %v3284_v34 = vld [vmem:[#allocation20 + $0xc0] sm:$0xff] }
 0x82b   : > { %3352 = vmatpush.msra.mxu3 %v3295_v28  ;;  %3333 = vmatpush.msrb.mxu2 %v3291_v29 }
 0x82c   : > { %v3029_v54 = vmul.f32 %v3028_v13, %v6004_v6  ;;  %v3018_v25 = vmul.f32 %v3017_v44, %v6004_v6  ;;  %v3288_v13 = vld [vmem:[#allocation20 + $0xe0] sm:$0xff] }
 0x82d   : > { %3353 = vmatpush.msra.mxu3 %v3292_v59  ;;  %3334 = vmatpush.msrb.mxu2 %v3288_v13 }
 0x82e   : > { %v3030_v43 = vadd.f32 0.4994258, %v3029_v54  ;;  %v3019_v45 = vadd.f32 0.18741608, %v3018_v25  ;;  %v3281_v54 = vld [vmem:[#allocation20 + $0xa8] sm:$0xff]  ;;  %v3279_v25 = vld [vmem:[#allocation20 + $0x98] sm:$0xff] }
 0x82f   : > { %3354 = vmatpush.msra.mxu3 %v3289_v26  ;;  %3335 = vmatpush.msrb.mxu2 %v3285_v57 }
 0x830   : > { %v3031_v30 = vmul.f32 %v3030_v43, %v6004_v6  ;;  %v3020_v5 = vmul.f32 %v3019_v45, %v6004_v6  ;;  %v3283_v43 = vld [vmem:[#allocation20 + $0xb8] sm:$0xff]  ;;  %v3280_v45 = vld [vmem:[#allocation20 + $0xa0] sm:$0xff] }
 0x831   : > { %3355 = vmatpush.msra.mxu3 %v3286_v61  ;;  %3336 = vmatpush.msrb.mxu2 %v3282_v21  ;;  %v3370_v61 = vld [vmem:[#allocation18 + $0x4] sm:$0xf] }
 0x832   : > { %v3032_v46 = vadd.f32 1.0, %v3031_v30  ;;  %v3021_v52 = vadd.f32 1.1283791, %v3020_v5 }
 0x833   : > { %3356 = vmatpush.msra.mxu3 %v3283_v43  ;;  %3337 = vmatpush.msrb.mxu2 %v3279_v25  ;;  %v3418_v43 = vld [vmem:[#allocation18 + $0x8] sm:$0xf]  ;;  %v3539_v25 = vld [vmem:[#allocation23 + $0x178] sm:$0xff] }
 0x834   : > { %4553 = vrcp.f32 %v3032_v46  ;;  %v3044_v8 = vand.u32 2147483648, %v3032_v46  ;;  %v3042_v56 = vand.u32 2147483647, %v3032_v46  ;;  %vm3038_vm4 = vweird.f32 %v3032_v46 }
 0x835   : > { %v3022_v62 = vmul.f32 %v3021_v52, %v6000_v63  ;;  %v4299_v63 = vld [vmem:[%s6269_s1 + $0x10] sm:$0xff]  ;;  %3357 = vmatpush.msra.mxu3 %v3280_v45 }
 0x836   : > { %v3045_v38 = vor.u32 1.1754944e-38, %v3044_v8  ;;  %vm3043_vm6 = vcmp.eq.f32.partialorder %v3042_v56, 8.507059e+37  ;;  %v3277_v8 = vld [vmem:[#allocation20 + $0x88] sm:$0xff]  ;;  %v3272_v56 = vld [vmem:[#allocation20 + $0x60] sm:$0xff] }
 0x837   : > { %3358 = vmatpush.msra.mxu3 %v3277_v8  ;;  %v3534_v45 = vld [vmem:[#allocation23 + $0x150] sm:$0xff]  ;;  %v3533_v8 = vld [vmem:[#allocation23 + $0x148] sm:$0xff] }
 0x83a   : > { %v4554_v47 = vpop.eup %4553 }
 0x83b   : > { %v3034_v51 = vmul.f32 %v4554_v47, %v3032_v46  ;;  %vm3039_vm3 = vweird.f32 %v4554_v47  ;;  %v3278_v46 = vld [vmem:[#allocation20 + $0x90] sm:$0xff] }
 0x83c   : > { %vm3040_vm5 = vmor %vm3038_vm4, %vm3039_vm3 }
 0x83d   : > { %v3035_v50 = vsub.f32 1.0, %v3034_v51  ;;  %v3275_v51 = vld [vmem:[#allocation20 + $0x78] sm:$0xff] }
 0x83f   : > { %v3036_v55 = vmul.f32 %v4554_v47, %v3035_v50  ;;  %v3276_v50 = vld [vmem:[#allocation20 + $0x80] sm:$0xff] }
 0x840   : > { %3338 = vmatpush.msrb.mxu2 %v3276_v50  ;;  %v3532_v50 = vld [vmem:[#allocation23 + $0x140] sm:$0xff] }
 0x841   : > { %v3037_v58 = vadd.f32 %v4554_v47, %v3036_v55 }
 0x843   : > { %v3041_v53 = vsel %vm3040_vm5, %v4554_v47, %v3037_v58  ;;  %v3273_v58 = vld [vmem:[#allocation20 + $0x68] sm:$0xff] }
 0x844   : > { %v3046_v15 = vsel %vm3043_vm6, %v3045_v38, %v3041_v53  ;;  %v3274_v38 = vld [vmem:[#allocation20 + $0x70] sm:$0xff]  ;;  %3339 = vmatpush.msrb.mxu2 %v3273_v58  ;;  %v3269_v53 = vld [vmem:[#allocation20 + $0x48] sm:$0xff] }
 0x845   : > { %v3047_v0 = vmul.f32 %v3046_v15, %v3022_v62  ;;  %3359 = vmatpush.msra.mxu3 %v3274_v38  ;;  %v3270_v15 = vld [vmem:[#allocation20 + $0x50] sm:$0xff]  ;;  %v3530_v38 = vld [vmem:[#allocation23 + $0x130] sm:$0xff] }
 0x846   : > { %3340 = vmatpush.msrb.mxu2 %v3270_v15  ;;  %v3529_v58 = vld [vmem:[#allocation23 + $0x128] sm:$0xff] }
 0x847   : > { %v4297_v2 = vclamps-f32 %v3047_v0, 1.0  ;;  %v3525_v15 = vld [vmem:[#allocation23 + $0x108] sm:$0xff] }
 0x849   : > { %v3050_v3 = vadd.f32 1.0, %v4297_v2  ;;  %v3271_v2 = vld [vmem:[#allocation20 + $0x58] sm:$0xff] }
 0x84a   : > { %3360 = vmatpush.msra.mxu3 %v3271_v2  ;;  %v3527_v2 = vld [vmem:[#allocation23 + $0x118] sm:$0xff] }
 0x84b   : > { %v3051_v18 = vmul.f32 %v3050_v3, %v3008_v49  ;;  %v3266_v3 = vld [vmem:[#allocation20 + $0x30] sm:$0xff] }
 0x84d   : > { %3116 = vmatmul.f32.vlgmr.msra.gmra.mxu2 %v3051_v18  ;;  %3136 = vmatmul.f32.vlgmr.msrb.gmra.mxu3 %v3051_v18 }
 0x84e   : > { %3156 = vmatmul.f32.vlgmr.msra.gmra.mxu1 %v3051_v18  ;;  %v3267_v18 = vld [vmem:[#allocation20 + $0x38] sm:$0xff] }
 0x84f   : > { %3341 = vmatpush.msrb.mxu2 %v3267_v18  ;;  %v3523_v18 = vld [vmem:[#allocation23 + $0xf8] sm:$0xff] }
 0x8cb   : > { %v3157_v41 = vpop.f32.mrf.mxu1 }
 0x8d0   : > { %v3117_v6 = vpop.f32.mrf.mxu2  ;;  %v3137_v27 = vpop.f32.mrf.mxu3 }
 0x8d1   : > { %3180 = vmatpush.msra.mxu0 %v3117_v6 }
 0x8d2   : > { %4298 = vmatmul.msk.f32.vlgmr.msra.gmra.mxu0 %vm3161_vm7, %v3160_v33  ;;  %v3268_v33 = vld [vmem:[#allocation20 + $0x40] sm:$0xff] }
 0x8d3   : > { %3205 = vmatpush.msrb.mxu0 %v3157_v41  ;;  %3361 = vmatpush.msra.mxu3 %v3268_v33  ;;  %v3263_v41 = vld [vmem:[#allocation20 + $0x18] sm:$0xff]  ;;  %v3524_v33 = vld [vmem:[#allocation23 + $0x100] sm:$0xff] }
 0x8d5   : > { %3308 = vmatpush.msra.mxu0 %v3305_v24  ;;  %v3265_v24 = vld [vmem:[#allocation20 + $0x28] sm:$0xff] }
 0x8d6   : > { %3362 = vmatpush.msra.mxu3 %v3265_v24 }
 0x8d7   : > { %3309 = vmatpush.msra.mxu0 %v3302_v10 }
 0x8d8   : > { %3363 = vmatpush.msra.mxu3 %v3262_v36 }
 0x8d9   : > { %3310 = vmatpush.msra.mxu0 %v3299_v14 }
 0x8da   : > { %4300 = vmatmul.msk.f32.vlgmr.msrb.gmra.mxu0 %vm3161_vm7, %v4299_v63  ;;  %v3264_v63 = vld [vmem:[#allocation20 + $0x20] sm:$0xff] }
 0x8db   : > { %3311 = vmatpush.msra.mxu0 %v3296_v11  ;;  %3342 = vmatpush.msrb.mxu2 %v3264_v63  ;;  %v3520_v63 = vld [vmem:[#allocation23 + $0xe0] sm:$0xff] }
 0x8dd   : > { %3312 = vmatpush.msra.mxu0 %v3293_v23  ;;  %3343 = vmatpush.msrb.mxu2 %v3261_v37  ;;  %v3517_v37 = vld [vmem:[#allocation23 + $0xc8] sm:$0xff] }
 0x8df   : > { %3313 = vmatpush.msra.mxu0 %v3290_v4  ;;  %3580 = vmatpush.msra.mxu2 %v3539_v25 }
 0x8e1   : > { %3314 = vmatpush.msra.mxu0 %v3287_v1 }
 0x8e3   : > { %3315 = vmatpush.msra.mxu0 %v3284_v34 }
 0x8e5   : > { %3316 = vmatpush.msra.mxu0 %v3281_v54 }
 0x8e7   : > { %3317 = vmatpush.msra.mxu0 %v3278_v46  ;;  %v3538_v46 = vld [vmem:[#allocation23 + $0x170] sm:$0xff] }
 0x8e9   : > { %3318 = vmatpush.msra.mxu0 %v3275_v51  ;;  %v3531_v51 = vld [vmem:[#allocation23 + $0x138] sm:$0xff] }
 0x8eb   : > { %3319 = vmatpush.msra.mxu0 %v3272_v56  ;;  %v3528_v56 = vld [vmem:[#allocation23 + $0x120] sm:$0xff] }
 0x8ed   : > { %3320 = vmatpush.msra.mxu0 %v3269_v53 }
 0x8ef   : > { %3321 = vmatpush.msra.mxu0 %v3266_v3  ;;  %v3522_v3 = vld [vmem:[#allocation23 + $0xf0] sm:$0xff] }
 0x8f1   : > { %3322 = vmatpush.msra.mxu0 %v3263_v41  ;;  %v3519_v41 = vld [vmem:[#allocation23 + $0xd8] sm:$0xff] }
 0x8f3   : > { %3323 = vmatpush.msra.mxu0 %v3260_v19  ;;  %v3516_v19 = vld [vmem:[#allocation23 + $0xc0] sm:$0xff] }
 0x94f   : > { %v3182_v7 = vpop.f32.mrf.mxu0 }
 0x950   : > { %v3183_v17 = vadd.f32 %v3182_v7, %v3137_v27 }
 0x957   : > { %v3207_v35 = vpop.f32.mrf.mxu0 }
 0x958   : > { %v3210_v31 = vadd.f32 %v3207_v35, %v3183_v17 }
 0x95a   : > { %v6023_v9 = vadd.f32 %v4526_v40, %v3210_v31 }
 0x95c   : > { %v6026_v32 = vmul.f32 0.70710677, %v6023_v9 }
 0x95e   : > { %v3218_v60 = vmul.f32 %v6026_v32, %v6026_v32 }
 0x960   : > { %v6030_v39 = vmin.f32 %v3218_v60, 16.0  ;;  %v3216_v60 = vmul.f32 0.5, %v6023_v9 }
 0x962   : > { %v3220_v44 = vmul.f32 2.1237322e-06, %v6030_v39  ;;  %v3231_v30 = vmul.f32 3.8918573e-05, %v6030_v39 }
 0x964   : > { %v3221_v47 = vadd.f32 0.00028619796, %v3220_v44  ;;  %v3232_v5 = vadd.f32 0.001143296, %v3231_v30  ;;  %v3537_v30 = vld [vmem:[#allocation23 + $0x168] sm:$0xff] }
 0x965   : > { %3540 = vmatpush.msrb.mxu0 %v3537_v30  ;;  %v3492_v30 = vld [vmem:[#allocation23] sm:$0xff] }
 0x966   : > { %v3222_v52 = vmul.f32 %v3221_v47, %v6030_v39  ;;  %v3233_v55 = vmul.f32 %v3232_v5, %v6030_v39  ;;  %v3535_v47 = vld [vmem:[#allocation23 + $0x158] sm:$0xff]  ;;  %v3536_v5 = vld [vmem:[#allocation23 + $0x160] sm:$0xff] }
 0x967   : > { %3541 = vmatpush.msrb.mxu0 %v3534_v45  ;;  %3581 = vmatpush.msra.mxu2 %v3536_v5  ;;  %v3494_v45 = vld [vmem:[#allocation23 + $0x10] sm:$0xff] }
 0x968   : > { %v3234_v62 = vadd.f32 0.014752088, %v3233_v55  ;;  %v3223_v0 = vadd.f32 0.0036580483, %v3222_v52  ;;  %v4527_v52 = vld [vmem:[%s6271_s16] ss:$0 sm:$0xff] }
 0x969   : > { %3542 = vmatpush.msrb.mxu0 %v3531_v51  ;;  %3582 = vmatpush.msra.mxu2 %v3533_v8  ;;  %s3966_s16 = sshll.u32 %s1103_s18, 4  ;;  %s3967_s16 = int_to_ptr.vmem [resolvable:$true] %s3966_s16 }
 0x96a   : > { %v3235_v49 = vmul.f32 %v3234_v62, %v6030_v39  ;;  %v3224_v7 = vmul.f32 %v3223_v0, %v6030_v39  ;;  %v3526_v0 = vld [vmem:[#allocation23 + $0x110] sm:$0xff] }
 0x96b   : > { %3543 = vmatpush.msrb.mxu0 %v3528_v56  ;;  %3583 = vmatpush.msra.mxu2 %v3530_v38 }
 0x96c   : > { %v3236_v6 = vadd.f32 0.112945676, %v3235_v49  ;;  %v3225_v14 = vadd.f32 0.05243302, %v3224_v7  ;;  %v3521_v7 = vld [vmem:[#allocation23 + $0xe8] sm:$0xff] }
 0x96d   : > { %3544 = vmatpush.msrb.mxu0 %v3525_v15  ;;  %3584 = vmatpush.msra.mxu2 %v3527_v2 }
 0x96e   : > { %v3237_v10 = vmul.f32 %v3236_v6, %v6030_v39  ;;  %v3226_v27 = vmul.f32 %v3225_v14, %v6030_v39  ;;  %v3514_v14 = vld [vmem:[#allocation23 + $0xb0] sm:$0xff] }
 0x96f   : > { %3545 = vmatpush.msrb.mxu0 %v3522_v3  ;;  %3585 = vmatpush.msra.mxu2 %v3524_v33 }
 0x970   : > { %v3238_v12 = vadd.f32 0.4994258, %v3237_v10  ;;  %v3227_v40 = vadd.f32 0.18741608, %v3226_v27  ;;  %v3518_v10 = vld [vmem:[#allocation23 + $0xd0] sm:$0xff] }
 0x971   : > { %3546 = vmatpush.msrb.mxu0 %v3519_v41  ;;  %3586 = vmatpush.msra.mxu2 %v3521_v7 }
 0x972   : > { %v3239_v16 = vmul.f32 %v3238_v12, %v6030_v39  ;;  %v3228_v11 = vmul.f32 %v3227_v40, %v6030_v39  ;;  %v3513_v12 = vld [vmem:[#allocation23 + $0xa8] sm:$0xff]  ;;  %v3510_v40 = vld [vmem:[#allocation23 + $0x90] sm:$0xff] }
 0x973   : > { %3547 = vmatpush.msrb.mxu0 %v3516_v19  ;;  %3587 = vmatpush.msra.mxu2 %v3518_v10  ;;  %v3600_v10 = vld [vmem:[#allocation21] sm:$0xf] }
 0x974   : > { %v3240_v48 = vadd.f32 1.0, %v3239_v16  ;;  %v3229_v31 = vadd.f32 1.1283791, %v3228_v11  ;;  %v3515_v16 = vld [vmem:[#allocation23 + $0xb8] sm:$0xff]  ;;  %v3512_v11 = vld [vmem:[#allocation23 + $0xa0] sm:$0xff] }
 0x975   : > { %3548 = vmatpush.msrb.mxu0 %v3513_v12  ;;  %3588 = vmatpush.msra.mxu2 %v3515_v16  ;;  %v3630_v12 = vld [vmem:[#allocation21 + $0x8] sm:$0xf] }
 0x976   : > { %4555 = vrcp.f32 %v3240_v48  ;;  %v3252_v35 = vand.u32 2147483648, %v3240_v48  ;;  %v3250_v42 = vand.u32 2147483647, %v3240_v48  ;;  %vm3246_vm9 = vweird.f32 %v3240_v48 }
 0x977   : > { %v3230_v29 = vmul.f32 %v3229_v31, %v6026_v32  ;;  %v3368_v32 = vld [vmem:[#allocation18] sm:$0xf]  ;;  %3549 = vmatpush.msrb.mxu0 %v3510_v40  ;;  %3589 = vmatpush.msra.mxu2 %v3512_v11  ;;  %v3508_v31 = vld [vmem:[#allocation23 + $0x80] sm:$0xff] }
 0x978   : > { %v3253_v4 = vor.u32 1.1754944e-38, %v3252_v35  ;;  %vm3251_vm12 = vcmp.eq.f32.partialorder %v3250_v42, 8.507059e+37  ;;  %v3507_v35 = vld [vmem:[#allocation23 + $0x78] sm:$0xff] }
 0x979   : > { %3550 = vmatpush.msrb.mxu0 %v3507_v35 }
 0x97c   : > { %v4556_v17 = vpop.eup %4555 }
 0x97d   : > { %v3242_v20 = vmul.f32 %v4556_v17, %v3240_v48  ;;  %vm3247_vm8 = vweird.f32 %v4556_v17 }
 0x97e   : > { %vm3248_vm11 = vmor %vm3246_vm9, %vm3247_vm8 }
 0x97f   : > { %v3243_v22 = vsub.f32 1.0, %v3242_v20 }
 0x981   : > { %v3244_v23 = vmul.f32 %v4556_v17, %v3243_v22 }
 0x983   : > { %v3245_v28 = vadd.f32 %v4556_v17, %v3244_v23  ;;  %v3509_v23 = vld [vmem:[#allocation23 + $0x88] sm:$0xff] }
 0x984   : > { %3590 = vmatpush.msra.mxu2 %v3509_v23 }
 0x985   : > { %v3249_v59 = vsel %vm3248_vm11, %v4556_v17, %v3245_v28  ;;  %v3511_v17 = vld [vmem:[#allocation23 + $0x98] sm:$0xff] }
 0x986   : > { %v3254_v1 = vsel %vm3251_vm12, %v3253_v4, %v3249_v59  ;;  %v3504_v4 = vld [vmem:[#allocation23 + $0x60] sm:$0xff]  ;;  %v3506_v59 = vld [vmem:[#allocation23 + $0x70] sm:$0xff] }
 0x987   : > { %v3255_v13 = vmul.f32 %v3254_v1, %v3230_v29  ;;  %v3505_v29 = vld [vmem:[#allocation23 + $0x68] sm:$0xff]  ;;  %3551 = vmatpush.msrb.mxu0 %v3504_v4  ;;  %3591 = vmatpush.msra.mxu2 %v3506_v59 }
 0x989   : > { %v4301_v26 = vclamps-f32 %v3255_v13, 1.0  ;;  %v3501_v13 = vld [vmem:[#allocation23 + $0x48] sm:$0xff] }
 0x98a   : > { %3552 = vmatpush.msrb.mxu0 %v3501_v13 }
 0x98b   : > { %v3258_v34 = vadd.f32 1.0, %v4301_v26  ;;  %v3502_v26 = vld [vmem:[#allocation23 + $0x50] sm:$0xff] }
 0x98d   : > { %v3259_v57 = vmul.f32 %v3258_v34, %v3216_v60  ;;  %v3503_v34 = vld [vmem:[#allocation23 + $0x58] sm:$0xff] }
 0x98e   : > { %3592 = vmatpush.msra.mxu2 %v3503_v34 }
 0x98f   : > { %3324 = vmatmul.f32.vlgmr.msra.gmra.mxu0 %v3259_v57  ;;  %3344 = vmatmul.f32.vlgmr.msrb.gmra.mxu2 %v3259_v57 }
 0x990   : > { %3364 = vmatmul.f32.vlgmr.msra.gmra.mxu3 %v3259_v57 }
 0xa0c   : > { %v3325_v54 = vpop.f32.mrf.mxu0 }
 0xa12   : > { %v3345_v39 = vpop.f32.mrf.mxu2 }
 0xa13   : > { %3389 = vmatpush.msrb.mxu1 %v3345_v39  ;;  %v3365_v21 = vpop.f32.mrf.mxu3  ;;  %v3499_v39 = vld [vmem:[#allocation23 + $0x38] sm:$0xff] }
 0xa14   : > { %4302 = vmatmul.msk.f32.vlgmr.msrb.gmra.mxu1 %vm3161_vm7, %v3370_v61  ;;  %v3498_v61 = vld [vmem:[#allocation23 + $0x30] sm:$0xff] }
 0xa15   : > { %3412 = vmatpush.msra.mxu1 %v3325_v54  ;;  %v3500_v54 = vld [vmem:[#allocation23 + $0x40] sm:$0xff]  ;;  %3553 = vmatpush.msrb.mxu0 %v3498_v61 }
 0xa16   : > { %3593 = vmatpush.msra.mxu2 %v3500_v54  ;;  %v3744_v54 = vld [vmem:[%s6273_s7 + $0x78] sm:$0xff]  ;;  %s3956_s7 = scalar_lea.sflag [#allocation5], %s1102_s15 }
 0xa17   : > { %3437 = vmatpush.msrb.mxu1 %v3365_v21 }
 0xa1c   : > { %4303 = vmatmul.msk.f32.vlgmr.msra.gmra.mxu1 %vm3161_vm7, %v3368_v32  ;;  %v3495_v32 = vld [vmem:[#allocation23 + $0x18] sm:$0xff] }
 0xa1d   : > { %3560 = vmatpush.msra.mxu1 %v3538_v46  ;;  %3554 = vmatpush.msrb.mxu0 %v3495_v32  ;;  %v3493_v46 = vld [vmem:[#allocation23 + $0x8] sm:$0xff]  ;;  %v3776_v32 = vld [vmem:[%s6274_s26 + $0x178] sm:$0xff] }
 0xa1f   : > { %3561 = vmatpush.msra.mxu1 %v3535_v47  ;;  %3555 = vmatpush.msrb.mxu0 %v3492_v30  ;;  %v3759_v30 = vld [vmem:[%s6274_s26 + $0xf0] sm:$0xff] }
 0xa21   : > { %3562 = vmatpush.msra.mxu1 %v3532_v50 }
 0xa23   : > { %3563 = vmatpush.msra.mxu1 %v3529_v58 }
 0xa24   : > { %4304 = vmatmul.msk.f32.vlgmr.msrb.gmra.mxu1 %vm3161_vm7, %v3418_v43  ;;  %v3496_v43 = vld [vmem:[#allocation23 + $0x20] sm:$0xff] }
 0xa25   : > { %3564 = vmatpush.msra.mxu1 %v3526_v0 }
 0xa27   : > { %3565 = vmatpush.msra.mxu1 %v3523_v18 }
 0xa29   : > { %3566 = vmatpush.msra.mxu1 %v3520_v63 }
 0xa2b   : > { %3567 = vmatpush.msra.mxu1 %v3517_v37 }
 0xa2d   : > { %3568 = vmatpush.msra.mxu1 %v3514_v14 }
 0xa2f   : > { %3569 = vmatpush.msra.mxu1 %v3511_v17 }
 0xa31   : > { %3570 = vmatpush.msra.mxu1 %v3508_v31 }
 0xa33   : > { %3571 = vmatpush.msra.mxu1 %v3505_v29 }
 0xa35   : > { %3572 = vmatpush.msra.mxu1 %v3502_v26 }
 0xa37   : > { %3573 = vmatpush.msra.mxu1 %v3499_v39 }
 0xa39   : > { %3574 = vmatpush.msra.mxu1 %v3496_v43 }
 0xa3b   : > { %3575 = vmatpush.msra.mxu1 %v3493_v46  ;;  %v3775_v46 = vld [vmem:[%s6274_s26 + $0x170] sm:$0xff] }
 0xa3d   : > { %3843 = vmatpush.msrb.mxu1 %v3776_v32  ;;  %v3765_v32 = vld [vmem:[%s6274_s26 + $0x120] sm:$0xff] }
 0xa3f   : > { %3844 = vmatpush.msrb.mxu1 %v3775_v46  ;;  %v3748_v46 = vld [vmem:[%s6274_s26 + $0x98] sm:$0xff] }
 0xa91   : > { %v3391_v9 = vpop.f32.mrf.mxu1 }
 0xa99   : > { %v3414_v44 = vpop.f32.mrf.mxu1 }
 0xa9a   : > { %v3415_v55 = vadd.f32 %v3414_v44, %v3391_v9  ;;  %v3497_v44 = vld [vmem:[#allocation23 + $0x28] sm:$0xff] }
 0xa9b   : > { %3594 = vmatpush.msra.mxu2 %v3497_v44  ;;  %v3743_v44 = vld [vmem:[%s6274_s26 + $0x70] sm:$0xff] }
 0xa9d   : > { %3595 = vmatpush.msra.mxu2 %v3494_v45  ;;  %v3742_v45 = vld [vmem:[%s6274_s26 + $0x68] sm:$0xff] }
 0xaa1   : > { %v3439_v62 = vpop.f32.mrf.mxu1 }
 0xaa2   : > { %v3442_v53 = vadd.f32 %v3439_v62, %v3415_v55 }
 0xaa4   : > { %v6048_v49 = vadd.f32 %v4527_v52, %v3442_v53 }
 0xaa6   : > { %v6051_v6 = vmul.f32 0.70710677, %v6048_v49 }
 0xaa8   : > { %v3450_v24 = vmul.f32 %v6051_v6, %v6051_v6 }
 0xaaa   : > { %v6055_v36 = vmin.f32 %v3450_v24, 16.0  ;;  %v3448_v24 = vmul.f32 0.5, %v6048_v49  ;;  %v4528_v49 = vld [vmem:[%s6272_s25] ss:$0 sm:$0xff]  ;;  %s3968_s25 = sshll.u32 %s3964_s28, 4  ;;  %s3969_s25 = int_to_ptr.hbm [resolvable:$true] %s3968_s25 }
 0xaab   : > { %s4967_s1 = sshra.s32 %s3969_s25, 4  ;;  %s4968_s1 = int_to_ptr.hbm [resolvable:$true] %s4967_s1 }
 0xaac   : > { %v3452_v48 = vmul.f32 2.1237322e-06, %v6055_v36  ;;  %v3463_v27 = vmul.f32 3.8918573e-05, %v6055_v36  ;;  %s4969_s3 = scalar_lea.hbm %s4968_s1, 1  ;;  %p4974_p3 = scmp.lt.s32.totalorder %s4968_s1, %s6279_s2 }
 0xaad   : > { %p4970_p9 = scmp.ne.s32.totalorder %s4968_s1, %s4969_s3  ;;  %p4975_p4 = scmp.lt.s32.totalorder %s4973_s0, %s4969_s3 }
 0xaae   : > { %v3453_v20 = vadd.f32 0.00028619796, %v3452_v48  ;;  %v3464_v22 = vadd.f32 0.001143296, %v3463_v27 }
 0xaaf   : > { %p4971_p12 = pnand %p4970_p9, %p5286_p5  ;;  %p4976_p7 = por %p4975_p4, %p4974_p3 }
 0xab0   : > { %v3454_v42 = vmul.f32 %v3453_v20, %v6055_v36  ;;  %v3465_v28 = vmul.f32 %v3464_v22, %v6055_v36 }
 0xab1   : > { %p4972_p0 = pneg %p4971_p12 }
 0xab2   : > { %v3466_v1 = vadd.f32 0.014752088, %v3465_v28  ;;  %v3455_v60 = vadd.f32 0.0036580483, %v3454_v42 }
 0xab3   : > { %p4977_p8 = pnand %p4976_p7, %p4972_p0 }
 0xab4   : > { %v3467_v57 = vmul.f32 %v3466_v1, %v6055_v36  ;;  %v3456_v9 = vmul.f32 %v3455_v60, %v6055_v36 }
 0xab6   : > { %v3468_v21 = vadd.f32 0.112945676, %v3467_v57  ;;  %v3457_v5 = vadd.f32 0.05243302, %v3456_v9  ;;  %v3792_v9 = vld [vmem:[%s6274_s26 + $0x1f8] sm:$0xff] }
 0xab7   : > { %3863 = vmatpush.msrb.mxu2 %v3792_v9 }
 0xab8   : > { %v3469_v25 = vmul.f32 %v3468_v21, %v6055_v36  ;;  %v3458_v8 = vmul.f32 %v3457_v5, %v6055_v36  ;;  %v3760_v21 = vld [vmem:[%s6274_s26 + $0xf8] sm:$0xff]  ;;  %v3774_v5 = vld [vmem:[%s6274_s26 + $0x168] sm:$0xff] }
 0xab9   : > { %3823 = vmatpush.msra.mxu0 %v3760_v21  ;;  %3845 = vmatpush.msrb.mxu1 %v3774_v5  ;;  %v3749_v21 = vld [vmem:[%s6274_s26 + $0xa0] sm:$0xff] }
 0xaba   : > { %v3470_v47 = vadd.f32 0.4994258, %v3469_v25  ;;  %v3459_v52 = vadd.f32 0.18741608, %v3458_v8  ;;  %v3791_v25 = vld [vmem:[%s6274_s26 + $0x1f0] sm:$0xff]  ;;  %v3741_v8 = vld [vmem:[%s6274_s26 + $0x60] sm:$0xff] }
 0xabb   : > { %3824 = vmatpush.msra.mxu0 %v3759_v30  ;;  %3864 = vmatpush.msrb.mxu2 %v3791_v25  ;;  %v3732_v30 = vld [vmem:[%s6274_s26 + $0x18] sm:$0xff] }
 0xabc   : > { %v3471_v51 = vmul.f32 %v3470_v47, %v6055_v36  ;;  %v3460_v56 = vmul.f32 %v3459_v52, %v6055_v36  ;;  %v3758_v47 = vld [vmem:[%s6274_s26 + $0xe8] sm:$0xff]  ;;  %v3757_v52 = vld [vmem:[%s6274_s26 + $0xe0] sm:$0xff] }
 0xabd   : > { %3825 = vmatpush.msra.mxu0 %v3758_v47  ;;  %v3731_v47 = vld [vmem:[%s6274_s26 + $0x10] sm:$0xff] }
 0xabe   : > { %v3472_v50 = vadd.f32 1.0, %v3471_v51  ;;  %v3461_v53 = vadd.f32 1.1283791, %v3460_v56  ;;  %v3789_v56 = vld [vmem:[%s6274_s26 + $0x1e0] sm:$0xff] }
 0xabf   : > { %3826 = vmatpush.msra.mxu0 %v3757_v52  ;;  %v3730_v52 = vld [vmem:[%s6274_s26 + $0x8] sm:$0xff] }
 0xac0   : > { %4557 = vrcp.f32 %v3472_v50  ;;  %v3484_v62 = vand.u32 2147483648, %v3472_v50  ;;  %v3482_v0 = vand.u32 2147483647, %v3472_v50  ;;  %vm3478_vm14 = vweird.f32 %v3472_v50 }
 0xac1   : > { %v3462_v18 = vmul.f32 %v3461_v53, %v6051_v6  ;;  %v3772_v53 = vld [vmem:[%s6274_s26 + $0x158] sm:$0xff] }
 0xac2   : > { %v3485_v3 = vor.u32 1.1754944e-38, %v3484_v62  ;;  %vm3483_vm0 = vcmp.eq.f32.partialorder %v3482_v0, 8.507059e+37  ;;  %v3756_v62 = vld [vmem:[%s6274_s26 + $0xd8] sm:$0xff] }
 0xac3   : > { %3827 = vmatpush.msra.mxu0 %v3756_v62  ;;  %v3745_v62 = vld [vmem:[%s6274_s26 + $0x80] sm:$0xff] }
 0xac6   : > { %v4558_v55 = vpop.eup %4557 }
 0xac7   : > { %v3474_v58 = vmul.f32 %v4558_v55, %v3472_v50  ;;  %vm3479_vm13 = vweird.f32 %v4558_v55  ;;  %v3790_v50 = vld [vmem:[%s6274_s26 + $0x1e8] sm:$0xff] }
 0xac8   : > { %vm3480_vm15 = vmor %vm3478_vm14, %vm3479_vm13  ;;  %3865 = vmatpush.msrb.mxu2 %v3790_v50  ;;  %v3763_v50 = vld [vmem:[%s6274_s26 + $0x110] sm:$0xff]  ;;  %vm3953_vm13 = vcmask 57344  }
 0xac9   : > { %v3475_v38 = vsub.f32 1.0, %v3474_v58 }
 0xaca   : > { %3866 = vmatpush.msrb.mxu2 %v3789_v56  ;;  %v3762_v56 = vld [vmem:[%s6274_s26 + $0x108] sm:$0xff] }
 0xacb   : > { %v3476_v15 = vmul.f32 %v4558_v55, %v3475_v38  ;;  %v3740_v38 = vld [vmem:[%s6274_s26 + $0x58] sm:$0xff] }
 0xacd   : > { %v3477_v2 = vadd.f32 %v4558_v55, %v3476_v15 }
 0xacf   : > { %v3481_v33 = vsel %vm3480_vm15, %v4558_v55, %v3477_v2  ;;  %v3773_v55 = vld [vmem:[%s6274_s26 + $0x160] sm:$0xff]  ;;  %v3788_v2 = vld [vmem:[%s6274_s26 + $0x1d8] sm:$0xff] }
 0xad0   : > { %v3486_v41 = vsel %vm3483_vm0, %v3485_v3, %v3481_v33  ;;  %3846 = vmatpush.msrb.mxu1 %v3773_v55  ;;  %3867 = vmatpush.msrb.mxu2 %v3788_v2  ;;  %v3739_v3 = vld [vmem:[%s6274_s26 + $0x50] sm:$0xff]  ;;  %v3746_v55 = vld [vmem:[%s6274_s26 + $0x88] sm:$0xff] }
 0xad1   : > { %v3487_v63 = vmul.f32 %v3486_v41, %v3462_v18  ;;  %v3755_v18 = vld [vmem:[%s6274_s26 + $0xd0] sm:$0xff] }
 0xad2   : > { %3847 = vmatpush.msrb.mxu1 %v3772_v53  ;;  %3828 = vmatpush.msra.mxu0 %v3755_v18  ;;  %v3771_v41 = vld [vmem:[%s6274_s26 + $0x150] sm:$0xff]  ;;  %v3761_v53 = vld [vmem:[%s6274_s26 + $0x100] sm:$0xff] }
 0xad3   : > { %v4305_v7 = vclamps-f32 %v3487_v63, 1.0  ;;  %v3787_v63 = vld [vmem:[%s6274_s26 + $0x1d0] sm:$0xff] }
 0xad4   : > { %3848 = vmatpush.msrb.mxu1 %v3771_v41  ;;  %3868 = vmatpush.msrb.mxu2 %v3787_v63 }
 0xad5   : > { %v3490_v19 = vadd.f32 1.0, %v4305_v7 }
 0xad7   : > { %v3491_v37 = vmul.f32 %v3490_v19, %v3448_v24  ;;  %v3738_v24 = vld [vmem:[%s6274_s26 + $0x48] sm:$0xff] }
 0xad8   : > { %v3754_v19 = vld [vmem:[%s6274_s26 + $0xc8] sm:$0xff] }
 0xad9   : > { %3556 = vmatmul.f32.vlgmr.msrb.gmra.mxu0 %v3491_v37  ;;  %3576 = vmatmul.f32.vlgmr.msra.gmra.mxu1 %v3491_v37 }
 0xada   : > { %3596 = vmatmul.f32.vlgmr.msra.gmra.mxu2 %v3491_v37  ;;  %v3770_v37 = vld [vmem:[%s6274_s26 + $0x148] sm:$0xff]  ;;  %3829 = vmatpush.msra.mxu0 %v3754_v19 }
 0xadb   : > { %3849 = vmatpush.msrb.mxu1 %v3770_v37 }
 0xb56   : > { %v3557_v36 = vpop.f32.mrf.mxu0  ;;  %v3577_v16 = vpop.f32.mrf.mxu1 }
 0xb57   : > { %4306 = vmatpush.msk.msrb.mxu3 %vm3605_vm2, %v3557_v36 }
 0xb58   : > { %4307 = vmatmul.msk.f32.vlgmr.msrb.gmra.mxu3 %vm3601_vm1, %v3600_v10 }
 0xb5d   : > { %v3597_v6 = vpop.f32.mrf.mxu2 }
 0xb5e   : > { %4308 = vmatpush.msk.msra.mxu3 %vm3605_vm2, %v3597_v6 }
 0xb60   : > { %4309 = vmatmul.msk.f32.vlgmr.msra.gmra.mxu3 %vm3601_vm1, %v3630_v12  ;;  %v3786_v12 = vld [vmem:[%s6274_s26 + $0x1c8] sm:$0xff] }
 0xb61   : > { %3803 = vmatpush.msrb.mxu3 %v3744_v54  ;;  %3869 = vmatpush.msrb.mxu2 %v3786_v12  ;;  %v3733_v54 = vld [vmem:[%s6274_s26 + $0x20] sm:$0xff] }
 0xb63   : > { %3804 = vmatpush.msrb.mxu3 %v3743_v44  ;;  %v3781_v44 = vld [vmem:[%s6274_s26 + $0x1a0] sm:$0xff] }
 0xb65   : > { %3805 = vmatpush.msrb.mxu3 %v3742_v45  ;;  %v3764_v45 = vld [vmem:[%s6274_s26 + $0x118] sm:$0xff] }
 0xb67   : > { %3806 = vmatpush.msrb.mxu3 %v3741_v8  ;;  %v3779_v8 = vld [vmem:[%s6274_s26 + $0x190] sm:$0xff] }
 0xb69   : > { %3807 = vmatpush.msrb.mxu3 %v3740_v38  ;;  %v3729_v38 = vld [vmem:[%s6274_s26] sm:$0xff] }
 0xb6b   : > { %3808 = vmatpush.msrb.mxu3 %v3739_v3 }
 0xb6d   : > { %3809 = vmatpush.msrb.mxu3 %v3738_v24  ;;  %v3793_v24 = vld [vmem:[%s5231_s9] sm:$0x1] }
 0xbdb   : > { %v3626_v14 = vpop.f32.mrf.mxu3 }
 0xbdc   : > { %v3627_v48 = vadd.f32 %v3626_v14, %v3577_v16  ;;  %v3737_v14 = vld [vmem:[%s6274_s26 + $0x40] sm:$0xff] }
 0xbdd   : > { %v3753_v16 = vld [vmem:[%s6274_s26 + $0xc0] sm:$0xff]  ;;  %3810 = vmatpush.msrb.mxu3 %v3737_v14 }
 0xbde   : > { %3830 = vmatpush.msra.mxu0 %v3753_v16 }
 0xbe3   : > { %v3654_v27 = vpop.f32.mrf.mxu3 }
 0xbe4   : > { %v3657_v40 = vadd.f32 %v3654_v27, %v3627_v48  ;;  %v3769_v48 = vld [vmem:[%s6274_s26 + $0x140] sm:$0xff] }
 0xbe5   : > { %3850 = vmatpush.msrb.mxu1 %v3769_v48 }
 0xbe6   : > { %v6070_v17 = vadd.f32 %v4528_v49, %v3657_v40  ;;  %v3785_v40 = vld [vmem:[%s6274_s26 + $0x1c0] sm:$0xff] }
 0xbe7   : > { %3870 = vmatpush.msrb.mxu2 %v3785_v40 }
 0xbe8   : > { %v6073_v11 = vmul.f32 0.70710677, %v6070_v17 }
 0xbea   : > { %v3665_v20 = vmul.f32 %v6073_v11, %v6073_v11 }
 0xbec   : > { %v3666_v22 = vmin.f32 %v3665_v20, 16.0 }
 0xbee   : > { %v3667_v35 = vmul.f32 2.1237322e-06, %v3666_v22  ;;  %v3678_v31 = vmul.f32 3.8918573e-05, %v3666_v22 }
 0xbf0   : > { %v3668_v23 = vadd.f32 0.00028619796, %v3667_v35  ;;  %v3679_v42 = vadd.f32 0.001143296, %v3678_v31  ;;  %v3752_v35 = vld [vmem:[%s6274_s26 + $0xb8] sm:$0xff] }
 0xbf1   : > { %v3768_v31 = vld [vmem:[%s6274_s26 + $0x138] sm:$0xff]  ;;  %3831 = vmatpush.msra.mxu0 %v3752_v35 }
 0xbf2   : > { %v3669_v28 = vmul.f32 %v3668_v23, %v3666_v22  ;;  %v3680_v4 = vmul.f32 %v3679_v42, %v3666_v22  ;;  %3851 = vmatpush.msrb.mxu1 %v3768_v31 }
 0xbf4   : > { %v3681_v29 = vadd.f32 0.014752088, %v3680_v4  ;;  %v3670_v59 = vadd.f32 0.0036580483, %v3669_v28  ;;  %v3784_v28 = vld [vmem:[%s6274_s26 + $0x1b8] sm:$0xff] }
 0xbf5   : > { %3871 = vmatpush.msrb.mxu2 %v3784_v28 }
 0xbf6   : > { %v3682_v1 = vmul.f32 %v3681_v29, %v3666_v22  ;;  %v3671_v26 = vmul.f32 %v3670_v59, %v3666_v22  ;;  %v3735_v29 = vld [vmem:[%s6274_s26 + $0x30] sm:$0xff] }
 0xbf7   : > { %v3751_v59 = vld [vmem:[%s6274_s26 + $0xb0] sm:$0xff] }
 0xbf8   : > { %v3683_v13 = vadd.f32 0.112945676, %v3682_v1  ;;  %v3672_v57 = vadd.f32 0.05243302, %v3671_v26  ;;  %v3767_v1 = vld [vmem:[%s6274_s26 + $0x130] sm:$0xff]  ;;  %3832 = vmatpush.msra.mxu0 %v3751_v59  ;;  %v3707_v26 = vlaneseq  ;;  %v3928_v59 = vld [vmem:[%s5236_s5 + $0x8] sm:$0xff] }
 0xbf9   : > { %3852 = vmatpush.msrb.mxu1 %v3767_v1 }
 0xbfa   : > { %v3684_v60 = vmul.f32 %v3683_v13, %v3666_v22  ;;  %v3673_v43 = vmul.f32 %v3672_v57, %v3666_v22  ;;  %v3766_v57 = vld [vmem:[%s6274_s26 + $0x128] sm:$0xff]  ;;  %vm6143_vm7 = vcmp.lt.s32.totalorder %v3707_v26, 128 }
 0xbfb   : > { %3853 = vmatpush.msrb.mxu1 %v3766_v57 }
 0xbfc   : > { %v3685_v34 = vadd.f32 0.4994258, %v3684_v60  ;;  %v3674_v51 = vadd.f32 0.18741608, %v3673_v43  ;;  %v3734_v60 = vld [vmem:[%s6274_s26 + $0x28] sm:$0xff]  ;;  %v3663_v43 = vmul.f32 0.5, %v6070_v17 }
 0xbfd   : > { %3854 = vmatpush.msrb.mxu1 %v3765_v32  ;;  %v3780_v17 = vld [vmem:[%s6274_s26 + $0x198] sm:$0xff] }
 0xbfe   : > { %v3686_v61 = vmul.f32 %v3685_v34, %v3666_v22  ;;  %v3675_v15 = vmul.f32 %v3674_v51, %v3666_v22  ;;  %v3736_v22 = vld [vmem:[%s6274_s26 + $0x38] sm:$0xff]  ;;  %v3750_v34 = vld [vmem:[%s6274_s26 + $0xa8] sm:$0xff]  ;;  %v3747_v51 = vld [vmem:[%s6274_s26 + $0x90] sm:$0xff] }
 0xbff   : > { %3811 = vmatpush.msrb.mxu3 %v3736_v22  ;;  %3833 = vmatpush.msra.mxu0 %v3750_v34 }
 0xc00   : > { %v6077_v39 = vadd.f32 1.0, %v3686_v61  ;;  %v3676_v10 = vadd.f32 1.1283791, %v3675_v15  ;;  %3855 = vmatpush.msrb.mxu1 %v3764_v45  ;;  %v3777_v15 = vld [vmem:[%s6274_s26 + $0x180] sm:$0xff] }
 0xc01   : > { %3812 = vmatpush.msrb.mxu3 %v3735_v29  ;;  %3834 = vmatpush.msra.mxu0 %v3749_v21 }
 0xc02   : > { %4559 = vrcp.f32 %v6077_v39  ;;  %v3699_v7 = vand.u32 2147483648, %v6077_v39  ;;  %v3697_v6 = vand.u32 2147483647, %v6077_v39  ;;  %vm3693_vm4 = vweird.f32 %v6077_v39  ;;  %3856 = vmatpush.msrb.mxu1 %v3763_v50 }
 0xc03   : > { %v3677_v23 = vmul.f32 %v3676_v10, %v6073_v11  ;;  %v3783_v11 = vld [vmem:[%s6274_s26 + $0x1b0] sm:$0xff]  ;;  %3813 = vmatpush.msrb.mxu3 %v3734_v60  ;;  %3835 = vmatpush.msra.mxu0 %v3748_v46 }
 0xc04   : > { %v3700_v20 = vor.u32 1.1754944e-38, %v3699_v7  ;;  %vm3698_vm6 = vcmp.eq.f32.partialorder %v3697_v6, 8.507059e+37  ;;  %3872 = vmatpush.msrb.mxu2 %v3783_v11  ;;  %3857 = vmatpush.msrb.mxu1 %v3762_v56  ;;  %v3929_v56 = vld [vmem:[%s6280_s8] sm:$0x1] }
 0xc05   : > { %3814 = vmatpush.msrb.mxu3 %v3733_v54  ;;  %3836 = vmatpush.msra.mxu0 %v3747_v51 }
 0xc06   : > { %3858 = vmatpush.msrb.mxu1 %v3761_v53 }
 0xc07   : > { %3815 = vmatpush.msrb.mxu3 %v3732_v30  ;;  %3837 = vmatpush.msra.mxu0 %v3746_v55 }
 0xc08   : > { %v4560_v58 = vpop.eup %4559 }
 0xc09   : > { %v3689_v0 = vmul.f32 %v4560_v58, %v6077_v39  ;;  %vm3694_vm3 = vweird.f32 %v4560_v58  ;;  %v3782_v39 = vld [vmem:[%s6274_s26 + $0x1a8] sm:$0xff]  ;;  %3816 = vmatpush.msrb.mxu3 %v3731_v47  ;;  %3838 = vmatpush.msra.mxu0 %v3745_v62 }
 0xc0a   : > { %vm6116_vm5 = vmor %vm3693_vm4, %vm3694_vm3  ;;  %3873 = vmatpush.msrb.mxu2 %v3782_v39 }
 0xc0b   : > { %v3690_v33 = vsub.f32 1.0, %v3689_v0  ;;  %3817 = vmatpush.msrb.mxu3 %v3730_v52 }
 0xc0c   : > { %3874 = vmatpush.msrb.mxu2 %v3781_v44 }
 0xc0d   : > { %v3691_v36 = vmul.f32 %v4560_v58, %v3690_v33  ;;  %3818 = vmatpush.msrb.mxu3 %v3729_v38 }
 0xc0e   : > { %3875 = vmatpush.msrb.mxu2 %v3780_v17 }
 0xc0f   : > { %v3692_v49 = vadd.f32 %v4560_v58, %v3691_v36  ;;  %3947 = vmatpush.msra.mxu3 %v3928_v59 }
 0xc10   : > { %3876 = vmatpush.msrb.mxu2 %v3779_v8 }
 0xc11   : > { %v3696_v42 = vsel %vm6116_vm5, %v4560_v58, %v3692_v49  ;;  %v3778_v58 = vld [vmem:[%s6274_s26 + $0x188] sm:$0xff] }
 0xc12   : > { %v3701_v4 = vsel %vm3698_vm6, %v3700_v20, %v3696_v42  ;;  %3877 = vmatpush.msrb.mxu2 %v3778_v58 }
 0xc13   : > { %v3702_v13 = vmul.f32 %v3701_v4, %v3677_v23 }
 0xc14   : > { %3878 = vmatpush.msrb.mxu2 %v3777_v15 }
 0xc15   : > { %v4310_v61 = vclamps-f32 %v3702_v13, 1.0  ;;  %v3927_v13 = vld [vmem:[%s5236_s5] sm:$0xff] }
 0xc16   : > { %3948 = vmatpush.msra.mxu3 %v3927_v13 }
 0xc17   : > { %v3705_v9 = vadd.f32 1.0, %v4310_v61 }
 0xc19   : > { %v3706_v5 = vmul.f32 %v3705_v9, %v3663_v43 }
 0xc1b   : > { %3711 = vst.msk [vmem:[#allocation2] sm:$0x1] %vm6143_vm7, %v3706_v5 }
 0xc1c   : > { %3713 = vst [vmem:[#allocation1] sm:$0xff] %v3706_v5 }
 0xc23   : > { %v3715_v0 = vld [vmem:[#allocation1 + $0x1] ss:$9 sm:$0xff] }
 0xc24   : > { %3717 = vst.msk [vmem:[#allocation2 + $0x1] sm:$0x1] %vm6143_vm7, %v3715_v0 }
 0xc25   : > { %3718 = vst [vmem:[#allocation1] sm:$0xff] %v3706_v5 }
 0xc2c   : > { %v3720_v2 = vld [vmem:[#allocation1 + $0x2] ss:$9 sm:$0xff] }
 0xc2d   : > { %3722 = vst.msk [vmem:[#allocation2 + $0x2] sm:$0x1] %vm6143_vm7, %v3720_v2 }
 0xc2e   : > { %3723 = vst [vmem:[#allocation1] sm:$0xff] %v3706_v5 }
 0xc35   : > { %v3725_v3 = vld [vmem:[#allocation1 + $0x3] ss:$9 sm:$0xff] }
 0xc36   : > { %3727 = vst.msk [vmem:[#allocation2 + $0x3] sm:$0x1] %vm6143_vm7, %v3725_v3 }
 0xc3d   : > { %v3728_v18 = vld [vmem:[#allocation2] sm:$0xf] }
 0xc3e   : > { %v3795_v33 = vperm.slane %v3728_v18, 0  ;;  %v3796_v41 = vperm.slane %v3728_v18, 1  ;;  %v3797_v63 = vperm.slane %v3728_v18, 2  ;;  %v3798_v7 = vperm.slane %v3728_v18, 3 }
 0xc40   : > { %3819 = vmatmul.f32.vlgmr.msrb.gmra.mxu3 %v3795_v33  ;;  %3839 = vmatmul.f32.vlgmr.msra.gmra.mxu0 %v3796_v41 }
 0xc41   : > { %3859 = vmatmul.f32.vlgmr.msrb.gmra.mxu1 %v3797_v63  ;;  %3879 = vmatmul.f32.vlgmr.msrb.gmra.mxu2 %v3798_v7 }
 0xcbd   : > { %v3840_v10 = vpop.f32.mrf.mxu0 }
 0xcbe   : > { %v3860_v6 = vpop.f32.mrf.mxu1 }
 0xcc3   : > { %v3820_v19 = vpop.f32.mrf.mxu3 }
 0xcc4   : > { %v3821_v37 = vadd.f32 %v3820_v19, %v3793_v24  ;;  %v3880_v14 = vpop.f32.mrf.mxu2 }
 0xcc6   : > { %v3841_v36 = vadd.f32 %v3840_v10, %v3821_v37 }
 0xcc8   : > { %v3861_v12 = vadd.f32 %v3860_v6, %v3841_v36 }
 0xcca   : > { %v3881_v16 = vadd.f32 %v3880_v14, %v3861_v12 }
 0xccc   : > { %v3884_v48 = vmul.f32 0.70710677, %v3881_v16  ;;  %v3883_v8 = vmul.f32 0.5, %v3881_v16 }
 0xcce   : > { %v3885_v49 = vmul.f32 %v3884_v48, %v3884_v48 }
 0xcd0   : > { %v3886_v27 = vmin.f32 %v3885_v49, 16.0 }
 0xcd2   : > { %v3887_v40 = vmul.f32 2.1237322e-06, %v3886_v27  ;;  %v3898_v20 = vmul.f32 3.8918573e-05, %v3886_v27 }
 0xcd4   : > { %v3888_v22 = vadd.f32 0.00028619796, %v3887_v40  ;;  %v3899_v35 = vadd.f32 0.001143296, %v3898_v20 }
 0xcd6   : > { %v3889_v31 = vmul.f32 %v3888_v22, %v3886_v27  ;;  %v3900_v23 = vmul.f32 %v3899_v35, %v3886_v27 }
 0xcd8   : > { %v3901_v42 = vadd.f32 0.014752088, %v3900_v23  ;;  %v3890_v28 = vadd.f32 0.0036580483, %v3889_v31 }
 0xcda   : > { %v3902_v4 = vmul.f32 %v3901_v42, %v3886_v27  ;;  %v3891_v1 = vmul.f32 %v3890_v28, %v3886_v27 }
 0xcdc   : > { %v3903_v29 = vadd.f32 0.112945676, %v3902_v4  ;;  %v3892_v60 = vadd.f32 0.05243302, %v3891_v1 }
 0xcde   : > { %v3904_v11 = vmul.f32 %v3903_v29, %v3886_v27  ;;  %v3893_v61 = vmul.f32 %v3892_v60, %v3886_v27 }
 0xce0   : > { %v3905_v26 = vadd.f32 0.4994258, %v3904_v11  ;;  %v3894_v39 = vadd.f32 0.18741608, %v3893_v61 }
 0xce2   : > { %v3906_v34 = vmul.f32 %v3905_v26, %v3886_v27  ;;  %v3895_v21 = vmul.f32 %v3894_v39, %v3886_v27 }
 0xce4   : > { %v3907_v57 = vadd.f32 1.0, %v3906_v34  ;;  %v3896_v44 = vadd.f32 1.1283791, %v3895_v21 }
 0xce6   : > { %4561 = vrcp.f32 %v3907_v57  ;;  %v3919_v9 = vand.u32 2147483648, %v3907_v57  ;;  %v3917_v46 = vand.u32 2147483647, %v3907_v57  ;;  %vm3913_vm9 = vweird.f32 %v3907_v57 }
 0xce7   : > { %v3897_v17 = vmul.f32 %v3896_v44, %v3884_v48 }
 0xce8   : > { %v3920_v45 = vor.u32 1.1754944e-38, %v3919_v9  ;;  %vm3918_vm12 = vcmp.eq.f32.partialorder %v3917_v46, 8.507059e+37 }
 0xcec   : > { %v4562_v54 = vpop.eup %4561 }
 0xced   : > { %v3909_v32 = vmul.f32 %v4562_v54, %v3907_v57  ;;  %vm3914_vm8 = vweird.f32 %v4562_v54 }
 0xcee   : > { %vm3915_vm11 = vmor %vm3913_vm9, %vm3914_vm8 }
 0xcef   : > { %v3910_v43 = vsub.f32 1.0, %v3909_v32 }
 0xcf1   : > { %v3911_v30 = vmul.f32 %v4562_v54, %v3910_v43 }
 0xcf3   : > { %v3912_v25 = vadd.f32 %v4562_v54, %v3911_v30 }
 0xcf5   : > { %v3916_v47 = vsel %vm3915_vm11, %v4562_v54, %v3912_v25 }
 0xcf6   : > { %v3921_v5 = vsel %vm3918_vm12, %v3920_v45, %v3916_v47 }
 0xcf7   : > { %v3922_v51 = vmul.f32 %v3921_v5, %v3897_v17 }
 0xcf9   : > { %v4311_v50 = vclamps-f32 %v3922_v51, 1.0 }
 0xcfb   : > { %v3925_v52 = vadd.f32 1.0, %v4311_v50 }
 0xcfd   : > { %v3926_v55 = vmul.f32 %v3925_v52, %v3883_v8 }
 0xcff   : > { %4312 = vmatmul.msk.f32.vlgmr.msra.gmra.mxu3 %vm2653_vm10, %v3926_v55 }
 0xd82   : > { %v3950_v58 = vpop.f32.mrf.mxu3 }
 0xd83   : > { %v3951_v38 = vadd.f32 %v3950_v58, %v3929_v56 }
 0xd85   : > { %3954 = vst.msk [vmem:[%s1103_s18] sm:$0x1] %vm3953_vm13, %v3951_v38 }
 0xd86   : > { %4980 = shalt.err (!%p4977_p8)
}
 0xd87   : > { %4368 = dma.vmem_to_hbm [thread:$0]  (%p5286_p5), %s3967_s16, 16, %s3969_s25, %s3956_s7  }
 0xd88 PF: > { %s6282_s8 = sld [smem:[#allocation53_spill]] }
 0xd89   : > { %s6283_s28 = sld [smem:[#allocation51_spill]] }
 0xd8e   : > { %p4440_p11 = scmp.ge.s32.totalorder %s6282_s8, 2 }
 0xd8f   : > { %s3980_s18 = sand.u32 1, %s6283_s28  }
 0xd90   : > { %p4411_p13 = pnand %p4440_p11, %p5290_p6  ;;  %s3981_s4 = scalar_lea.sflag [#allocation5], %s3980_s18 }
 0xd92   : > { %p4412_p1 = pneg %p4411_p13 }
 0xd94   : > { %5026 = dma.done.wait (%p4412_p1), %s3981_s4, 16  }
 0xd95   : > { %5028 = vsyncadd (%p4412_p1), %s3981_s4, 4294967280  ;;  %s6285_s15 = sld [smem:[#allocation54_spill]]  ;;  %s6288_s7 = smov %s5035_s10 }
 0xd96   : > { %s6286_s3 = sld [smem:[#allocation52_spill]] }
 0xd97   : > { %s6287_s11 = sld [smem:[#allocation55_spill]] }
 0xd9b   : > { %p76_p2 = scmp.ge.s32.totalorder %s6285_s15, 4  }
 0xd9c   : > { %s6289_s10 = smov %s6286_s3 }
 0xd9d   :  { %78 = sbr.rel (!%p76_p2) target bundleno = 64 (0x40), region = 268 }
 0xda2   :  { %3986 = vsyncpa [#allocation4], 1 }
 0xda3   :  { %3988 = vsyncpa [#allocation4 + $0x1], 1 }
 0xda4   :  { %3989 = vsyncpa [#allocation7], 1 }
 0xda5   :  { %3990 = vsyncpa [#allocation10], 1 }
 0xda6   :  { %3991 = vsyncpa [#allocation13], 1 }
 0xda7   :  { %3992 = vsyncpa [#allocation16], 1 }
 0xda8   :  { %3993 = vsyncpa [#allocation19], 1 }
 0xda9   :  { %3994 = vsyncpa [#allocation22], 1 }
 0xdaa   :  { %3995 = vsyncpa [#allocation5], 1 }
 0xdab   :  { %3997 = vsyncpa [#allocation5 + $0x1], 1 }

</bundles_post_ra>
